<compile_context>
chip_gen: v7x
topology: tpu7x:2x2x1
jax: 0.10.0
libtpu: 0.0.40
codegen_flags: <defaults>
</compile_context>

<pallas_src>
import jax
import jax.numpy as jnp
from jax import lax
from jax.experimental import pallas as pl
from jax.experimental.pallas import tpu as pltpu

EPS = 1e-5  # torch.nn.InstanceNorm2d default eps (affine=False, no running stats)


def _fill_reflect_pad(pad_ref, img, H, W):
    """Write reflection-padded `img` (H, W, C) into `pad_ref` (H+2, W+2, C)."""
    pad_ref[1:H + 1, 1:W + 1, :] = img                         # interior
    pad_ref[0:1, 1:W + 1, :] = img[1:2]                        # top    = row 1
    pad_ref[H + 1:H + 2, 1:W + 1, :] = img[H - 2:H - 1]        # bottom = row H-2
    pad_ref[:, 0:1, :] = pad_ref[:, 2:3, :]                    # left  (+ corners)
    pad_ref[:, W + 1:W + 2, :] = pad_ref[:, W - 1:W, :]        # right (+ corners)


def _conv3x3_instnorm(pad_ref, w_flat, b, H, W, C):
    """3x3 VALID conv as a single im2col matmul, + bias + InstanceNorm2d.

    pad_ref: (H+2, W+2, C) VMEM ref; w_flat: (9C, C); b: (1, C).
    Returns (H*W, C) float32.
    """
    # im2col: 9 shifted views of the padded tile, concatenated along channels.
    pieces = [pad_ref[dy:dy + H, dx:dx + W, :].reshape(H * W, C)
              for dy in range(3) for dx in range(3)]
    patches = jnp.concatenate(pieces, axis=-1)                  # (H*W, 9C)
    acc = jnp.dot(patches, w_flat,
                  preferred_element_type=jnp.float32) + b       # (H*W, C)
    # InstanceNorm2d: per-channel mean / biased variance over spatial dims.
    mean = jnp.mean(acc, axis=0, keepdims=True)
    var = jnp.mean((acc - mean) ** 2, axis=0, keepdims=True)
    return (acc - mean) * lax.rsqrt(var + EPS)


def residual_block_kernel(x_ref, w1_ref, b1_ref, w2_ref, b2_ref, out_ref,
                          xpad_ref, hpad_ref):
    _, H, W, C = x_ref.shape
    x = x_ref[0]                                                # (H, W, C)

    # stage 1: reflect-pad -> conv3x3 -> InstanceNorm -> ReLU  (all in VMEM)
    _fill_reflect_pad(xpad_ref, x, H, W)
    h = jnp.maximum(
        _conv3x3_instnorm(xpad_ref, w1_ref[...], b1_ref[...], H, W, C), 0.0)

    # stage 2: reflect-pad -> conv3x3 -> InstanceNorm -> residual add
    _fill_reflect_pad(hpad_ref, h.reshape(H, W, C), H, W)
    y = _conv3x3_instnorm(hpad_ref, w2_ref[...], b2_ref[...], H, W, C)

    out_ref[0] = x + y.reshape(H, W, C)


@jax.jit
def residual_block(x_nchw, w1, b1, w2, b2):
    # NCHW -> NHWC (channels in the lane dim so the conv is a plain matmul).
    x = jnp.transpose(x_nchw, (0, 2, 3, 1)).astype(jnp.float32)
    N, H, W, C = x.shape
    # HWIO (3,3,Cin,Cout) -> (9*Cin, Cout); K order (ky, kx, cin) matches im2col.
    w1f = w1.reshape(9 * C, C).astype(jnp.float32)
    w2f = w2.reshape(9 * C, C).astype(jnp.float32)

    img_spec = pl.BlockSpec((1, H, W, C), lambda n: (n, 0, 0, 0))
    w_spec = pl.BlockSpec((9 * C, C), lambda n: (0, 0))
    b_spec = pl.BlockSpec((1, C), lambda n: (0, 0))

    y = pl.pallas_call(
        residual_block_kernel,
        out_shape=jax.ShapeDtypeStruct((N, H, W, C), jnp.float32),
        grid=(N,),
        in_specs=[img_spec, w_spec, b_spec, w_spec, b_spec],
        out_specs=img_spec,
        scratch_shapes=[pltpu.VMEM((H + 2, W + 2, C), jnp.float32),   # xpad
                        pltpu.VMEM((H + 2, W + 2, C), jnp.float32)],  # hpad
        compiler_params=pltpu.CompilerParams(
            dimension_semantics=("parallel",)),
    )(x, w1f, b1.astype(jnp.float32), w2f, b2.astype(jnp.float32))

    # NHWC -> NCHW
    return jnp.transpose(y, (0, 3, 1, 2))


def _reference(x_nchw, w1, b1, w2, b2):
    """Plain-JAX reference (NHWC internally), mirrors the PyTorch forward."""
    x = jnp.transpose(x_nchw, (0, 2, 3, 1)).astype(jnp.float32)

    def conv_in(inp, w, b):
        p = jnp.pad(inp, ((0, 0), (1, 1), (1, 1), (0, 0)), mode="reflect")
        c = lax.conv_general_dilated(
            p, w, window_strides=(1, 1), padding="VALID",
            dimension_numbers=("NHWC", "HWIO", "NHWC")) + b.reshape(1, 1, 1, -1)
        mean = jnp.mean(c, axis=(1, 2), keepdims=True)
        var = jnp.mean((c - mean) ** 2, axis=(1, 2), keepdims=True)
        return (c - mean) * lax.rsqrt(var + EPS)

    h = jnp.maximum(conv_in(x, w1, b1), 0.0)
    y = x + conv_in(h, w2, b2)
    return jnp.transpose(y, (0, 3, 1, 2))


if __name__ == "__main__":
    N, C, H, W = 2, 4, 16, 16  # in_features = C

    key = jax.random.PRNGKey(0)
    kx, kw1, kb1, kw2, kb2 = jax.random.split(key, 5)

    x = jax.random.normal(kx, (N, C, H, W), dtype=jnp.float32)
    # Conv weights stored HWIO (3, 3, Cin, Cout); deterministic synthetic init.
    w1 = 0.1 * jax.random.normal(kw1, (3, 3, C, C), dtype=jnp.float32)
    b1 = 0.05 * jax.random.normal(kb1, (1, C), dtype=jnp.float32)
    w2 = 0.1 * jax.random.normal(kw2, (3, 3, C, C), dtype=jnp.float32)
    b2 = 0.05 * jax.random.normal(kb2, (1, C), dtype=jnp.float32)

    out = residual_block(x, w1, b1, w2, b2)
    jax.block_until_ready(out)

    ref = _reference(x, w1, b1, w2, b2)
    assert out.shape == (N, C, H, W)
    assert jnp.max(jnp.abs(out - ref)) < 1e-4, "mismatch vs. reference"

    print("KERNEL_OK")
</pallas_src>

<mosaic_0001>
module attributes {stable_mosaic.version = 11 : i64} {
  func.func @residual_block_kernel(%arg0: i32, %arg1: memref<1x16x16x4xf32, #tpu.memory_space<vmem>>, %arg2: memref<36x4xf32, #tpu.memory_space<vmem>>, %arg3: memref<1x4xf32, #tpu.memory_space<vmem>>, %arg4: memref<36x4xf32, #tpu.memory_space<vmem>>, %arg5: memref<1x4xf32, #tpu.memory_space<vmem>>, %arg6: memref<1x16x16x4xf32, #tpu.memory_space<vmem>>, %arg7: memref<18x18x4xf32, #tpu.memory_space<vmem>>, %arg8: memref<18x18x4xf32, #tpu.memory_space<vmem>>) attributes {dimension_semantics = [#tpu.dimension_semantics<parallel>], iteration_bounds = array<i64: 2>, scalar_prefetch = 0 : i64, scratch_operands = 2 : i64, tpu.core_type = #tpu.core_type<tc>, window_params = [{transform_indices = @transform_0, window_bounds = array<i64: 1, 16, 16, 4>}, {pipeline_mode = #tpu.pipeline_mode<synchronous>, transform_indices = @transform_1, window_bounds = array<i64: 36, 4>}, {pipeline_mode = #tpu.pipeline_mode<synchronous>, transform_indices = @transform_2, window_bounds = array<i64: 1, 4>}, {pipeline_mode = #tpu.pipeline_mode<synchronous>, transform_indices = @transform_3, window_bounds = array<i64: 36, 4>}, {pipeline_mode = #tpu.pipeline_mode<synchronous>, transform_indices = @transform_4, window_bounds = array<i64: 1, 4>}, {transform_indices = @transform_5, window_bounds = array<i64: 1, 16, 16, 4>}]} {
    %c0 = arith.constant 0 : index
    %c0_0 = arith.constant 0 : index
    %c0_1 = arith.constant 0 : index
    %c0_2 = arith.constant 0 : index
    %0 = vector.load %arg1[%c0, %c0_0, %c0_1, %c0_2] : memref<1x16x16x4xf32, #tpu.memory_space<vmem>>, vector<1x16x16x4xf32>
    %1 = vector.shape_cast %0 : vector<1x16x16x4xf32> to vector<16x16x4xf32>
    %c1 = arith.constant 1 : index
    %c1_3 = arith.constant 1 : index
    %c0_4 = arith.constant 0 : index
    %2 = vector.load %arg7[%c1, %c1_3, %c0_4] : memref<18x18x4xf32, #tpu.memory_space<vmem>>, vector<16x16x4xf32>
    tpu.vector_store %arg7[%c1, %c1_3, %c0_4], %1 {strides = array<i32>} : memref<18x18x4xf32, #tpu.memory_space<vmem>>, vector<16x16x4xf32>,
    %3 = vector.extract_strided_slice %1 {offsets = [1, 0, 0], sizes = [1, 16, 4], strides = [1, 1, 1]} : vector<16x16x4xf32> to vector<1x16x4xf32>
    %c0_5 = arith.constant 0 : index
    %c1_6 = arith.constant 1 : index
    %c0_7 = arith.constant 0 : index
    %4 = vector.load %arg7[%c0_5, %c1_6, %c0_7] : memref<18x18x4xf32, #tpu.memory_space<vmem>>, vector<1x16x4xf32>
    tpu.vector_store %arg7[%c0_5, %c1_6, %c0_7], %3 {strides = array<i32>} : memref<18x18x4xf32, #tpu.memory_space<vmem>>, vector<1x16x4xf32>,
    %5 = vector.extract_strided_slice %1 {offsets = [14, 0, 0], sizes = [1, 16, 4], strides = [1, 1, 1]} : vector<16x16x4xf32> to vector<1x16x4xf32>
    %c17 = arith.constant 17 : index
    %c1_8 = arith.constant 1 : index
    %c0_9 = arith.constant 0 : index
    %6 = vector.load %arg7[%c17, %c1_8, %c0_9] : memref<18x18x4xf32, #tpu.memory_space<vmem>>, vector<1x16x4xf32>
    tpu.vector_store %arg7[%c17, %c1_8, %c0_9], %5 {strides = array<i32>} : memref<18x18x4xf32, #tpu.memory_space<vmem>>, vector<1x16x4xf32>,
    %c0_10 = arith.constant 0 : index
    %c2 = arith.constant 2 : index
    %c0_11 = arith.constant 0 : index
    %7 = vector.load %arg7[%c0_10, %c2, %c0_11] : memref<18x18x4xf32, #tpu.memory_space<vmem>>, vector<18x1x4xf32>
    %c0_12 = arith.constant 0 : index
    %c0_13 = arith.constant 0 : index
    %c0_14 = arith.constant 0 : index
    %8 = vector.load %arg7[%c0_12, %c0_13, %c0_14] : memref<18x18x4xf32, #tpu.memory_space<vmem>>, vector<18x1x4xf32>
    tpu.vector_store %arg7[%c0_12, %c0_13, %c0_14], %7 {strides = array<i32>} : memref<18x18x4xf32, #tpu.memory_space<vmem>>, vector<18x1x4xf32>,
    %c0_15 = arith.constant 0 : index
    %c15 = arith.constant 15 : index
    %c0_16 = arith.constant 0 : index
    %9 = vector.load %arg7[%c0_15, %c15, %c0_16] : memref<18x18x4xf32, #tpu.memory_space<vmem>>, vector<18x1x4xf32>
    %c0_17 = arith.constant 0 : index
    %c17_18 = arith.constant 17 : index
    %c0_19 = arith.constant 0 : index
    %10 = vector.load %arg7[%c0_17, %c17_18, %c0_19] : memref<18x18x4xf32, #tpu.memory_space<vmem>>, vector<18x1x4xf32>
    tpu.vector_store %arg7[%c0_17, %c17_18, %c0_19], %9 {strides = array<i32>} : memref<18x18x4xf32, #tpu.memory_space<vmem>>, vector<18x1x4xf32>,
    %c0_20 = arith.constant 0 : index
    %c0_21 = arith.constant 0 : index
    %11 = vector.load %arg2[%c0_20, %c0_21] : memref<36x4xf32, #tpu.memory_space<vmem>>, vector<36x4xf32>
    %c0_22 = arith.constant 0 : index
    %c0_23 = arith.constant 0 : index
    %12 = vector.load %arg3[%c0_22, %c0_23] : memref<1x4xf32, #tpu.memory_space<vmem>>, vector<1x4xf32>
    %c0_24 = arith.constant 0 : index
    %c0_25 = arith.constant 0 : index
    %c0_26 = arith.constant 0 : index
    %13 = vector.load %arg7[%c0_24, %c0_25, %c0_26] : memref<18x18x4xf32, #tpu.memory_space<vmem>>, vector<16x16x4xf32>
    %14 = vector.shape_cast %13 : vector<16x16x4xf32> to vector<256x4xf32>
    %c0_27 = arith.constant 0 : index
    %c1_28 = arith.constant 1 : index
    %c0_29 = arith.constant 0 : index
    %15 = vector.load %arg7[%c0_27, %c1_28, %c0_29] : memref<18x18x4xf32, #tpu.memory_space<vmem>>, vector<16x16x4xf32>
    %16 = vector.shape_cast %15 : vector<16x16x4xf32> to vector<256x4xf32>
    %c0_30 = arith.constant 0 : index
    %c2_31 = arith.constant 2 : index
    %c0_32 = arith.constant 0 : index
    %17 = vector.load %arg7[%c0_30, %c2_31, %c0_32] : memref<18x18x4xf32, #tpu.memory_space<vmem>>, vector<16x16x4xf32>
    %18 = vector.shape_cast %17 : vector<16x16x4xf32> to vector<256x4xf32>
    %c1_33 = arith.constant 1 : index
    %c0_34 = arith.constant 0 : index
    %c0_35 = arith.constant 0 : index
    %19 = vector.load %arg7[%c1_33, %c0_34, %c0_35] : memref<18x18x4xf32, #tpu.memory_space<vmem>>, vector<16x16x4xf32>
    %20 = vector.shape_cast %19 : vector<16x16x4xf32> to vector<256x4xf32>
    %c1_36 = arith.constant 1 : index
    %c1_37 = arith.constant 1 : index
    %c0_38 = arith.constant 0 : index
    %21 = vector.load %arg7[%c1_36, %c1_37, %c0_38] : memref<18x18x4xf32, #tpu.memory_space<vmem>>, vector<16x16x4xf32>
    %22 = vector.shape_cast %21 : vector<16x16x4xf32> to vector<256x4xf32>
    %c1_39 = arith.constant 1 : index
    %c2_40 = arith.constant 2 : index
    %c0_41 = arith.constant 0 : index
    %23 = vector.load %arg7[%c1_39, %c2_40, %c0_41] : memref<18x18x4xf32, #tpu.memory_space<vmem>>, vector<16x16x4xf32>
    %24 = vector.shape_cast %23 : vector<16x16x4xf32> to vector<256x4xf32>
    %c2_42 = arith.constant 2 : index
    %c0_43 = arith.constant 0 : index
    %c0_44 = arith.constant 0 : index
    %25 = vector.load %arg7[%c2_42, %c0_43, %c0_44] : memref<18x18x4xf32, #tpu.memory_space<vmem>>, vector<16x16x4xf32>
    %26 = vector.shape_cast %25 : vector<16x16x4xf32> to vector<256x4xf32>
    %c2_45 = arith.constant 2 : index
    %c1_46 = arith.constant 1 : index
    %c0_47 = arith.constant 0 : index
    %27 = vector.load %arg7[%c2_45, %c1_46, %c0_47] : memref<18x18x4xf32, #tpu.memory_space<vmem>>, vector<16x16x4xf32>
    %28 = vector.shape_cast %27 : vector<16x16x4xf32> to vector<256x4xf32>
    %c2_48 = arith.constant 2 : index
    %c2_49 = arith.constant 2 : index
    %c0_50 = arith.constant 0 : index
    %29 = vector.load %arg7[%c2_48, %c2_49, %c0_50] : memref<18x18x4xf32, #tpu.memory_space<vmem>>, vector<16x16x4xf32>
    %30 = vector.shape_cast %29 : vector<16x16x4xf32> to vector<256x4xf32>
    %31 = tpu.concatenate %14, %16, %18, %20, %22, %24, %26, %28, %30 in 1 : vector<256x4xf32>, vector<256x4xf32>, vector<256x4xf32>, vector<256x4xf32>, vector<256x4xf32>, vector<256x4xf32>, vector<256x4xf32>, vector<256x4xf32>, vector<256x4xf32> -> vector<256x36xf32>
    %cst = arith.constant dense<0.000000e+00> : vector<256x4xf32>
    %32 = tpu.matmul %31, %11, %cst {dimension_numbers = #tpu.dot_dimension_numbers<[1], [0], [0], [1], [0, 0, 1, 1], [], []>} : vector<256x36xf32>, vector<36x4xf32>, vector<256x4xf32> -> vector<256x4xf32>
    %33 = vector.broadcast %12 : vector<1x4xf32> to vector<256x4xf32>
    %34 = arith.addf %32, %33 : vector<256x4xf32>
    %cst_51 = arith.constant dense<0.000000e+00> : vector<4xf32>
    %35 = vector.multi_reduction <add>, %34, %cst_51 [0] : vector<256x4xf32> to vector<4xf32>
    %36 = vector.shape_cast %35 : vector<4xf32> to vector<1x4xf32>
    %cst_52 = arith.constant 2.560000e+02 : f32
    %37 = vector.broadcast %cst_52 : f32 to vector<1x4xf32>
    %38 = arith.divf %36, %37 : vector<1x4xf32>
    %39 = vector.broadcast %38 : vector<1x4xf32> to vector<256x4xf32>
    %40 = arith.subf %34, %39 : vector<256x4xf32>
    %41 = arith.mulf %40, %40 : vector<256x4xf32>
    %cst_53 = arith.constant dense<0.000000e+00> : vector<4xf32>
    %42 = vector.multi_reduction <add>, %41, %cst_53 [0] : vector<256x4xf32> to vector<4xf32>
    %43 = vector.shape_cast %42 : vector<4xf32> to vector<1x4xf32>
    %cst_54 = arith.constant 2.560000e+02 : f32
    %44 = vector.broadcast %cst_54 : f32 to vector<1x4xf32>
    %45 = arith.divf %43, %44 : vector<1x4xf32>
    %46 = vector.broadcast %38 : vector<1x4xf32> to vector<256x4xf32>
    %47 = arith.subf %34, %46 : vector<256x4xf32>
    %cst_55 = arith.constant 9.99999974E-6 : f32
    %48 = vector.broadcast %cst_55 : f32 to vector<1x4xf32>
    %49 = arith.addf %45, %48 : vector<1x4xf32>
    %50 = math.rsqrt %49 : vector<1x4xf32>
    %51 = vector.broadcast %50 : vector<1x4xf32> to vector<256x4xf32>
    %52 = arith.mulf %47, %51 : vector<256x4xf32>
    %cst_56 = arith.constant 0.000000e+00 : f32
    %53 = vector.broadcast %cst_56 : f32 to vector<256x4xf32>
    %54 = arith.maximumf %52, %53 : vector<256x4xf32>
    %55 = vector.shape_cast %54 : vector<256x4xf32> to vector<16x16x4xf32>
    %c1_57 = arith.constant 1 : index
    %c1_58 = arith.constant 1 : index
    %c0_59 = arith.constant 0 : index
    %56 = vector.load %arg8[%c1_57, %c1_58, %c0_59] : memref<18x18x4xf32, #tpu.memory_space<vmem>>, vector<16x16x4xf32>
    tpu.vector_store %arg8[%c1_57, %c1_58, %c0_59], %55 {strides = array<i32>} : memref<18x18x4xf32, #tpu.memory_space<vmem>>, vector<16x16x4xf32>,
    %57 = vector.extract_strided_slice %55 {offsets = [1, 0, 0], sizes = [1, 16, 4], strides = [1, 1, 1]} : vector<16x16x4xf32> to vector<1x16x4xf32>
    %c0_60 = arith.constant 0 : index
    %c1_61 = arith.constant 1 : index
    %c0_62 = arith.constant 0 : index
    %58 = vector.load %arg8[%c0_60, %c1_61, %c0_62] : memref<18x18x4xf32, #tpu.memory_space<vmem>>, vector<1x16x4xf32>
    tpu.vector_store %arg8[%c0_60, %c1_61, %c0_62], %57 {strides = array<i32>} : memref<18x18x4xf32, #tpu.memory_space<vmem>>, vector<1x16x4xf32>,
    %59 = vector.extract_strided_slice %55 {offsets = [14, 0, 0], sizes = [1, 16, 4], strides = [1, 1, 1]} : vector<16x16x4xf32> to vector<1x16x4xf32>
    %c17_63 = arith.constant 17 : index
    %c1_64 = arith.constant 1 : index
    %c0_65 = arith.constant 0 : index
    %60 = vector.load %arg8[%c17_63, %c1_64, %c0_65] : memref<18x18x4xf32, #tpu.memory_space<vmem>>, vector<1x16x4xf32>
    tpu.vector_store %arg8[%c17_63, %c1_64, %c0_65], %59 {strides = array<i32>} : memref<18x18x4xf32, #tpu.memory_space<vmem>>, vector<1x16x4xf32>,
    %c0_66 = arith.constant 0 : index
    %c2_67 = arith.constant 2 : index
    %c0_68 = arith.constant 0 : index
    %61 = vector.load %arg8[%c0_66, %c2_67, %c0_68] : memref<18x18x4xf32, #tpu.memory_space<vmem>>, vector<18x1x4xf32>
    %c0_69 = arith.constant 0 : index
    %c0_70 = arith.constant 0 : index
    %c0_71 = arith.constant 0 : index
    %62 = vector.load %arg8[%c0_69, %c0_70, %c0_71] : memref<18x18x4xf32, #tpu.memory_space<vmem>>, vector<18x1x4xf32>
    tpu.vector_store %arg8[%c0_69, %c0_70, %c0_71], %61 {strides = array<i32>} : memref<18x18x4xf32, #tpu.memory_space<vmem>>, vector<18x1x4xf32>,
    %c0_72 = arith.constant 0 : index
    %c15_73 = arith.constant 15 : index
    %c0_74 = arith.constant 0 : index
    %63 = vector.load %arg8[%c0_72, %c15_73, %c0_74] : memref<18x18x4xf32, #tpu.memory_space<vmem>>, vector<18x1x4xf32>
    %c0_75 = arith.constant 0 : index
    %c17_76 = arith.constant 17 : index
    %c0_77 = arith.constant 0 : index
    %64 = vector.load %arg8[%c0_75, %c17_76, %c0_77] : memref<18x18x4xf32, #tpu.memory_space<vmem>>, vector<18x1x4xf32>
    tpu.vector_store %arg8[%c0_75, %c17_76, %c0_77], %63 {strides = array<i32>} : memref<18x18x4xf32, #tpu.memory_space<vmem>>, vector<18x1x4xf32>,
    %c0_78 = arith.constant 0 : index
    %c0_79 = arith.constant 0 : index
    %65 = vector.load %arg4[%c0_78, %c0_79] : memref<36x4xf32, #tpu.memory_space<vmem>>, vector<36x4xf32>
    %c0_80 = arith.constant 0 : index
    %c0_81 = arith.constant 0 : index
    %66 = vector.load %arg5[%c0_80, %c0_81] : memref<1x4xf32, #tpu.memory_space<vmem>>, vector<1x4xf32>
    %c0_82 = arith.constant 0 : index
    %c0_83 = arith.constant 0 : index
    %c0_84 = arith.constant 0 : index
    %67 = vector.load %arg8[%c0_82, %c0_83, %c0_84] : memref<18x18x4xf32, #tpu.memory_space<vmem>>, vector<16x16x4xf32>
    %68 = vector.shape_cast %67 : vector<16x16x4xf32> to vector<256x4xf32>
    %c0_85 = arith.constant 0 : index
    %c1_86 = arith.constant 1 : index
    %c0_87 = arith.constant 0 : index
    %69 = vector.load %arg8[%c0_85, %c1_86, %c0_87] : memref<18x18x4xf32, #tpu.memory_space<vmem>>, vector<16x16x4xf32>
    %70 = vector.shape_cast %69 : vector<16x16x4xf32> to vector<256x4xf32>
    %c0_88 = arith.constant 0 : index
    %c2_89 = arith.constant 2 : index
    %c0_90 = arith.constant 0 : index
    %71 = vector.load %arg8[%c0_88, %c2_89, %c0_90] : memref<18x18x4xf32, #tpu.memory_space<vmem>>, vector<16x16x4xf32>
    %72 = vector.shape_cast %71 : vector<16x16x4xf32> to vector<256x4xf32>
    %c1_91 = arith.constant 1 : index
    %c0_92 = arith.constant 0 : index
    %c0_93 = arith.constant 0 : index
    %73 = vector.load %arg8[%c1_91, %c0_92, %c0_93] : memref<18x18x4xf32, #tpu.memory_space<vmem>>, vector<16x16x4xf32>
    %74 = vector.shape_cast %73 : vector<16x16x4xf32> to vector<256x4xf32>
    %c1_94 = arith.constant 1 : index
    %c1_95 = arith.constant 1 : index
    %c0_96 = arith.constant 0 : index
    %75 = vector.load %arg8[%c1_94, %c1_95, %c0_96] : memref<18x18x4xf32, #tpu.memory_space<vmem>>, vector<16x16x4xf32>
    %76 = vector.shape_cast %75 : vector<16x16x4xf32> to vector<256x4xf32>
    %c1_97 = arith.constant 1 : index
    %c2_98 = arith.constant 2 : index
    %c0_99 = arith.constant 0 : index
    %77 = vector.load %arg8[%c1_97, %c2_98, %c0_99] : memref<18x18x4xf32, #tpu.memory_space<vmem>>, vector<16x16x4xf32>
    %78 = vector.shape_cast %77 : vector<16x16x4xf32> to vector<256x4xf32>
    %c2_100 = arith.constant 2 : index
    %c0_101 = arith.constant 0 : index
    %c0_102 = arith.constant 0 : index
    %79 = vector.load %arg8[%c2_100, %c0_101, %c0_102] : memref<18x18x4xf32, #tpu.memory_space<vmem>>, vector<16x16x4xf32>
    %80 = vector.shape_cast %79 : vector<16x16x4xf32> to vector<256x4xf32>
    %c2_103 = arith.constant 2 : index
    %c1_104 = arith.constant 1 : index
    %c0_105 = arith.constant 0 : index
    %81 = vector.load %arg8[%c2_103, %c1_104, %c0_105] : memref<18x18x4xf32, #tpu.memory_space<vmem>>, vector<16x16x4xf32>
    %82 = vector.shape_cast %81 : vector<16x16x4xf32> to vector<256x4xf32>
    %c2_106 = arith.constant 2 : index
    %c2_107 = arith.constant 2 : index
    %c0_108 = arith.constant 0 : index
    %83 = vector.load %arg8[%c2_106, %c2_107, %c0_108] : memref<18x18x4xf32, #tpu.memory_space<vmem>>, vector<16x16x4xf32>
    %84 = vector.shape_cast %83 : vector<16x16x4xf32> to vector<256x4xf32>
    %85 = tpu.concatenate %68, %70, %72, %74, %76, %78, %80, %82, %84 in 1 : vector<256x4xf32>, vector<256x4xf32>, vector<256x4xf32>, vector<256x4xf32>, vector<256x4xf32>, vector<256x4xf32>, vector<256x4xf32>, vector<256x4xf32>, vector<256x4xf32> -> vector<256x36xf32>
    %cst_109 = arith.constant dense<0.000000e+00> : vector<256x4xf32>
    %86 = tpu.matmul %85, %65, %cst_109 {dimension_numbers = #tpu.dot_dimension_numbers<[1], [0], [0], [1], [0, 0, 1, 1], [], []>} : vector<256x36xf32>, vector<36x4xf32>, vector<256x4xf32> -> vector<256x4xf32>
    %87 = vector.broadcast %66 : vector<1x4xf32> to vector<256x4xf32>
    %88 = arith.addf %86, %87 : vector<256x4xf32>
    %cst_110 = arith.constant dense<0.000000e+00> : vector<4xf32>
    %89 = vector.multi_reduction <add>, %88, %cst_110 [0] : vector<256x4xf32> to vector<4xf32>
    %90 = vector.shape_cast %89 : vector<4xf32> to vector<1x4xf32>
    %cst_111 = arith.constant 2.560000e+02 : f32
    %91 = vector.broadcast %cst_111 : f32 to vector<1x4xf32>
    %92 = arith.divf %90, %91 : vector<1x4xf32>
    %93 = vector.broadcast %92 : vector<1x4xf32> to vector<256x4xf32>
    %94 = arith.subf %88, %93 : vector<256x4xf32>
    %95 = arith.mulf %94, %94 : vector<256x4xf32>
    %cst_112 = arith.constant dense<0.000000e+00> : vector<4xf32>
    %96 = vector.multi_reduction <add>, %95, %cst_112 [0] : vector<256x4xf32> to vector<4xf32>
    %97 = vector.shape_cast %96 : vector<4xf32> to vector<1x4xf32>
    %cst_113 = arith.constant 2.560000e+02 : f32
    %98 = vector.broadcast %cst_113 : f32 to vector<1x4xf32>
    %99 = arith.divf %97, %98 : vector<1x4xf32>
    %100 = vector.broadcast %92 : vector<1x4xf32> to vector<256x4xf32>
    %101 = arith.subf %88, %100 : vector<256x4xf32>
    %cst_114 = arith.constant 9.99999974E-6 : f32
    %102 = vector.broadcast %cst_114 : f32 to vector<1x4xf32>
    %103 = arith.addf %99, %102 : vector<1x4xf32>
    %104 = math.rsqrt %103 : vector<1x4xf32>
    %105 = vector.broadcast %104 : vector<1x4xf32> to vector<256x4xf32>
    %106 = arith.mulf %101, %105 : vector<256x4xf32>
    %107 = vector.shape_cast %106 : vector<256x4xf32> to vector<16x16x4xf32>
    %108 = arith.addf %1, %107 : vector<16x16x4xf32>
    %c0_115 = arith.constant 0 : index
    %c0_116 = arith.constant 0 : index
    %c0_117 = arith.constant 0 : index
    %c0_118 = arith.constant 0 : index
    %109 = vector.load %arg6[%c0_115, %c0_116, %c0_117, %c0_118] : memref<1x16x16x4xf32, #tpu.memory_space<vmem>>, vector<1x16x16x4xf32>
    %110 = vector.shape_cast %109 : vector<1x16x16x4xf32> to vector<16x16x4xf32>
    %111 = vector.shape_cast %108 : vector<16x16x4xf32> to vector<1x16x16x4xf32>
    tpu.vector_store %arg6[%c0_115, %c0_116, %c0_117, %c0_118], %111 {strides = array<i32>} : memref<1x16x16x4xf32, #tpu.memory_space<vmem>>, vector<1x16x16x4xf32>,
    return
  }
  func.func @transform_0(%arg0: i32) -> (i32, i32, i32, i32) {
    %c0_i32 = arith.constant 0 : i32
    %c0_i32_0 = arith.constant 0 : i32
    %c0_i32_1 = arith.constant 0 : i32
    %c0_i32_2 = arith.constant 0 : i32
    return %arg0, %c0_i32, %c0_i32_0, %c0_i32_1 : i32, i32, i32, i32
  }
  func.func @transform_1(%arg0: i32) -> (i32, i32) {
    %c0_i32 = arith.constant 0 : i32
    %c0_i32_0 = arith.constant 0 : i32
    %c0_i32_1 = arith.constant 0 : i32
    return %c0_i32, %c0_i32_0 : i32, i32
  }
  func.func @transform_2(%arg0: i32) -> (i32, i32) {
    %c0_i32 = arith.constant 0 : i32
    %c0_i32_0 = arith.constant 0 : i32
    %c0_i32_1 = arith.constant 0 : i32
    return %c0_i32, %c0_i32_0 : i32, i32
  }
  func.func @transform_3(%arg0: i32) -> (i32, i32) {
    %c0_i32 = arith.constant 0 : i32
    %c0_i32_0 = arith.constant 0 : i32
    %c0_i32_1 = arith.constant 0 : i32
    return %c0_i32, %c0_i32_0 : i32, i32
  }
  func.func @transform_4(%arg0: i32) -> (i32, i32) {
    %c0_i32 = arith.constant 0 : i32
    %c0_i32_0 = arith.constant 0 : i32
    %c0_i32_1 = arith.constant 0 : i32
    return %c0_i32, %c0_i32_0 : i32, i32
  }
  func.func @transform_5(%arg0: i32) -> (i32, i32, i32, i32) {
    %c0_i32 = arith.constant 0 : i32
    %c0_i32_0 = arith.constant 0 : i32
    %c0_i32_1 = arith.constant 0 : i32
    %c0_i32_2 = arith.constant 0 : i32
    return %arg0, %c0_i32, %c0_i32_0, %c0_i32_1 : i32, i32, i32, i32
  }
}

</mosaic_0001>

<bundles_post_ra>
// kernel: residual_block.1
= control target key start
LH: loop header
LB: loop body
LE: loop exit
PB: predicated region body
PF: predicated region fallthrough
CT: control target
= control target key end

     0   :  { %s5279_s18 = smov 0   ;;  %s8702_s0 = inlined_call_operand.vmem [shape: f32[2,16,16,4], index: 0, kind: input, shape index: {}]   ;;  %s8703_s1 = inlined_call_operand.vmem [shape: f32[36,4], index: 1, kind: input, shape index: {}]   ;;  %s8704_s2 = inlined_call_operand.vmem [shape: f32[1,4], index: 2, kind: input, shape index: {}]   ;;  %s8705_s3 = inlined_call_operand.vmem [shape: f32[36,4], index: 3, kind: input, shape index: {}]   ;;  %s8706_s4 = inlined_call_operand.vmem [shape: f32[1,4], index: 4, kind: input, shape index: {}]   ;;  %s8707_s5 = inlined_call_operand.vmem [shape: f32[2,16,16,4], index: 5, kind: output, shape index: {}]  }
   0x1 LB: > { %s4926_s19 = sadd.s32 4294967295, %s5239_s18   ;;  %p4930_p0 = scmp.ge.s32.totalorder %s5239_s18, 1  ;;  %s5239_s18 = sphi %s5279_s18, %s15_s18  }
   0x2   : > { %p187_p1 = scmp.lt.s32.totalorder %s5239_s18, 3 }
   0x4   : > { %p188_p2 = pnand %p4930_p0, %p187_p1 }
   0x6   : > { %191 = sbr.rel (%p188_p2) target bundleno = 1985 (0x7c1), region = 40 }
   0xd   : > { %p215_p3 = scmp.lt.s32.totalorder %s4926_s19, 1  ;;  %vm258_vm0 = vcmask 31744   ;;  %s5241_s24 = smov 4   ;;  %vm314_vm1 = vcmask 24576   ;;  %vm2054_vm2 = vcmask 1043456   ;;  %vm1720_vm3 = vcmask 64512  }
   0xe   : > { %s5242_s25 = smov 8   ;;  %s5243_s26 = smov 12   ;;  %vm1753_vm4 = vcmask 97280   ;;  %vm1786_vm5 = vcmask 130048   ;;  %vm1819_vm6 = vcmask 162816   ;;  %vm1852_vm7 = vcmask 195584  }
   0xf   : > { %s8859_s19 = smov (!%p215_p3, %s4926_s19), 1  ;;  %s5244_s27 = smov 16   ;;  %vm1885_vm8 = vcmask 228352   ;;  %vm1918_vm9 = vcmask 261120   ;;  %vm1957_vm10 = vcmask 293888  }
  0x10   : > { %s5005_s20 = sshll.u32 %s8859_s19, 8  ;;  %s5245_s7 = smov 20  }
  0x11   : > { %s5295_s23 = scalar_lea.vmem %s8702_s0, %s5005_s20  ;;  %s5246_s12 = smov 24  }
  0x12   : > { %v5298_v0 = vld [vmem:[%s5295_s23 + $0x10] sm:$0xff]  ;;  %v5301_v1 = vld [vmem:[%s5295_s23] sm:$0xff]  ;;  %v5304_v2 = vld [vmem:[%s5295_s23 + $0x18] sm:$0xff]  ;;  %s5247_s15 = smov 28   ;;  %s5248_s16 = smov 32  }
  0x13   : > { %8740 = vst [vmem:[#allocation4_spill] sm:$0xff] %v5298_v0  ;;  %8741 = vst [vmem:[#allocation5_spill] sm:$0xff] %v5301_v1  ;;  %v5317_v3 = vld [vmem:[%s5295_s23 + $0x8] sm:$0xff]  ;;  %v5320_v4 = vld [vmem:[%s5295_s23 + $0x20] sm:$0xff] }
  0x14   : > { %8742 = vst [vmem:[#allocation6_spill] sm:$0xff] %v5304_v2  ;;  %291 = vst.msk [vmem:[#allocation2 + $0x1] sm:$0xff] %vm258_vm0, %v5298_v0  ;;  %v5323_v5 = vld [vmem:[%s5295_s23 + $0x28] sm:$0xff]  ;;  %v5332_v6 = vld [vmem:[%s5295_s23 + $0x30] sm:$0xff] }
  0x15   : > { %261 = vst.msk [vmem:[#allocation2 + $0x31] sm:$0xff] %vm258_vm0, %v5298_v0  ;;  %259 = vst.msk [vmem:[#allocation2 + $0x19] sm:$0xff] %vm258_vm0, %v5301_v1  ;;  %v5335_v7 = vld [vmem:[%s5295_s23 + $0x38] sm:$0xff]  ;;  %v5338_v8 = vld [vmem:[%s5295_s23 + $0x40] sm:$0xff] }
  0x16   : > { %292 = vst.msk [vmem:[#allocation2 + $0x9] sm:$0xff] %vm258_vm0, %v5304_v2  ;;  %262 = vst.msk [vmem:[#allocation2 + $0x39] sm:$0xff] %vm258_vm0, %v5304_v2  ;;  %v5347_v9 = vld [vmem:[%s5295_s23 + $0x48] sm:$0xff]  ;;  %v5350_v10 = vld [vmem:[%s5295_s23 + $0x50] sm:$0xff] }
  0x17   : > { %8743 = vst [vmem:[#allocation7_spill] sm:$0xff] %v5317_v3  ;;  %8744 = vst [vmem:[#allocation8_spill] sm:$0xff] %v5320_v4  ;;  %v5353_v11 = vld [vmem:[%s5295_s23 + $0x58] sm:$0xff]  ;;  %v5362_v12 = vld [vmem:[%s5295_s23 + $0x60] sm:$0xff] }
  0x18   : > { %8745 = vst [vmem:[#allocation9_spill] sm:$0xff] %v5323_v5  ;;  %260 = vst.msk [vmem:[#allocation2 + $0x21] sm:$0xff] %vm258_vm0, %v5317_v3  ;;  %v5365_v13 = vld [vmem:[%s5295_s23 + $0x68] sm:$0xff]  ;;  %v5368_v14 = vld [vmem:[%s5295_s23 + $0x70] sm:$0xff] }
  0x19   : > { %263 = vst.msk [vmem:[#allocation2 + $0x49] sm:$0xff] %vm258_vm0, %v5320_v4  ;;  %264 = vst.msk [vmem:[#allocation2 + $0x51] sm:$0xff] %vm258_vm0, %v5323_v5  ;;  %v5377_v15 = vld [vmem:[%s5295_s23 + $0x78] sm:$0xff]  ;;  %v5380_v16 = vld [vmem:[%s5295_s23 + $0x80] sm:$0xff] }
  0x1a   : > { %8746 = vst [vmem:[#allocation10_spill] sm:$0xff] %v5332_v6  ;;  %8747 = vst [vmem:[#allocation11_spill] sm:$0xff] %v5335_v7  ;;  %v5383_v17 = vld [vmem:[%s5295_s23 + $0x88] sm:$0xff]  ;;  %v5392_v18 = vld [vmem:[%s5295_s23 + $0x90] sm:$0xff] }
  0x1b   : > { %8748 = vst [vmem:[#allocation12_spill] sm:$0xff] %v5338_v8  ;;  %265 = vst.msk [vmem:[#allocation2 + $0x61] sm:$0xff] %vm258_vm0, %v5332_v6  ;;  %v5395_v19 = vld [vmem:[%s5295_s23 + $0x98] sm:$0xff]  ;;  %v5398_v20 = vld [vmem:[%s5295_s23 + $0xa0] sm:$0xff] }
  0x1c   : > { %266 = vst.msk [vmem:[#allocation2 + $0x69] sm:$0xff] %vm258_vm0, %v5335_v7  ;;  %267 = vst.msk [vmem:[#allocation2 + $0x79] sm:$0xff] %vm258_vm0, %v5338_v8  ;;  %v5407_v21 = vld [vmem:[%s5295_s23 + $0xa8] sm:$0xff]  ;;  %v5410_v22 = vld [vmem:[%s5295_s23 + $0xb0] sm:$0xff] }
  0x1d   : > { %8749 = vst [vmem:[#allocation13_spill] sm:$0xff] %v5347_v9  ;;  %8750 = vst [vmem:[#allocation14_spill] sm:$0xff] %v5350_v10  ;;  %v5413_v23 = vld [vmem:[%s5295_s23 + $0xb8] sm:$0xff]  ;;  %v407_v24 = vld [vmem:[#allocation2 + $0x1] sm:$0xff] }
  0x1e   : > { %8751 = vst [vmem:[#allocation15_spill] sm:$0xff] %v5353_v11  ;;  %268 = vst.msk [vmem:[#allocation2 + $0x81] sm:$0xff] %vm258_vm0, %v5347_v9  ;;  %v5415_v25 = vld [vmem:[#allocation2 + $0x19] sm:$0xff]  ;;  %696 = vrot.lane.b32.xlu0 %v407_v24, %s5241_s24  ;;  %v408_v26 = vld [vmem:[#allocation2 + $0x9] sm:$0xff] }
  0x1f   : > { %269 = vst.msk [vmem:[#allocation2 + $0x91] sm:$0xff] %vm258_vm0, %v5350_v10  ;;  %270 = vst.msk [vmem:[#allocation2 + $0x99] sm:$0xff] %vm258_vm0, %v5353_v11  ;;  %700 = vrot.lane.b32.xlu1 %v5415_v25, %s5241_s24  ;;  %v5426_v27 = vld [vmem:[#allocation2 + $0x21] sm:$0xff]  ;;  %v5431_v28 = vld [vmem:[#allocation2 + $0x31] sm:$0xff] }
  0x20   : > { %8752 = vst [vmem:[#allocation16_spill] sm:$0xff] %v5362_v12  ;;  %8753 = vst [vmem:[#allocation17_spill] sm:$0xff] %v5365_v13  ;;  %v5433_v29 = vld [vmem:[#allocation2 + $0x39] sm:$0xff]  ;;  %v5435_v30 = vld [vmem:[#allocation2 + $0x49] sm:$0xff] }
  0x21   : > { %8754 = vst [vmem:[#allocation18_spill] sm:$0xff] %v5368_v14  ;;  %271 = vst.msk [vmem:[#allocation2 + $0xa9] sm:$0xff] %vm258_vm0, %v5362_v12  ;;  %v5438_v31 = vld [vmem:[%s5295_s23 + $0xc0] sm:$0xff]  ;;  %v5444_v32 = vld [vmem:[#allocation2 + $0x51] sm:$0xff] }
  0x22   : > { %272 = vst.msk [vmem:[#allocation2 + $0xb1] sm:$0xff] %vm258_vm0, %v5365_v13  ;;  %273 = vst.msk [vmem:[#allocation2 + $0xc1] sm:$0xff] %vm258_vm0, %v5368_v14  ;;  %698 = vrot.lane.b32.xlu0 %v408_v26, %s5241_s24  ;;  %v5449_v33 = vld [vmem:[%s5295_s23 + $0xc8] sm:$0xff]  ;;  %v5452_v34 = vld [vmem:[%s5295_s23 + $0xd0] sm:$0xff] }
  0x23   : > { %8755 = vst [vmem:[#allocation19_spill] sm:$0xff] %v5377_v15  ;;  %8756 = vst [vmem:[#allocation20_spill] sm:$0xff] %v5380_v16  ;;  %702 = vrot.lane.b32.xlu1 %v5426_v27, %s5241_s24  ;;  %v5459_v35 = vld [vmem:[%s5295_s23 + $0xd8] sm:$0xff]  ;;  %v5462_v36 = vld [vmem:[%s5295_s23 + $0xe0] sm:$0xff] }
  0x24   : > { %8757 = vst [vmem:[#allocation21_spill] sm:$0xff] %v5383_v17  ;;  %274 = vst.msk [vmem:[#allocation2 + $0xc9] sm:$0xff] %vm258_vm0, %v5377_v15  ;;  %v5465_v37 = vld [vmem:[%s5295_s23 + $0xe8] sm:$0xff]  ;;  %v334_v39 = vld [vmem:[#allocation2 + $0x27] sm:$0x1] }
  0x25   : > { %275 = vst.msk [vmem:[#allocation2 + $0xd9] sm:$0xff] %vm258_vm0, %v5380_v16  ;;  %276 = vst.msk [vmem:[#allocation2 + $0xe1] sm:$0xff] %vm258_vm0, %v5383_v17  ;;  %v333_v38 = vld [vmem:[#allocation2 + $0xf] sm:$0x1]  ;;  %v335_v40 = vld [vmem:[#allocation2 + $0x3f] sm:$0x1] }
  0x26   : > { %8758 = vst [vmem:[#allocation22_spill] sm:$0xff] %v5392_v18  ;;  %8759 = vst [vmem:[#allocation23_spill] sm:$0xff] %v5395_v19  ;;  %704 = vrot.lane.b32.xlu0 %v5431_v28, %s5241_s24  ;;  %v336_v41 = vld [vmem:[#allocation2 + $0x57] sm:$0x1]  ;;  %v337_v42 = vld [vmem:[#allocation2 + $0x6f] sm:$0x1] }
  0x27   : > { %8760 = vst [vmem:[#allocation24_spill] sm:$0xff] %v5398_v20  ;;  %277 = vst.msk [vmem:[#allocation2 + $0xf1] sm:$0xff] %vm258_vm0, %v5392_v18  ;;  %706 = vrot.lane.b32.xlu1 %v5433_v29, %s5241_s24  ;;  %v5484_v43 = vld [vmem:[#allocation2 + $0x61] sm:$0xff]  ;;  %v5486_v44 = vld [vmem:[#allocation2 + $0x69] sm:$0xff] }
  0x28   : > { %278 = vst.msk [vmem:[#allocation2 + $0xf9] sm:$0xff] %vm258_vm0, %v5395_v19  ;;  %279 = vst.msk [vmem:[#allocation2 + $0x109] sm:$0xff] %vm258_vm0, %v5398_v20  ;;  %v338_v45 = vld [vmem:[#allocation2 + $0x87] sm:$0x1]  ;;  %v339_v46 = vld [vmem:[#allocation2 + $0x9f] sm:$0x1] }
  0x29   : > { %8761 = vst [vmem:[#allocation25_spill] sm:$0xff] %v5407_v21  ;;  %8762 = vst [vmem:[#allocation26_spill] sm:$0xff] %v5410_v22  ;;  %v297_v47 = vld [vmem:[#allocation2 + $0x1a] sm:$0x1]  ;;  %v298_v48 = vld [vmem:[#allocation2 + $0x32] sm:$0x1] }
  0x2a   : > { %8763 = vst [vmem:[#allocation27_spill] sm:$0xff] %v5413_v23  ;;  %280 = vst.msk [vmem:[#allocation2 + $0x111] sm:$0xff] %vm258_vm0, %v5407_v21  ;;  %708 = vrot.lane.b32.xlu0 %v5435_v30, %s5241_s24  ;;  %v5498_v49 = vld [vmem:[#allocation2 + $0x79] sm:$0xff]  ;;  %v5500_v50 = vld [vmem:[#allocation2 + $0x81] sm:$0xff] }
  0x2b   : > { %281 = vst.msk [vmem:[#allocation2 + $0x121] sm:$0xff] %vm258_vm0, %v5410_v22  ;;  %282 = vst.msk [vmem:[#allocation2 + $0x129] sm:$0xff] %vm258_vm0, %v5413_v23  ;;  %710 = vrot.lane.b32.xlu1 %v5444_v32, %s5241_s24  ;;  %v296_v51 = vld [vmem:[#allocation2 + $0x2] sm:$0x1]  ;;  %v299_v52 = vld [vmem:[#allocation2 + $0x4a] sm:$0x1] }
  0x2c   : > { %8764 = vst [vmem:[#allocation28_spill] sm:$0xff] %v5438_v31  ;;  %283 = vst.msk [vmem:[#allocation2 + $0x139] sm:$0xff] %vm258_vm0, %v5438_v31  ;;  %v5508_v53 = vld [vmem:[#allocation2 + $0x91] sm:$0xff]  ;;  %v5510_v54 = vld [vmem:[#allocation2 + $0x99] sm:$0xff] }
  0x2d   : > { %8765 = vst [vmem:[#allocation29_spill] sm:$0xff] %v5449_v33  ;;  %8766 = vst [vmem:[#allocation30_spill] sm:$0xff] %v5452_v34  ;;  %v300_v55 = vld [vmem:[#allocation2 + $0x62] sm:$0x1]  ;;  %v301_v56 = vld [vmem:[#allocation2 + $0x7a] sm:$0x1] }
  0x2e   : > { %284 = vst.msk [vmem:[#allocation2 + $0x141] sm:$0xff] %vm258_vm0, %v5449_v33  ;;  %285 = vst.msk [vmem:[#allocation2 + $0x151] sm:$0xff] %vm258_vm0, %v5452_v34  ;;  %712 = vrot.lane.b32.xlu0 %v5484_v43, %s5241_s24  ;;  %v302_v57 = vld [vmem:[#allocation2 + $0x92] sm:$0x1]  ;;  %v5518_v58 = vld [vmem:[#allocation2 + $0xa9] sm:$0xff] }
  0x2f   : > { %8767 = vst [vmem:[#allocation31_spill] sm:$0xff] %v5459_v35  ;;  %8768 = vst [vmem:[#allocation32_spill] sm:$0xff] %v5462_v36  ;;  %714 = vrot.lane.b32.xlu1 %v5486_v44, %s5241_s24  ;;  %v303_v59 = vld [vmem:[#allocation2 + $0xaa] sm:$0x1]  ;;  %v5521_v60 = vld [vmem:[#allocation2 + $0xb1] sm:$0xff] }
  0x30   : > { %8769 = vst [vmem:[#allocation33_spill] sm:$0xff] %v5465_v37  ;;  %286 = vst.msk [vmem:[#allocation2 + $0x159] sm:$0xff] %vm258_vm0, %v5459_v35  ;;  %v304_v61 = vld [vmem:[#allocation2 + $0xc2] sm:$0x1]  ;;  %v305_v62 = vld [vmem:[#allocation2 + $0xda] sm:$0x1] }
  0x31   : > { %287 = vst.msk [vmem:[#allocation2 + $0x169] sm:$0xff] %vm258_vm0, %v5462_v36  ;;  %294 = vst.msk [vmem:[#allocation2 + $0x199] sm:$0xff] %vm258_vm0, %v5462_v36  ;;  %v306_v63 = vld [vmem:[#allocation2 + $0xf2] sm:$0x1]  ;;  %v307_v24 = vld [vmem:[#allocation2 + $0x10a] sm:$0x1] }
  0x32   : > { %288 = vst.msk [vmem:[#allocation2 + $0x171] sm:$0xff] %vm258_vm0, %v5465_v37  ;;  %295 = vst.msk [vmem:[#allocation2 + $0x1a1] sm:$0xff] %vm258_vm0, %v5465_v37  ;;  %716 = vrot.lane.b32.xlu0 %v5498_v49, %s5241_s24  ;;  %v308_v26 = vld [vmem:[#allocation2 + $0x122] sm:$0x1]  ;;  %v342_v14 = vld [vmem:[#allocation2 + $0xe7] sm:$0x1] }
  0x33   : > { %351 = vst.msk [vmem:[#allocation2 + $0x11] sm:$0x1] %vm314_vm1, %v333_v38  ;;  %352 = vst.msk [vmem:[#allocation2 + $0x29] sm:$0x1] %vm314_vm1, %v334_v39  ;;  %718 = vrot.lane.b32.xlu1 %v5500_v50, %s5241_s24  ;;  %v423_v38 = vld [vmem:[#allocation2 + $0xc1] sm:$0xff]  ;;  %v424_v39 = vld [vmem:[#allocation2 + $0xc9] sm:$0xff] }
  0x34   : > { %353 = vst.msk [vmem:[#allocation2 + $0x41] sm:$0x1] %vm314_vm1, %v335_v40  ;;  %354 = vst.msk [vmem:[#allocation2 + $0x59] sm:$0x1] %vm314_vm1, %v336_v41  ;;  %v309_v40 = vld [vmem:[#allocation2 + $0x13a] sm:$0x1] }
  0x35   : > { %355 = vst.msk [vmem:[#allocation2 + $0x71] sm:$0x1] %vm314_vm1, %v337_v42  ;;  %356 = vst.msk [vmem:[#allocation2 + $0x89] sm:$0x1] %vm314_vm1, %v338_v45  ;;  %v425_v41 = vld [vmem:[#allocation2 + $0xd9] sm:$0xff]  ;;  %v426_v42 = vld [vmem:[#allocation2 + $0xe1] sm:$0xff] }
  0x36   : > { %357 = vst.msk [vmem:[#allocation2 + $0xa1] sm:$0x1] %vm314_vm1, %v339_v46  ;;  %316 = vst.msk [vmem:[#allocation2 + $0x18] sm:$0x1] %vm314_vm1, %v297_v47  ;;  %720 = vrot.lane.b32.xlu0 %v5508_v53, %s5241_s24  ;;  %v310_v45 = vld [vmem:[#allocation2 + $0x152] sm:$0x1] }
  0x37   : > { %317 = vst.msk [vmem:[#allocation2 + $0x30] sm:$0x1] %vm314_vm1, %v298_v48  ;;  %315 = vst.msk [vmem:[#allocation2] sm:$0x1] %vm314_vm1, %v296_v51  ;;  %722 = vrot.lane.b32.xlu1 %v5510_v54, %s5241_s24  ;;  %v427_v46 = vld [vmem:[#allocation2 + $0xf1] sm:$0xff]  ;;  %v428_v47 = vld [vmem:[#allocation2 + $0xf9] sm:$0xff] }
  0x38   : > { %318 = vst.msk [vmem:[#allocation2 + $0x48] sm:$0x1] %vm314_vm1, %v299_v52  ;;  %319 = vst.msk [vmem:[#allocation2 + $0x60] sm:$0x1] %vm314_vm1, %v300_v55  ;;  %v311_v48 = vld [vmem:[#allocation2 + $0x16a] sm:$0x1] }
  0x39   : > { %320 = vst.msk [vmem:[#allocation2 + $0x78] sm:$0x1] %vm314_vm1, %v301_v56  ;;  %321 = vst.msk [vmem:[#allocation2 + $0x90] sm:$0x1] %vm314_vm1, %v302_v57  ;;  %v429_v51 = vld [vmem:[#allocation2 + $0x109] sm:$0xff]  ;;  %v430_v52 = vld [vmem:[#allocation2 + $0x111] sm:$0xff] }
  0x3a   : > { %322 = vst.msk [vmem:[#allocation2 + $0xa8] sm:$0x1] %vm314_vm1, %v303_v59  ;;  %323 = vst.msk [vmem:[#allocation2 + $0xc0] sm:$0x1] %vm314_vm1, %v304_v61  ;;  %724 = vrot.lane.b32.xlu0 %v5518_v58, %s5241_s24  ;;  %v431_v55 = vld [vmem:[#allocation2 + $0x121] sm:$0xff]  ;;  %v432_v56 = vld [vmem:[#allocation2 + $0x129] sm:$0xff] }
  0x3b   : > { %324 = vst.msk [vmem:[#allocation2 + $0xd8] sm:$0x1] %vm314_vm1, %v305_v62  ;;  %325 = vst.msk [vmem:[#allocation2 + $0xf0] sm:$0x1] %vm314_vm1, %v306_v63  ;;  %726 = vrot.lane.b32.xlu1 %v5521_v60, %s5241_s24  ;;  %v433_v57 = vld [vmem:[#allocation2 + $0x139] sm:$0xff]  ;;  %v434_v59 = vld [vmem:[#allocation2 + $0x141] sm:$0xff] }
  0x3c   : > { %326 = vst.msk [vmem:[#allocation2 + $0x108] sm:$0x1] %vm314_vm1, %v307_v24  ;;  %327 = vst.msk [vmem:[#allocation2 + $0x120] sm:$0x1] %vm314_vm1, %v308_v26  ;;  %v435_v61 = vld [vmem:[#allocation2 + $0x151] sm:$0xff]  ;;  %v436_v62 = vld [vmem:[#allocation2 + $0x159] sm:$0xff] }
  0x3d   : > { %328 = vst.msk [vmem:[#allocation2 + $0x138] sm:$0x1] %vm314_vm1, %v309_v40  ;;  %329 = vst.msk [vmem:[#allocation2 + $0x150] sm:$0x1] %vm314_vm1, %v310_v45  ;;  %v437_v63 = vld [vmem:[#allocation2 + $0x169] sm:$0xff]  ;;  %v438_v24 = vld [vmem:[#allocation2 + $0x171] sm:$0xff] }
  0x3e   : > { %728 = vrot.lane.b32.xlu0 %v423_v38, %s5241_s24  ;;  %330 = vst.msk [vmem:[#allocation2 + $0x168] sm:$0x1] %vm314_vm1, %v311_v48  ;;  %v439_v26 = vld [vmem:[#allocation2 + $0x2] sm:$0xff]  ;;  %v440_v38 = vld [vmem:[#allocation2 + $0xa] sm:$0xff]  ;;  %360 = vst.msk [vmem:[#allocation2 + $0xe9] sm:$0x1] %vm314_vm1, %v342_v14 }
  0x3f   : > { %730 = vrot.lane.b32.xlu1 %v424_v39, %s5241_s24  ;;  %v441_v39 = vld [vmem:[#allocation2 + $0x1a] sm:$0xff]  ;;  %v442_v40 = vld [vmem:[#allocation2 + $0x22] sm:$0xff]  ;;  %v5564_v45 = vld [vmem:[#allocation2 + $0x4a] sm:$0xff] }
  0x40   : > { %v5574_v48 = vld [vmem:[#allocation2 + $0x6a] sm:$0xff]  ;;  %v5727_v19 = vld [vmem:[#allocation2 + $0x60] sm:$0xff]  ;;  %v5780_v9 = vld [vmem:[#allocation2 + $0x78] sm:$0xff] }
  0x41   : > { %v343_v0 = vld [vmem:[#allocation2 + $0xff] sm:$0x1] }
  0x42   : > { %732 = vrot.lane.b32.xlu0 %v425_v41, %s5241_s24  ;;  %v5556_v41 = vld [vmem:[#allocation2 + $0x32] sm:$0xff]  ;;  %361 = vst.msk [vmem:[#allocation2 + $0x101] sm:$0x1] %vm314_vm1, %v343_v0 }
  0x43   : > { %734 = vrot.lane.b32.xlu1 %v426_v42, %s5241_s24  ;;  %v5558_v42 = vld [vmem:[#allocation2 + $0x3a] sm:$0xff] }
  0x46   : > { %736 = vrot.lane.b32.xlu0 %v427_v46, %s5241_s24  ;;  %v5566_v46 = vld [vmem:[#allocation2 + $0x52] sm:$0xff] }
  0x47   : > { %738 = vrot.lane.b32.xlu1 %v428_v47, %s5241_s24  ;;  %v5572_v47 = vld [vmem:[#allocation2 + $0x62] sm:$0xff] }
  0x4a   : > { %740 = vrot.lane.b32.xlu0 %v429_v51, %s5241_s24  ;;  %v5580_v51 = vld [vmem:[#allocation2 + $0x7a] sm:$0xff] }
  0x4b   : > { %742 = vrot.lane.b32.xlu1 %v430_v52, %s5241_s24  ;;  %v5582_v52 = vld [vmem:[#allocation2 + $0x82] sm:$0xff] }
  0x4e   : > { %744 = vrot.lane.b32.xlu0 %v431_v55, %s5241_s24  ;;  %v5588_v55 = vld [vmem:[#allocation2 + $0x92] sm:$0xff] }
  0x4f   : > { %746 = vrot.lane.b32.xlu1 %v432_v56, %s5241_s24  ;;  %v5590_v56 = vld [vmem:[#allocation2 + $0x9a] sm:$0xff] }
  0x52   : > { %748 = vrot.lane.b32.xlu0 %v433_v57, %s5241_s24  ;;  %v5596_v57 = vld [vmem:[#allocation2 + $0xaa] sm:$0xff] }
  0x53   : > { %750 = vrot.lane.b32.xlu1 %v434_v59, %s5241_s24  ;;  %v5598_v59 = vld [vmem:[#allocation2 + $0x18] sm:$0xff] }
  0x56   : > { %752 = vrot.lane.b32.xlu0 %v435_v61, %s5241_s24  ;;  %v5604_v61 = vld [vmem:[#allocation2 + $0x20] sm:$0xff] }
  0x57   : > { %754 = vrot.lane.b32.xlu1 %v436_v62, %s5241_s24  ;;  %v369_v62 = vld [vmem:[%s8703_s1] sm:$0xff] }
  0x5a   : > { %756 = vrot.lane.b32.xlu0 %v437_v63, %s5241_s24  ;;  %v370_v63 = vld [vmem:[%s8703_s1 + $0x8] sm:$0xff] }
  0x5b   : > { %758 = vrot.lane.b32.xlu1 %v438_v24, %s5241_s24  ;;  %v5197_v24 = vpack.c.bf16 %v370_v63, %v369_v62  ;;  %v340_v62 = vld [vmem:[#allocation2 + $0xb7] sm:$0x1] }
  0x5c   : > { %358 = vst.msk [vmem:[#allocation2 + $0xb9] sm:$0x1] %vm314_vm1, %v340_v62 }
  0x5d   : > { %5198 = vmatprep.subr.bf16.mxu0 %v5197_v24 }
  0x5e   : > { %824 = vrot.lane.b32.xlu0 %v439_v26, %s5242_s25  ;;  %v5619_v26 = vld [vmem:[#allocation2 + $0x30] sm:$0xff]  ;;  %5200 = vmatpush3.bf16.msra.mxu0 %v5197_v24 }
  0x5f   : > { %826 = vrot.lane.b32.xlu1 %v440_v38, %s5242_s25  ;;  %v372_v38 = vld [vmem:[%s8703_s1 + $0x18] sm:$0xff] }
  0x62   : > { %828 = vrot.lane.b32.xlu0 %v441_v39, %s5242_s25 }
  0x63   : > { %830 = vrot.lane.b32.xlu1 %v442_v40, %s5242_s25 }
  0x66   : > { %832 = vrot.lane.b32.xlu0 %v5556_v41, %s5242_s25 }
  0x67   : > { %834 = vrot.lane.b32.xlu1 %v5558_v42, %s5242_s25 }
  0x6a   : > { %836 = vrot.lane.b32.xlu0 %v5564_v45, %s5242_s25 }
  0x6b   : > { %838 = vrot.lane.b32.xlu1 %v5566_v46, %s5242_s25 }
  0x6e   : > { %840 = vrot.lane.b32.xlu0 %v5572_v47, %s5242_s25 }
  0x6f   : > { %842 = vrot.lane.b32.xlu1 %v5574_v48, %s5242_s25 }
  0x72   : > { %844 = vrot.lane.b32.xlu0 %v5580_v51, %s5242_s25 }
  0x73   : > { %846 = vrot.lane.b32.xlu1 %v5582_v52, %s5242_s25 }
  0x76   : > { %848 = vrot.lane.b32.xlu0 %v5588_v55, %s5242_s25 }
  0x77   : > { %850 = vrot.lane.b32.xlu1 %v5590_v56, %s5242_s25 }
  0x7a   : > { %852 = vrot.lane.b32.xlu0 %v5596_v57, %s5242_s25 }
  0x7b   : > { %952 = vrot.lane.b32.xlu1 %v5598_v59, %s5243_s26 }
  0x7e   : > { %954 = vrot.lane.b32.xlu0 %v5604_v61, %s5243_s26 }
  0x7f   : > { %1080 = vrot.lane.b32.xlu1 %v5415_v25, %s5244_s27  ;;  %v371_v25 = vld [vmem:[%s8703_s1 + $0x10] sm:$0xff] }
  0x82   : > { %1082 = vrot.lane.b32.xlu0 %v5426_v27, %s5244_s27  ;;  %v5201_v27 = vpack.c.bf16 %v372_v38, %v371_v25 }
  0x83   : > { %1208 = vrot.lane.b32.xlu1 %v441_v39, %s5245_s7  ;;  %v5630_v39 = vld [vmem:[#allocation2 + $0x38] sm:$0xff] }
  0x84   : > { %5202 = vmatprep.subr.bf16.mxu0 %v5201_v27 }
  0x85   : > { %5204 = vmatpush3.bf16.msra.mxu0 %v5201_v27 }
  0x86   : > { %1210 = vrot.lane.b32.xlu0 %v442_v40, %s5245_s7  ;;  %v373_v40 = vld [vmem:[%s8703_s1 + $0x20] sm:$0xf] }
  0x87   : > { %1336 = vrot.lane.b32.xlu1 %v5619_v26, %s5246_s12  ;;  %5089 = vmatprep.subr.msk.mxu0 %vm2054_vm2, %v373_v40 }
  0x89   : > { %5090 = vmatpush3.msk.msra.mxu0 %vm2054_vm2, %v373_v40 }
  0x8a   : > { %956 = vrot.lane.b32.xlu0 %v5619_v26, %s5243_s26 }
  0x8b   : > { %1338 = vrot.lane.b32.xlu1 %v5630_v39, %s5246_s12 }
  0x8e   : > { %1464 = vrot.lane.b32.xlu0 %v5431_v28, %s5247_s15 }
  0x8f   : > { %958 = vrot.lane.b32.xlu1 %v5630_v39, %s5243_s26 }
  0x90   : > { %v5646_v63 = vpop.permute.xlu0 %696 }
  0x91   : > { %v5648_v24 = vpop.permute.xlu1 %700 }
  0x92   : > { %1084 = vrot.lane.b32.xlu0 %v5431_v28, %s5244_s27  ;;  %v5670_v28 = vld [vmem:[#allocation2 + $0x48] sm:$0xff] }
  0x93   : > { %1466 = vrot.lane.b32.xlu1 %v5433_v29, %s5247_s15 }
  0x94   : > { %v5654_v25 = vpop.permute.xlu0 %698 }
  0x95   : > { %v5656_v38 = vpop.permute.xlu1 %702 }
  0x96   : > { %1592 = vrot.lane.b32.xlu0 %v5556_v41, %s5248_s16 }
  0x97   : > { %1086 = vrot.lane.b32.xlu1 %v5433_v29, %s5244_s27 }
  0x98   : > { %v5662_v27 = vpop.permute.xlu0 %704 }
  0x99   : > { %v5664_v62 = vpop.permute.xlu1 %706 }
  0x9a   : > { %1212 = vrot.lane.b32.xlu0 %v5556_v41, %s5245_s7  ;;  %v5684_v41 = vld [vmem:[#allocation2 + $0x50] sm:$0xff] }
  0x9b   : > { %1594 = vrot.lane.b32.xlu1 %v5558_v42, %s5248_s16 }
  0x9c   : > { %v5672_v40 = vpop.permute.xlu0 %708 }
  0x9d   : > { %v5674_v37 = vpop.permute.xlu1 %710 }
  0x9e   : > { %1214 = vrot.lane.b32.xlu0 %v5558_v42, %s5245_s7  ;;  %v341_v42 = vld [vmem:[#allocation2 + $0xcf] sm:$0x1] }
  0x9f   : > { %1340 = vrot.lane.b32.xlu1 %v5670_v28, %s5246_s12  ;;  %359 = vst.msk [vmem:[#allocation2 + $0xd1] sm:$0x1] %vm314_vm1, %v341_v42 }
  0xa0   : > { %v5680_v29 = vpop.permute.xlu0 %712 }
  0xa1   : > { %v5682_v36 = vpop.permute.xlu1 %714 }
  0xa2   : > { %960 = vrot.lane.b32.xlu0 %v5670_v28, %s5243_s26 }
  0xa3   : > { %1342 = vrot.lane.b32.xlu1 %v5684_v41, %s5246_s12 }
  0xa4   : > { %v5690_v35 = vpop.permute.xlu0 %716 }
  0xa5   : > { %v5692_v34 = vpop.permute.xlu1 %718 }
  0xa6   : > { %1468 = vrot.lane.b32.xlu0 %v5435_v30, %s5247_s15 }
  0xa7   : > { %962 = vrot.lane.b32.xlu1 %v5684_v41, %s5243_s26 }
  0xa8   : > { %v5699_v33 = vpop.permute.xlu0 %720 }
  0xa9   : > { %v5701_v31 = vpop.permute.xlu1 %722 }
  0xaa   : > { %1088 = vrot.lane.b32.xlu0 %v5435_v30, %s5244_s27 }
  0xab   : > { %1470 = vrot.lane.b32.xlu1 %v5444_v32, %s5247_s15 }
  0xac   : > { %v5707_v23 = vpop.permute.xlu0 %724 }
  0xad   : > { %8770 = vst [vmem:[#allocation34_spill] sm:$0xff] %v5707_v23  ;;  %v5709_v22 = vpop.permute.xlu1 %726 }
  0xae   : > { %8771 = vst [vmem:[#allocation35_spill] sm:$0xff] %v5709_v22  ;;  %1596 = vrot.lane.b32.xlu0 %v5564_v45, %s5248_s16 }
  0xaf   : > { %1090 = vrot.lane.b32.xlu1 %v5444_v32, %s5244_s27 }
  0xb0   : > { %v5715_v42 = vpop.permute.xlu0 %728 }
  0xb1   : > { %8772 = vst [vmem:[#allocation36_spill] sm:$0xff] %v5715_v42  ;;  %v5717_v21 = vpop.permute.xlu1 %730 }
  0xb2   : > { %8773 = vst [vmem:[#allocation37_spill] sm:$0xff] %v5717_v21  ;;  %1216 = vrot.lane.b32.xlu0 %v5564_v45, %s5245_s7  ;;  %v5737_v45 = vld [vmem:[#allocation2 + $0x68] sm:$0xff] }
  0xb3   : > { %1598 = vrot.lane.b32.xlu1 %v5566_v46, %s5248_s16 }
  0xb4   : > { %v5723_v30 = vpop.permute.xlu0 %732 }
  0xb5   : > { %8774 = vst [vmem:[#allocation38_spill] sm:$0xff] %v5723_v30  ;;  %v5725_v20 = vpop.permute.xlu1 %734  ;;  %v5878_v30 = vld [vmem:[#allocation2 + $0xb0] sm:$0xff] }
  0xb6   : > { %8775 = vst [vmem:[#allocation39_spill] sm:$0xff] %v5725_v20  ;;  %1218 = vrot.lane.b32.xlu0 %v5566_v46, %s5245_s7 }
  0xb7   : > { %1344 = vrot.lane.b32.xlu1 %v5727_v19, %s5246_s12 }
  0xb8   : > { %v5733_v32 = vpop.permute.xlu0 %736 }
  0xb9   : > { %8776 = vst [vmem:[#allocation40_spill] sm:$0xff] %v5733_v32  ;;  %v5735_v18 = vpop.permute.xlu1 %738  ;;  %v5870_v32 = vld [vmem:[#allocation2 + $0xa8] sm:$0xff] }
  0xba   : > { %8777 = vst [vmem:[#allocation41_spill] sm:$0xff] %v5735_v18  ;;  %964 = vrot.lane.b32.xlu0 %v5727_v19, %s5243_s26 }
  0xbb   : > { %1346 = vrot.lane.b32.xlu1 %v5737_v45, %s5246_s12 }
  0xbc   : > { %v5743_v17 = vpop.permute.xlu0 %740 }
  0xbd   : > { %8778 = vst [vmem:[#allocation42_spill] sm:$0xff] %v5743_v17  ;;  %v5745_v16 = vpop.permute.xlu1 %742 }
  0xbe   : > { %8779 = vst [vmem:[#allocation43_spill] sm:$0xff] %v5745_v16  ;;  %1472 = vrot.lane.b32.xlu0 %v5484_v43, %s5247_s15 }
  0xbf   : > { %966 = vrot.lane.b32.xlu1 %v5737_v45, %s5243_s26 }
  0xc0   : > { %v5751_v46 = vpop.permute.xlu0 %744 }
  0xc1   : > { %8780 = vst [vmem:[#allocation44_spill] sm:$0xff] %v5751_v46  ;;  %v5753_v15 = vpop.permute.xlu1 %746 }
  0xc2   : > { %8781 = vst [vmem:[#allocation45_spill] sm:$0xff] %v5753_v15  ;;  %1092 = vrot.lane.b32.xlu0 %v5484_v43, %s5244_s27 }
  0xc3   : > { %1474 = vrot.lane.b32.xlu1 %v5486_v44, %s5247_s15 }
  0xc4   : > { %v5760_v13 = vpop.permute.xlu0 %748 }
  0xc5   : > { %8782 = vst [vmem:[#allocation46_spill] sm:$0xff] %v5760_v13  ;;  %v5762_v12 = vpop.permute.xlu1 %750 }
  0xc6   : > { %8783 = vst [vmem:[#allocation47_spill] sm:$0xff] %v5762_v12  ;;  %1600 = vrot.lane.b32.xlu0 %v5572_v47, %s5248_s16 }
  0xc7   : > { %1094 = vrot.lane.b32.xlu1 %v5486_v44, %s5244_s27 }
  0xc8   : > { %v5768_v11 = vpop.permute.xlu0 %752 }
  0xc9   : > { %8784 = vst [vmem:[#allocation48_spill] sm:$0xff] %v5768_v11  ;;  %v5770_v10 = vpop.permute.xlu1 %754 }
  0xca   : > { %8785 = vst [vmem:[#allocation49_spill] sm:$0xff] %v5770_v10  ;;  %1220 = vrot.lane.b32.xlu0 %v5572_v47, %s5245_s7  ;;  %v5790_v47 = vld [vmem:[#allocation2 + $0x80] sm:$0xff] }
  0xcb   : > { %1602 = vrot.lane.b32.xlu1 %v5574_v48, %s5248_s16 }
  0xcc   : > { %v5776_v14 = vpop.permute.xlu0 %756 }
  0xcd   : > { %8786 = vst [vmem:[#allocation50_spill] sm:$0xff] %v5776_v14  ;;  %v5778_v43 = vpop.permute.xlu1 %758  ;;  %v5833_v14 = vld [vmem:[#allocation2 + $0x90] sm:$0xff] }
  0xce   : > { %8787 = vst [vmem:[#allocation51_spill] sm:$0xff] %v5778_v43  ;;  %1222 = vrot.lane.b32.xlu0 %v5574_v48, %s5245_s7 }
  0xcf   : > { %1348 = vrot.lane.b32.xlu1 %v5780_v9, %s5246_s12 }
  0xd0   : > { %v5786_v44 = vpop.permute.xlu0 %824 }
  0xd1   : > { %v5788_v8 = vpop.permute.xlu1 %826 }
  0xd2   : > { %968 = vrot.lane.b32.xlu0 %v5780_v9, %s5243_s26 }
  0xd3   : > { %1350 = vrot.lane.b32.xlu1 %v5790_v47, %s5246_s12 }
  0xd4   : > { %v5796_v7 = vpop.permute.xlu0 %828 }
  0xd5   : > { %v5798_v6 = vpop.permute.xlu1 %830 }
  0xd6   : > { %1476 = vrot.lane.b32.xlu0 %v5498_v49, %s5247_s15 }
  0xd7   : > { %970 = vrot.lane.b32.xlu1 %v5790_v47, %s5243_s26 }
  0xd8   : > { %v5804_v48 = vpop.permute.xlu0 %832 }
  0xd9   : > { %v5806_v5 = vpop.permute.xlu1 %834 }
  0xda   : > { %1096 = vrot.lane.b32.xlu0 %v5498_v49, %s5244_s27 }
  0xdb   : > { %1478 = vrot.lane.b32.xlu1 %v5500_v50, %s5247_s15 }
  0xdc   : > { %v5812_v4 = vpop.permute.xlu0 %836 }
  0xdd   : > { %v5814_v2 = vpop.permute.xlu1 %838 }
  0xde   : > { %1604 = vrot.lane.b32.xlu0 %v5580_v51, %s5248_s16 }
  0xdf   : > { %1098 = vrot.lane.b32.xlu1 %v5500_v50, %s5244_s27 }
  0xe0   : > { %v5821_v3 = vpop.permute.xlu0 %840 }
  0xe1   : > { %v5823_v1 = vpop.permute.xlu1 %842 }
  0xe2   : > { %1224 = vrot.lane.b32.xlu0 %v5580_v51, %s5245_s7  ;;  %v5843_v51 = vld [vmem:[#allocation2 + $0x98] sm:$0xff] }
  0xe3   : > { %1606 = vrot.lane.b32.xlu1 %v5582_v52, %s5248_s16 }
  0xe4   : > { %v5829_v49 = vpop.permute.xlu0 %844 }
  0xe5   : > { %v5831_v43 = vpop.permute.xlu1 %846 }
  0xe6   : > { %1226 = vrot.lane.b32.xlu0 %v5582_v52, %s5245_s7 }
  0xe7   : > { %1352 = vrot.lane.b32.xlu1 %v5833_v14, %s5246_s12 }
  0xe8   : > { %v5839_v0 = vpop.permute.xlu0 %848 }
  0xe9   : > { %v5841_v50 = vpop.permute.xlu1 %850 }
  0xea   : > { %972 = vrot.lane.b32.xlu0 %v5833_v14, %s5243_s26 }
  0xeb   : > { %1354 = vrot.lane.b32.xlu1 %v5843_v51, %s5246_s12 }
  0xec   : > { %v5849_v10 = vpop.permute.xlu0 %852 }
  0xed   : > { %8788 = vst [vmem:[#allocation52_spill] sm:$0xff] %v5849_v10  ;;  %v953_v11 = vpop.permute.xlu1 %952 }
  0xee   : > { %1480 = vrot.lane.b32.xlu0 %v5508_v53, %s5247_s15 }
  0xef   : > { %974 = vrot.lane.b32.xlu1 %v5843_v51, %s5243_s26 }
  0xf0   : > { %v955_v52 = vpop.permute.xlu0 %954 }
  0xf1   : > { %v1081_v12 = vpop.permute.xlu1 %1080 }
  0xf2   : > { %1100 = vrot.lane.b32.xlu0 %v5508_v53, %s5244_s27  ;;  %v344_v53 = vld [vmem:[#allocation2 + $0x117] sm:$0x1] }
  0xf3   : > { %1482 = vrot.lane.b32.xlu1 %v5510_v54, %s5247_s15  ;;  %362 = vst.msk [vmem:[#allocation2 + $0x119] sm:$0x1] %vm314_vm1, %v344_v53 }
  0xf4   : > { %v1083_v13 = vpop.permute.xlu0 %1082 }
  0xf5   : > { %v1209_v15 = vpop.permute.xlu1 %1208 }
  0xf6   : > { %1608 = vrot.lane.b32.xlu0 %v5588_v55, %s5248_s16 }
  0xf7   : > { %1102 = vrot.lane.b32.xlu1 %v5510_v54, %s5244_s27  ;;  %v375_v54 = vld [vmem:[#allocation2] sm:$0xff] }
  0xf8   : > { %v1211_v46 = vpop.permute.xlu0 %1210  ;;  %v1688_v53 = vsel %vm258_vm0, %v375_v54, %v5646_v63 }
  0xf9   : > { %v1337_v16 = vpop.permute.xlu1 %1336  ;;  %v1721_v21 = vsel %vm1720_vm3, %v1688_v53, %v5786_v44 }
  0xfa   : > { %1228 = vrot.lane.b32.xlu0 %v5588_v55, %s5245_s7  ;;  %v1754_v42 = vsel %vm1753_vm4, %v1721_v21, %v953_v11 }
  0xfb   : > { %1610 = vrot.lane.b32.xlu1 %v5590_v56, %s5248_s16  ;;  %v1787_v23 = vsel %vm1786_vm5, %v1754_v42, %v1081_v12 }
  0xfc   : > { %v5868_v17 = vpop.permute.xlu0 %956  ;;  %v1820_v54 = vsel %vm1819_vm6, %v1787_v23, %v1209_v15 }
  0xfd   : > { %v1339_v18 = vpop.permute.xlu1 %1338  ;;  %v1853_v21 = vsel %vm1852_vm7, %v1820_v54, %v1337_v16 }
  0xfe   : > { %1230 = vrot.lane.b32.xlu0 %v5590_v56, %s5245_s7  ;;  %v376_v56 = vld [vmem:[#allocation2 + $0x8] sm:$0xff] }
  0xff   : > { %1356 = vrot.lane.b32.xlu1 %v5870_v32, %s5246_s12  ;;  %v1689_v63 = vsel %vm258_vm0, %v376_v56, %v5654_v25 }
 0x100   : > { %v1465_v55 = vpop.permute.xlu0 %1464  ;;  %v1722_v11 = vsel %vm1720_vm3, %v1689_v63, %v5788_v8  ;;  %v5923_v63 = vld [vmem:[#allocation2 + $0xc0] sm:$0xff] }
 0x101   : > { %v5876_v20 = vpop.permute.xlu1 %958  ;;  %v1755_v12 = vsel %vm1753_vm4, %v1722_v11, %v955_v52  ;;  %v1886_v42 = vsel %vm1885_vm8, %v1853_v21, %v1465_v55 }
 0x102   : > { %976 = vrot.lane.b32.xlu0 %v5870_v32, %s5243_s26  ;;  %v1788_v15 = vsel %vm1786_vm5, %v1755_v12, %v1083_v13  ;;  %v612_v12 = vld [vmem:[#allocation2 + $0xc1] sm:$0xff] }
 0x103   : > { %1358 = vrot.lane.b32.xlu1 %v5878_v30, %s5246_s12  ;;  %v1821_v53 = vsel %vm1819_vm6, %v1788_v15, %v1211_v46 }
 0x104   : > { %v1085_v22 = vpop.permute.xlu0 %1084  ;;  %v1854_v8 = vsel %vm1852_vm7, %v1821_v53, %v1339_v18 }
 0x105   : > { %v1467_v10 = vpop.permute.xlu1 %1466 }
 0x106   : > { %1484 = vrot.lane.b32.xlu0 %v5518_v58, %s5247_s15  ;;  %v1887_v16 = vsel %vm1885_vm8, %v1854_v8, %v1467_v10 }
 0x107   : > { %978 = vrot.lane.b32.xlu1 %v5878_v30, %s5243_s26 }
 0x108   : > { %v1593_v44 = vpop.permute.xlu0 %1592 }
 0x109   : > { %v1087_v25 = vpop.permute.xlu1 %1086  ;;  %v1919_v23 = vsel %vm1918_vm9, %v1886_v42, %v1593_v44 }
 0x10a   : > { %1104 = vrot.lane.b32.xlu0 %v5518_v58, %s5244_s27  ;;  %5091 = vmatprep.mubr.msk.f32.mxu0 %vm1957_vm10, %v1919_v23  ;;  %v643_v58 = vld [vmem:[#allocation2 + $0xb2] sm:$0xff]  ;;  %v5941_v23 = vld [vmem:[#allocation2 + $0xc8] sm:$0xff] }
 0x10b   : > { %1486 = vrot.lane.b32.xlu1 %v5521_v60, %s5247_s15 }
 0x10c   : > { %v1213_v52 = vpop.permute.xlu0 %1212 }
 0x10d   : > { %v1595_v55 = vpop.permute.xlu1 %1594 }
 0x10e   : > { %v1920_v13 = vsel %vm1918_vm9, %v1887_v16, %v1595_v55  ;;  %1612 = vrot.lane.b32.xlu0 %v5596_v57, %s5248_s16 }
 0x10f   : > { %1106 = vrot.lane.b32.xlu1 %v5521_v60, %s5244_s27  ;;  %5092 = vmatmul.mubr.msk.f32.vlgmr.msra.gmra.mrb[0].mxu0 %vm1957_vm10, %v1920_v13  ;;  %v345_v60 = vld [vmem:[#allocation2 + $0x12f] sm:$0x1]  ;;  %v644_v13 = vld [vmem:[#allocation2 + $0xc2] sm:$0xff] }
 0x110   : > { %v1215_v46 = vpop.permute.xlu0 %1214  ;;  %363 = vst.msk [vmem:[#allocation2 + $0x131] sm:$0x1] %vm314_vm1, %v345_v60 }
 0x111   : > { %v1341_v56 = vpop.permute.xlu1 %1340 }
 0x112   : > { %1232 = vrot.lane.b32.xlu0 %v5596_v57, %s5245_s7  ;;  %v1690_v57 = vsel %vm258_vm0, %v5598_v59, %v5648_v24  ;;  %v1691_v59 = vsel %vm258_vm0, %v5604_v61, %v5656_v38 }
 0x113   : > { %1614 = vrot.lane.b32.xlu1 %v643_v58, %s5248_s16  ;;  %v1723_v21 = vsel %vm1720_vm3, %v1690_v57, %v5796_v7  ;;  %v1724_v7 = vsel %vm1720_vm3, %v1691_v59, %v5798_v6  ;;  %v346_v59 = vld [vmem:[#allocation2 + $0x147] sm:$0x1] }
 0x114   : > { %v5921_v10 = vpop.permute.xlu0 %960  ;;  %v1756_v42 = vsel %vm1753_vm4, %v1723_v21, %v5868_v17  ;;  %v1757_v8 = vsel %vm1753_vm4, %v1724_v7, %v5876_v20  ;;  %v613_v20 = vld [vmem:[#allocation2 + $0xc9] sm:$0xff]  ;;  %364 = vst.msk [vmem:[#allocation2 + $0x149] sm:$0x1] %vm314_vm1, %v346_v59  ;;  %v1694_v59 = vsel %vm258_vm0, %v5670_v28, %v5672_v40 }
 0x115   : > { %v1343_v18 = vpop.permute.xlu1 %1342  ;;  %v1789_v53 = vsel %vm1786_vm5, %v1756_v42, %v1085_v22  ;;  %v1790_v61 = vsel %vm1786_vm5, %v1757_v8, %v1087_v25 }
 0x116   : > { %1234 = vrot.lane.b32.xlu0 %v643_v58, %s5245_s7  ;;  %v1822_v24 = vsel %vm1819_vm6, %v1789_v53, %v1213_v52  ;;  %v1823_v52 = vsel %vm1819_vm6, %v1790_v61, %v1215_v46  ;;  %v1692_v53 = vsel %vm258_vm0, %v5619_v26, %v5662_v27  ;;  %v1693_v26 = vsel %vm258_vm0, %v5630_v39, %v5664_v62  ;;  %v6003_v62 = vld [vmem:[#allocation2 + $0xe0] sm:$0xff] }
 0x117   : > { %1360 = vrot.lane.b32.xlu1 %v5923_v63, %s5246_s12  ;;  %v1855_v17 = vsel %vm1852_vm7, %v1822_v24, %v1341_v56  ;;  %v1856_v6 = vsel %vm1852_vm7, %v1823_v52, %v1343_v18  ;;  %v645_v18 = vld [vmem:[#allocation2 + $0xca] sm:$0xff]  ;;  %v1725_v24 = vsel %vm1720_vm3, %v1692_v53, %v5804_v48  ;;  %v1726_v48 = vsel %vm1720_vm3, %v1693_v26, %v5806_v5 }
 0x118   : > { %v1469_v54 = vpop.permute.xlu0 %1468  ;;  %v1758_v7 = vsel %vm1753_vm4, %v1725_v24, %v5921_v10  ;;  %v1727_v24 = vsel %vm1720_vm3, %v1694_v59, %v5812_v4  ;;  %v6033_v26 = vld [vmem:[#allocation2 + $0xf0] sm:$0xff]  ;;  %v347_v4 = vld [vmem:[#allocation2 + $0x15f] sm:$0x1] }
 0x119   : > { %v5929_v11 = vpop.permute.xlu1 %962  ;;  %v1888_v22 = vsel %vm1885_vm8, %v1855_v17, %v1469_v54  ;;  %365 = vst.msk [vmem:[#allocation2 + $0x161] sm:$0x1] %vm314_vm1, %v347_v4 }
 0x11a   : > { %854 = vrot.lane.b32.xlu0 %v643_v58, %s5242_s25 }
 0x11b   : > { %980 = vrot.lane.b32.xlu1 %v5923_v63, %s5243_s26 }
 0x11c   : > { %v1089_v44 = vpop.permute.xlu0 %1088 }
 0x11d   : > { %v1471_v15 = vpop.permute.xlu1 %1470 }
 0x11e   : > { %1362 = vrot.lane.b32.xlu0 %v5941_v23, %s5246_s12  ;;  %v1889_v58 = vsel %vm1885_vm8, %v1856_v6, %v1471_v15  ;;  %v5976_v15 = vld [vmem:[#allocation2 + $0xd8] sm:$0xff] }
 0x11f   : > { %1488 = vrot.lane.b32.xlu1 %v612_v12, %s5247_s15 }
 0x120   : > { %v1597_v16 = vpop.permute.xlu0 %1596 }
 0x121   : > { %v1091_v55 = vpop.permute.xlu1 %1090  ;;  %v1921_v38 = vsel %vm1918_vm9, %v1888_v22, %v1597_v16  ;;  %v1791_v22 = vsel %vm1786_vm5, %v1758_v7, %v1089_v44  ;;  %v614_v16 = vld [vmem:[#allocation2 + $0xd9] sm:$0xff]  ;;  %v1759_v44 = vsel %vm1753_vm4, %v1726_v48, %v5929_v11  ;;  %v1695_v48 = vsel %vm258_vm0, %v5684_v41, %v5674_v37 }
 0x122   : > { %982 = vrot.lane.b32.xlu0 %v5941_v23, %s5243_s26  ;;  %5094 = vmatprep.mubr.msk.f32.mxu0 %vm1957_vm10, %v1921_v38  ;;  %v1792_v52 = vsel %vm1786_vm5, %v1759_v44, %v1091_v55  ;;  %v615_v55 = vld [vmem:[#allocation2 + $0xe1] sm:$0xff]  ;;  %v1728_v40 = vsel %vm1720_vm3, %v1695_v48, %v5814_v2 }
 0x123   : > { %1108 = vrot.lane.b32.xlu1 %v612_v12, %s5244_s27  ;;  %v6101_v48 = vld [vmem:[#allocation2 + $0x108] sm:$0xff] }
 0x124   : > { %v1217_v56 = vpop.permute.xlu0 %1216 }
 0x125   : > { %v1599_v60 = vpop.permute.xlu1 %1598  ;;  %v1824_v27 = vsel %vm1819_vm6, %v1791_v22, %v1217_v56 }
 0x126   : > { %v1922_v25 = vsel %vm1918_vm9, %v1889_v58, %v1599_v60  ;;  %1490 = vrot.lane.b32.xlu0 %v613_v20, %s5247_s15  ;;  %v646_v60 = vld [vmem:[#allocation2 + $0xda] sm:$0xff] }
 0x127   : > { %1616 = vrot.lane.b32.xlu1 %v644_v13, %s5248_s16  ;;  %5095 = vmatmul.mubr.msk.f32.gmra.mrb[2].mxu0 %vm1957_vm10, %v1922_v25 }
 0x128   : > { %v1219_v46 = vpop.permute.xlu0 %1218 }
 0x129   : > { %v1345_v54 = vpop.permute.xlu1 %1344 }
 0x12a   : > { %1110 = vrot.lane.b32.xlu0 %v613_v20, %s5244_s27  ;;  %v1857_v10 = vsel %vm1852_vm7, %v1824_v27, %v1345_v54  ;;  %v1825_v20 = vsel %vm1819_vm6, %v1792_v52, %v1219_v46 }
 0x12b   : > { %1236 = vrot.lane.b32.xlu1 %v644_v13, %s5245_s7 }
 0x12c   : > { %v965_v57 = vpop.permute.xlu0 %964 }
 0x12d   : > { %v1347_v21 = vpop.permute.xlu1 %1346  ;;  %v1760_v7 = vsel %vm1753_vm4, %v1727_v24, %v965_v57 }
 0x12e   : > { %1618 = vrot.lane.b32.xlu0 %v645_v18, %s5248_s16  ;;  %v1858_v5 = vsel %vm1852_vm7, %v1825_v20, %v1347_v21  ;;  %v647_v21 = vld [vmem:[#allocation2 + $0xe2] sm:$0xff]  ;;  %v6059_v20 = vld [vmem:[#allocation2 + $0xf8] sm:$0xff] }
 0x12f   : > { %856 = vrot.lane.b32.xlu1 %v644_v13, %s5242_s25 }
 0x130   : > { %v1473_v12 = vpop.permute.xlu0 %1472 }
 0x131   : > { %v5974_v42 = vpop.permute.xlu1 %966  ;;  %v1890_v61 = vsel %vm1885_vm8, %v1857_v10, %v1473_v12 }
 0x132   : > { %1238 = vrot.lane.b32.xlu0 %v645_v18, %s5245_s7 }
 0x133   : > { %1364 = vrot.lane.b32.xlu1 %v5976_v15, %s5246_s12 }
 0x134   : > { %v1093_v17 = vpop.permute.xlu0 %1092 }
 0x135   : > { %v1475_v8 = vpop.permute.xlu1 %1474  ;;  %v1793_v27 = vsel %vm1786_vm5, %v1760_v7, %v1093_v17  ;;  %v1761_v17 = vsel %vm1753_vm4, %v1728_v40, %v5974_v42  ;;  %v616_v42 = vld [vmem:[#allocation2 + $0xf1] sm:$0xff] }
 0x136   : > { %858 = vrot.lane.b32.xlu0 %v645_v18, %s5242_s25  ;;  %v1891_v11 = vsel %vm1885_vm8, %v1858_v5, %v1475_v8  ;;  %v348_v40 = vld [vmem:[#allocation2 + $0x177] sm:$0x1] }
 0x137   : > { %984 = vrot.lane.b32.xlu1 %v5976_v15, %s5243_s26  ;;  %366 = vst.msk [vmem:[#allocation2 + $0x179] sm:$0x1] %vm314_vm1, %v348_v40 }
 0x138   : > { %v1601_v38 = vpop.permute.xlu0 %1600 }
 0x139   : > { %v1095_v39 = vpop.permute.xlu1 %1094  ;;  %v1923_v6 = vsel %vm1918_vm9, %v1890_v61, %v1601_v38 }
 0x13a   : > { %1366 = vrot.lane.b32.xlu0 %v6003_v62, %s5246_s12  ;;  %5097 = vmatprep.mubr.msk.f32.mxu0 %vm1957_vm10, %v1923_v6 }
 0x13b   : > { %1492 = vrot.lane.b32.xlu1 %v614_v16, %s5247_s15 }
 0x13c   : > { %v1221_v13 = vpop.permute.xlu0 %1220 }
 0x13d   : > { %v1603_v58 = vpop.permute.xlu1 %1602  ;;  %v1826_v28 = vsel %vm1819_vm6, %v1793_v27, %v1221_v13  ;;  %v617_v13 = vld [vmem:[#allocation2 + $0xf9] sm:$0xff] }
 0x13e   : > { %v1924_v56 = vsel %vm1918_vm9, %v1891_v11, %v1603_v58  ;;  %986 = vrot.lane.b32.xlu0 %v6003_v62, %s5243_s26  ;;  %v648_v58 = vld [vmem:[#allocation2 + $0xf2] sm:$0xff] }
 0x13f   : > { %1112 = vrot.lane.b32.xlu1 %v614_v16, %s5244_s27  ;;  %5098 = vmatmul.mubr.msk.f32.gmra.mrb[4].mxu0 %vm1957_vm10, %v1924_v56  ;;  %v1794_v16 = vsel %vm1786_vm5, %v1761_v17, %v1095_v39 }
 0x140   : > { %v1223_v25 = vpop.permute.xlu0 %1222 }
 0x141   : > { %v1349_v46 = vpop.permute.xlu1 %1348  ;;  %v1827_v61 = vsel %vm1819_vm6, %v1794_v16, %v1223_v25  ;;  %v618_v16 = vld [vmem:[#allocation2 + $0x109] sm:$0xff] }
 0x142   : > { %1494 = vrot.lane.b32.xlu0 %v615_v55, %s5247_s15  ;;  %v1859_v57 = vsel %vm1852_vm7, %v1826_v28, %v1349_v46  ;;  %v1696_v46 = vsel %vm258_vm0, %v5727_v19, %v5680_v29  ;;  %v6091_v29 = vld [vmem:[%s5295_s23 + $0xf0] sm:$0xff] }
 0x143   : > { %1620 = vrot.lane.b32.xlu1 %v646_v60, %s5248_s16  ;;  %8789 = vst [vmem:[#allocation53_spill] sm:$0xff] %v6091_v29  ;;  %289 = vst.msk [vmem:[#allocation2 + $0x181] sm:$0xff] %vm258_vm0, %v6091_v29 }
 0x144   : > { %v969_v54 = vpop.permute.xlu0 %968 }
 0x145   : > { %v1351_v18 = vpop.permute.xlu1 %1350 }
 0x146   : > { %1114 = vrot.lane.b32.xlu0 %v615_v55, %s5244_s27  ;;  %v1860_v2 = vsel %vm1852_vm7, %v1827_v61, %v1351_v18  ;;  %v1729_v18 = vsel %vm1720_vm3, %v1696_v46, %v5821_v3 }
 0x147   : > { %1240 = vrot.lane.b32.xlu1 %v646_v60, %s5245_s7 }
 0x148   : > { %v1477_v12 = vpop.permute.xlu0 %1476 }
 0x149   : > { %v6023_v53 = vpop.permute.xlu1 %970  ;;  %v1892_v37 = vsel %vm1885_vm8, %v1859_v57, %v1477_v12  ;;  %v1762_v12 = vsel %vm1753_vm4, %v1729_v18, %v969_v54 }
 0x14a   : > { %1622 = vrot.lane.b32.xlu0 %v647_v21, %s5248_s16 }
 0x14b   : > { %860 = vrot.lane.b32.xlu1 %v646_v60, %s5242_s25 }
 0x14c   : > { %v1097_v8 = vpop.permute.xlu0 %1096 }
 0x14d   : > { %v1479_v22 = vpop.permute.xlu1 %1478  ;;  %v1795_v7 = vsel %vm1786_vm5, %v1762_v12, %v1097_v8 }
 0x14e   : > { %1242 = vrot.lane.b32.xlu0 %v647_v21, %s5245_s7  ;;  %v1893_v38 = vsel %vm1885_vm8, %v1860_v2, %v1479_v22  ;;  %v1697_v22 = vsel %vm258_vm0, %v5737_v45, %v5682_v36  ;;  %v6119_v2 = vld [vmem:[#allocation2 + $0x110] sm:$0xff] }
 0x14f   : > { %1368 = vrot.lane.b32.xlu1 %v6033_v26, %s5246_s12  ;;  %v1730_v3 = vsel %vm1720_vm3, %v1697_v22, %v5823_v1 }
 0x150   : > { %v1605_v41 = vpop.permute.xlu0 %1604  ;;  %v1763_v8 = vsel %vm1753_vm4, %v1730_v3, %v6023_v53 }
 0x151   : > { %v1099_v10 = vpop.permute.xlu1 %1098  ;;  %v1925_v44 = vsel %vm1918_vm9, %v1892_v37, %v1605_v41 }
 0x152   : > { %862 = vrot.lane.b32.xlu0 %v647_v21, %s5242_s25  ;;  %5100 = vmatprep.mubr.msk.f32.mxu0 %vm1957_vm10, %v1925_v44  ;;  %v649_v21 = vld [vmem:[#allocation2 + $0xfa] sm:$0xff]  ;;  %v1796_v28 = vsel %vm1786_vm5, %v1763_v8, %v1099_v10  ;;  %v312_v10 = vld [vmem:[#allocation2 + $0x182] sm:$0x1] }
 0x153   : > { %988 = vrot.lane.b32.xlu1 %v6033_v26, %s5243_s26  ;;  %331 = vst.msk [vmem:[#allocation2 + $0x180] sm:$0x1] %vm314_vm1, %v312_v10 }
 0x154   : > { %v1225_v52 = vpop.permute.xlu0 %1224 }
 0x155   : > { %v1607_v6 = vpop.permute.xlu1 %1606  ;;  %v1828_v19 = vsel %vm1819_vm6, %v1795_v7, %v1225_v52  ;;  %v6130_v52 = vld [vmem:[%s5295_s23 + $0xf8] sm:$0xff] }
 0x156   : > { %v1926_v39 = vsel %vm1918_vm9, %v1893_v38, %v1607_v6  ;;  %1370 = vrot.lane.b32.xlu0 %v6059_v20, %s5246_s12  ;;  %8790 = vst [vmem:[#allocation54_spill] sm:$0xff] %v6130_v52  ;;  %v619_v6 = vld [vmem:[#allocation2 + $0x111] sm:$0xff]  ;;  %290 = vst.msk [vmem:[#allocation2 + $0x189] sm:$0xff] %vm258_vm0, %v6130_v52 }
 0x157   : > { %1496 = vrot.lane.b32.xlu1 %v616_v42, %s5247_s15  ;;  %5101 = vmatmul.mubr.msk.f32.gmra.mrb[6].mxu0 %vm1957_vm10, %v1926_v39  ;;  %v650_v39 = vld [vmem:[#allocation2 + $0x10a] sm:$0xff] }
 0x158   : > { %v1227_v5 = vpop.permute.xlu0 %1226 }
 0x159   : > { %v1353_v11 = vpop.permute.xlu1 %1352  ;;  %v1829_v1 = vsel %vm1819_vm6, %v1796_v28, %v1227_v5  ;;  %v313_v28 = vld [vmem:[#allocation2 + $0x19a] sm:$0x1] }
 0x15a   : > { %990 = vrot.lane.b32.xlu0 %v6059_v20, %s5243_s26  ;;  %v1861_v54 = vsel %vm1852_vm7, %v1828_v19, %v1353_v11  ;;  %332 = vst.msk [vmem:[#allocation2 + $0x198] sm:$0x1] %vm314_vm1, %v313_v28 }
 0x15b   : > { %1116 = vrot.lane.b32.xlu1 %v616_v42, %s5244_s27 }
 0x15c   : > { %v6069_v56 = vpop.permute.xlu0 %972 }
 0x15d   : > { %v1355_v55 = vpop.permute.xlu1 %1354 }
 0x15e   : > { %1498 = vrot.lane.b32.xlu0 %v617_v13, %s5247_s15  ;;  %v1862_v53 = vsel %vm1852_vm7, %v1829_v1, %v1355_v55 }
 0x15f   : > { %1624 = vrot.lane.b32.xlu1 %v648_v58, %s5248_s16 }
 0x160   : > { %v1481_v60 = vpop.permute.xlu0 %1480 }
 0x161   : > { %v6073_v25 = vpop.permute.xlu1 %974  ;;  %v1894_v36 = vsel %vm1885_vm8, %v1861_v54, %v1481_v60  ;;  %v6166_v54 = vld [vmem:[#allocation2 + $0x120] sm:$0xff] }
 0x162   : > { %1118 = vrot.lane.b32.xlu0 %v617_v13, %s5244_s27  ;;  %v1698_v13 = vsel %vm258_vm0, %v5780_v9, %v5690_v35 }
 0x163   : > { %1244 = vrot.lane.b32.xlu1 %v648_v58, %s5245_s7 }
 0x164   : > { %v1101_v59 = vpop.permute.xlu0 %1100 }
 0x165   : > { %v1483_v24 = vpop.permute.xlu1 %1482 }
 0x166   : > { %1626 = vrot.lane.b32.xlu0 %v649_v21, %s5248_s16  ;;  %v1895_v57 = vsel %vm1885_vm8, %v1862_v53, %v1483_v24  ;;  %v6182_v53 = vld [vmem:[#allocation2 + $0x128] sm:$0xff] }
 0x167   : > { %864 = vrot.lane.b32.xlu1 %v648_v58, %s5242_s25  ;;  %v1731_v58 = vsel %vm1720_vm3, %v1698_v13, %v5829_v49 }
 0x168   : > { %v1609_v45 = vpop.permute.xlu0 %1608  ;;  %v1764_v55 = vsel %vm1753_vm4, %v1731_v58, %v6069_v56  ;;  %v651_v56 = vld [vmem:[#allocation2 + $0x112] sm:$0xff] }
 0x169   : > { %v1103_v27 = vpop.permute.xlu1 %1102  ;;  %v1927_v4 = vsel %vm1918_vm9, %v1894_v36, %v1609_v45  ;;  %v1797_v18 = vsel %vm1786_vm5, %v1764_v55, %v1101_v59  ;;  %v349_v36 = vld [vmem:[#allocation2 + $0x18f] sm:$0x1] }
 0x16a   : > { %1246 = vrot.lane.b32.xlu0 %v649_v21, %s5245_s7  ;;  %5103 = vmatprep.mubr.msk.f32.mxu0 %vm1957_vm10, %v1927_v4  ;;  %367 = vst.msk [vmem:[#allocation2 + $0x191] sm:$0x1] %vm314_vm1, %v349_v36  ;;  %v620_v4 = vld [vmem:[#allocation2 + $0x121] sm:$0xff] }
 0x16b   : > { %1372 = vrot.lane.b32.xlu1 %v6101_v48, %s5246_s12  ;;  %v623_v36 = vld [vmem:[#allocation2 + $0x141] sm:$0xff] }
 0x16c   : > { %v1229_v17 = vpop.permute.xlu0 %1228 }
 0x16d   : > { %v1611_v37 = vpop.permute.xlu1 %1610  ;;  %v1830_v9 = vsel %vm1819_vm6, %v1797_v18, %v1229_v17 }
 0x16e   : > { %v1928_v41 = vsel %vm1918_vm9, %v1895_v57, %v1611_v37  ;;  %866 = vrot.lane.b32.xlu0 %v649_v21, %s5242_s25  ;;  %v1699_v21 = vsel %vm258_vm0, %v5790_v47, %v5692_v34  ;;  %v1700_v37 = vsel %vm258_vm0, %v5833_v14, %v5699_v33 }
 0x16f   : > { %992 = vrot.lane.b32.xlu1 %v6101_v48, %s5243_s26  ;;  %5104 = vmatmul.mubr.msk.f32.gmra.mrb[8].mxu0 %vm1957_vm10, %v1928_v41  ;;  %v1732_v35 = vsel %vm1720_vm3, %v1699_v21, %v5831_v43  ;;  %v350_v41 = vld [vmem:[#allocation2 + $0x1a7] sm:$0x1]  ;;  %v1733_v10 = vsel %vm1720_vm3, %v1700_v37, %v5839_v0 }
 0x170   : > { %v1231_v44 = vpop.permute.xlu0 %1230  ;;  %v1765_v12 = vsel %vm1753_vm4, %v1732_v35, %v6073_v25  ;;  %368 = vst.msk [vmem:[#allocation2 + $0x1a9] sm:$0x1] %vm314_vm1, %v350_v41 }
 0x171   : > { %v1357_v61 = vpop.permute.xlu1 %1356  ;;  %v1798_v34 = vsel %vm1786_vm5, %v1765_v12, %v1103_v27 }
 0x172   : > { %1374 = vrot.lane.b32.xlu0 %v6119_v2, %s5246_s12  ;;  %v1863_v49 = vsel %vm1852_vm7, %v1830_v9, %v1357_v61  ;;  %v1831_v22 = vsel %vm1819_vm6, %v1798_v34, %v1231_v44  ;;  %v652_v44 = vld [vmem:[#allocation2 + $0x122] sm:$0xff] }
 0x173   : > { %1500 = vrot.lane.b32.xlu1 %v618_v16, %s5247_s15 }
 0x174   : > { %v6124_v42 = vpop.permute.xlu0 %976 }
 0x175   : > { %v1359_v38 = vpop.permute.xlu1 %1358  ;;  %v1766_v61 = vsel %vm1753_vm4, %v1733_v10, %v6124_v42  ;;  %v1701_v42 = vsel %vm258_vm0, %v5843_v51, %v5701_v31 }
 0x176   : > { %994 = vrot.lane.b32.xlu0 %v6119_v2, %s5243_s26  ;;  %v1864_v43 = vsel %vm1852_vm7, %v1831_v22, %v1359_v38  ;;  %v1734_v55 = vsel %vm1720_vm3, %v1701_v42, %v5841_v50 }
 0x177   : > { %1120 = vrot.lane.b32.xlu1 %v618_v16, %s5244_s27  ;;  %v621_v16 = vld [vmem:[#allocation2 + $0x129] sm:$0xff] }
 0x178   : > { %v1485_v5 = vpop.permute.xlu0 %1484 }
 0x179   : > { %v6134_v11 = vpop.permute.xlu1 %978  ;;  %v1896_v59 = vsel %vm1885_vm8, %v1863_v49, %v1485_v5 }
 0x17a   : > { %1502 = vrot.lane.b32.xlu0 %v619_v6, %s5247_s15 }
 0x17b   : > { %1628 = vrot.lane.b32.xlu1 %v650_v39, %s5248_s16 }
 0x17c   : > { %v1105_v60 = vpop.permute.xlu0 %1104 }
 0x17d   : > { %v1487_v46 = vpop.permute.xlu1 %1486  ;;  %v1799_v33 = vsel %vm1786_vm5, %v1766_v61, %v1105_v60  ;;  %v653_v60 = vld [vmem:[#allocation2 + $0x12a] sm:$0xff] }
 0x17e   : > { %1122 = vrot.lane.b32.xlu0 %v619_v6, %s5244_s27  ;;  %v1897_v25 = vsel %vm1885_vm8, %v1864_v43, %v1487_v46  ;;  %v1767_v46 = vsel %vm1753_vm4, %v1734_v55, %v6134_v11 }
 0x17f   : > { %1248 = vrot.lane.b32.xlu1 %v650_v39, %s5245_s7 }
 0x180   : > { %v1613_v24 = vpop.permute.xlu0 %1612 }
 0x181   : > { %v1107_v7 = vpop.permute.xlu1 %1106  ;;  %v1929_v47 = vsel %vm1918_vm9, %v1896_v59, %v1613_v24  ;;  %v591_v24 = vld [vmem:[#allocation2 + $0x140] sm:$0xff] }
 0x182   : > { %1630 = vrot.lane.b32.xlu0 %v651_v56, %s5248_s16  ;;  %5106 = vmatprep.mubr.msk.f32.mxu0 %vm1957_vm10, %v1929_v47  ;;  %v1800_v9 = vsel %vm1786_vm5, %v1767_v46, %v1107_v7  ;;  %v622_v7 = vld [vmem:[#allocation2 + $0x139] sm:$0xff] }
 0x183   : > { %868 = vrot.lane.b32.xlu1 %v650_v39, %s5242_s25  ;;  %v593_v46 = vld [vmem:[#allocation2 + $0x158] sm:$0xff] }
 0x184   : > { %v1233_v19 = vpop.permute.xlu0 %1232 }
 0x185   : > { %v1615_v3 = vpop.permute.xlu1 %1614  ;;  %v1832_v14 = vsel %vm1819_vm6, %v1799_v33, %v1233_v19 }
 0x186   : > { %v1930_v8 = vsel %vm1918_vm9, %v1897_v25, %v1615_v3  ;;  %1250 = vrot.lane.b32.xlu0 %v651_v56, %s5245_s7  ;;  %v8791_v25 = vld [vmem:[#allocation34_spill] sm:$0xff]  ;;  %v8792_v3 = vld [vmem:[#allocation52_spill] sm:$0xff] }
 0x187   : > { %1376 = vrot.lane.b32.xlu1 %v6166_v54, %s5246_s12  ;;  %5107 = vmatmul.mubr.msk.f32.gmra.mrb[10].mxu0 %vm1957_vm10, %v1930_v8  ;;  %v1702_v19 = vsel %vm258_vm0, %v5870_v32, %v8791_v25 }
 0x188   : > { %v1235_v45 = vpop.permute.xlu0 %1234  ;;  %v1735_v8 = vsel %vm1720_vm3, %v1702_v19, %v8792_v3 }
 0x189   : > { %v1361_v27 = vpop.permute.xlu1 %1360  ;;  %v1833_v35 = vsel %vm1819_vm6, %v1800_v9, %v1235_v45  ;;  %v654_v45 = vld [vmem:[#allocation2 + $0x13a] sm:$0xff] }
 0x18a   : > { %870 = vrot.lane.b32.xlu0 %v651_v56, %s5242_s25  ;;  %v1865_v0 = vsel %vm1852_vm7, %v1832_v14, %v1361_v27  ;;  %v6225_v56 = vld [vmem:[#allocation2 + $0x138] sm:$0xff] }
 0x18b   : > { %996 = vrot.lane.b32.xlu1 %v6166_v54, %s5243_s26 }
 0x18c   : > { %v6178_v1 = vpop.permute.xlu0 %854 }
 0x18d   : > { %v6180_v40 = vpop.permute.xlu1 %980 }
 0x18e   : > { %1378 = vrot.lane.b32.xlu0 %v6182_v53, %s5246_s12  ;;  %v1768_v27 = vsel %vm1753_vm4, %v1735_v8, %v6180_v40  ;;  %v8793_v40 = vld [vmem:[#allocation35_spill] sm:$0xff] }
 0x18f   : > { %1504 = vrot.lane.b32.xlu1 %v620_v4, %s5247_s15 }
 0x190   : > { %v1363_v57 = vpop.permute.xlu0 %1362 }
 0x191   : > { %v1489_v17 = vpop.permute.xlu1 %1488  ;;  %v1866_v31 = vsel %vm1852_vm7, %v1833_v35, %v1363_v57 }
 0x192   : > { %998 = vrot.lane.b32.xlu0 %v6182_v53, %s5243_s26  ;;  %v1898_v39 = vsel %vm1885_vm8, %v1865_v0, %v1489_v17 }
 0x193   : > { %1124 = vrot.lane.b32.xlu1 %v620_v4, %s5244_s27 }
 0x194   : > { %v6198_v38 = vpop.permute.xlu0 %982 }
 0x195   : > { %v1109_v6 = vpop.permute.xlu1 %1108 }
 0x196   : > { %1506 = vrot.lane.b32.xlu0 %v621_v16, %s5247_s15  ;;  %v1801_v57 = vsel %vm1786_vm5, %v1768_v27, %v1109_v6  ;;  %v655_v6 = vld [vmem:[#allocation2 + $0x142] sm:$0xff]  ;;  %v657_v27 = vld [vmem:[#allocation2 + $0x15a] sm:$0xff] }
 0x197   : > { %1632 = vrot.lane.b32.xlu1 %v652_v44, %s5248_s16 }
 0x198   : > { %v1491_v5 = vpop.permute.xlu0 %1490 }
 0x199   : > { %v1617_v13 = vpop.permute.xlu1 %1616  ;;  %v1899_v50 = vsel %vm1885_vm8, %v1866_v31, %v1491_v5 }
 0x19a   : > { %v1931_v58 = vsel %vm1918_vm9, %v1898_v39, %v1617_v13  ;;  %1126 = vrot.lane.b32.xlu0 %v621_v16, %s5244_s27  ;;  %v592_v13 = vld [vmem:[#allocation2 + $0x150] sm:$0xff] }
 0x19b   : > { %1252 = vrot.lane.b32.xlu1 %v652_v44, %s5245_s7  ;;  %5109 = vmatprep.mubr.msk.f32.mxu0 %vm1957_vm10, %v1931_v58 }
 0x19c   : > { %v1111_v18 = vpop.permute.xlu0 %1110 }
 0x19d   : > { %v1237_v21 = vpop.permute.xlu1 %1236 }
 0x19e   : > { %1634 = vrot.lane.b32.xlu0 %v653_v60, %s5248_s16  ;;  %v1834_v17 = vsel %vm1819_vm6, %v1801_v57, %v1237_v21 }
 0x19f   : > { %872 = vrot.lane.b32.xlu1 %v652_v44, %s5242_s25  ;;  %v1703_v44 = vsel %vm258_vm0, %v5878_v30, %v8793_v40 }
 0x1a0   : > { %v1619_v51 = vpop.permute.xlu0 %1618  ;;  %v1736_v61 = vsel %vm1720_vm3, %v1703_v44, %v6178_v1 }
 0x1a1   : > { %v6223_v49 = vpop.permute.xlu1 %856  ;;  %v1932_v11 = vsel %vm1918_vm9, %v1899_v50, %v1619_v51  ;;  %v1769_v33 = vsel %vm1753_vm4, %v1736_v61, %v6198_v38  ;;  %v8794_v50 = vld [vmem:[#allocation36_spill] sm:$0xff]  ;;  %v595_v61 = vld [vmem:[#allocation2 + $0x170] sm:$0xff] }
 0x1a2   : > { %1254 = vrot.lane.b32.xlu0 %v653_v60, %s5245_s7  ;;  %5110 = vmatmul.mubr.msk.f32.gmra.mrb[12].mxu0 %vm1957_vm10, %v1932_v11  ;;  %v1802_v39 = vsel %vm1786_vm5, %v1769_v33, %v1111_v18  ;;  %v624_v18 = vld [vmem:[#allocation2 + $0x151] sm:$0xff]  ;;  %v1704_v51 = vsel %vm258_vm0, %v5923_v63, %v8794_v50 }
 0x1a3   : > { %1380 = vrot.lane.b32.xlu1 %v6225_v56, %s5246_s12  ;;  %v1737_v11 = vsel %vm1720_vm3, %v1704_v51, %v6223_v49 }
 0x1a4   : > { %v1239_v12 = vpop.permute.xlu0 %1238 }
 0x1a5   : > { %v1365_v59 = vpop.permute.xlu1 %1364  ;;  %v1835_v5 = vsel %vm1819_vm6, %v1802_v39, %v1239_v12  ;;  %v625_v12 = vld [vmem:[#allocation2 + $0x159] sm:$0xff] }
 0x1a6   : > { %874 = vrot.lane.b32.xlu0 %v653_v60, %s5242_s25  ;;  %v1867_v32 = vsel %vm1852_vm7, %v1834_v17, %v1365_v59  ;;  %v656_v59 = vld [vmem:[#allocation2 + $0x152] sm:$0xff] }
 0x1a7   : > { %1000 = vrot.lane.b32.xlu1 %v6225_v56, %s5243_s26 }
 0x1a8   : > { %v6235_v34 = vpop.permute.xlu0 %858 }
 0x1a9   : > { %v6237_v47 = vpop.permute.xlu1 %984 }
 0x1aa   : > { %1382 = vrot.lane.b32.xlu0 %v591_v24, %s5246_s12 }
 0x1ab   : > { %1508 = vrot.lane.b32.xlu1 %v622_v7, %s5247_s15 }
 0x1ac   : > { %v1367_v22 = vpop.permute.xlu0 %1366 }
 0x1ad   : > { %v1493_v43 = vpop.permute.xlu1 %1492  ;;  %v1868_v30 = vsel %vm1852_vm7, %v1835_v5, %v1367_v22 }
 0x1ae   : > { %1002 = vrot.lane.b32.xlu0 %v591_v24, %s5243_s26  ;;  %v1900_v37 = vsel %vm1885_vm8, %v1867_v32, %v1493_v43  ;;  %v1770_v24 = vsel %vm1753_vm4, %v1737_v11, %v6237_v47  ;;  %v8795_v47 = vld [vmem:[#allocation37_spill] sm:$0xff] }
 0x1af   : > { %1128 = vrot.lane.b32.xlu1 %v622_v7, %s5244_s27 }
 0x1b0   : > { %v6250_v28 = vpop.permute.xlu0 %986 }
 0x1b1   : > { %v1113_v4 = vpop.permute.xlu1 %1112 }
 0x1b2   : > { %1510 = vrot.lane.b32.xlu0 %v623_v36, %s5247_s15  ;;  %v1803_v43 = vsel %vm1786_vm5, %v1770_v24, %v1113_v4  ;;  %v659_v24 = vld [vmem:[#allocation2 + $0x172] sm:$0xff] }
 0x1b3   : > { %1636 = vrot.lane.b32.xlu1 %v654_v45, %s5248_s16 }
 0x1b4   : > { %v1495_v41 = vpop.permute.xlu0 %1494 }
 0x1b5   : > { %v1621_v10 = vpop.permute.xlu1 %1620  ;;  %v1901_v1 = vsel %vm1885_vm8, %v1868_v30, %v1495_v41  ;;  %v594_v41 = vld [vmem:[#allocation2 + $0x168] sm:$0xff] }
 0x1b6   : > { %v1933_v16 = vsel %vm1918_vm9, %v1900_v37, %v1621_v10  ;;  %1130 = vrot.lane.b32.xlu0 %v623_v36, %s5244_s27  ;;  %v1705_v36 = vsel %vm258_vm0, %v5941_v23, %v8795_v47 }
 0x1b7   : > { %1256 = vrot.lane.b32.xlu1 %v654_v45, %s5245_s7  ;;  %5112 = vmatprep.mubr.msk.f32.mxu0 %vm1957_vm10, %v1933_v16 }
 0x1b8   : > { %v1115_v14 = vpop.permute.xlu0 %1114 }
 0x1b9   : > { %v1241_v0 = vpop.permute.xlu1 %1240 }
 0x1ba   : > { %1638 = vrot.lane.b32.xlu0 %v655_v6, %s5248_s16  ;;  %v1836_v25 = vsel %vm1819_vm6, %v1803_v43, %v1241_v0 }
 0x1bb   : > { %876 = vrot.lane.b32.xlu1 %v654_v45, %s5242_s25  ;;  %v1738_v45 = vsel %vm1720_vm3, %v1705_v36, %v6235_v34 }
 0x1bc   : > { %v1623_v58 = vpop.permute.xlu0 %1622  ;;  %v1771_v4 = vsel %vm1753_vm4, %v1738_v45, %v6250_v28 }
 0x1bd   : > { %v6275_v42 = vpop.permute.xlu1 %860  ;;  %v1934_v38 = vsel %vm1918_vm9, %v1901_v1, %v1623_v58  ;;  %v1804_v32 = vsel %vm1786_vm5, %v1771_v4, %v1115_v14  ;;  %v597_v4 = vld [vmem:[#allocation2 + $0x188] sm:$0xff] }
 0x1be   : > { %1258 = vrot.lane.b32.xlu0 %v655_v6, %s5245_s7  ;;  %5113 = vmatmul.mubr.msk.f32.gmra.mrb[14].mxu0 %vm1957_vm10, %v1934_v38  ;;  %v627_v38 = vld [vmem:[#allocation2 + $0x171] sm:$0xff] }
 0x1bf   : > { %1384 = vrot.lane.b32.xlu1 %v592_v13, %s5246_s12 }
 0x1c0   : > { %v1243_v55 = vpop.permute.xlu0 %1242 }
 0x1c1   : > { %v1369_v60 = vpop.permute.xlu1 %1368  ;;  %v1837_v37 = vsel %vm1819_vm6, %v1804_v32, %v1243_v55  ;;  %v658_v55 = vld [vmem:[#allocation2 + $0x16a] sm:$0xff] }
 0x1c2   : > { %878 = vrot.lane.b32.xlu0 %v655_v6, %s5242_s25  ;;  %v1869_v63 = vsel %vm1852_vm7, %v1836_v25, %v1369_v60  ;;  %v626_v6 = vld [vmem:[#allocation2 + $0x169] sm:$0xff] }
 0x1c3   : > { %1004 = vrot.lane.b32.xlu1 %v592_v13, %s5243_s26  ;;  %v8796_v13 = vld [vmem:[#allocation38_spill] sm:$0xff] }
 0x1c4   : > { %v6283_v21 = vpop.permute.xlu0 %862  ;;  %v1706_v1 = vsel %vm258_vm0, %v5976_v15, %v8796_v13 }
 0x1c5   : > { %v6285_v9 = vpop.permute.xlu1 %988  ;;  %v1739_v58 = vsel %vm1720_vm3, %v1706_v1, %v6275_v42 }
 0x1c6   : > { %1386 = vrot.lane.b32.xlu0 %v593_v46, %s5246_s12  ;;  %v1772_v60 = vsel %vm1753_vm4, %v1739_v58, %v6285_v9  ;;  %v8797_v9 = vld [vmem:[#allocation39_spill] sm:$0xff] }
 0x1c7   : > { %1512 = vrot.lane.b32.xlu1 %v624_v18, %s5247_s15 }
 0x1c8   : > { %v1371_v35 = vpop.permute.xlu0 %1370 }
 0x1c9   : > { %v1497_v31 = vpop.permute.xlu1 %1496  ;;  %v1870_v23 = vsel %vm1852_vm7, %v1837_v37, %v1371_v35 }
 0x1ca   : > { %1006 = vrot.lane.b32.xlu0 %v593_v46, %s5243_s26  ;;  %v1902_v49 = vsel %vm1885_vm8, %v1869_v63, %v1497_v31 }
 0x1cb   : > { %1132 = vrot.lane.b32.xlu1 %v624_v18, %s5244_s27 }
 0x1cc   : > { %v6298_v7 = vpop.permute.xlu0 %990 }
 0x1cd   : > { %v1117_v22 = vpop.permute.xlu1 %1116 }
 0x1ce   : > { %1514 = vrot.lane.b32.xlu0 %v625_v12, %s5247_s15  ;;  %v1805_v35 = vsel %vm1786_vm5, %v1772_v60, %v1117_v22  ;;  %v661_v60 = vld [vmem:[#allocation2 + $0x18a] sm:$0xff] }
 0x1cf   : > { %1640 = vrot.lane.b32.xlu1 %v656_v59, %s5248_s16 }
 0x1d0   : > { %v1499_v19 = vpop.permute.xlu0 %1498 }
 0x1d1   : > { %v1625_v3 = vpop.permute.xlu1 %1624  ;;  %v1903_v34 = vsel %vm1885_vm8, %v1870_v23, %v1499_v19  ;;  %v596_v19 = vld [vmem:[#allocation2 + $0x180] sm:$0xff] }
 0x1d2   : > { %v1935_v8 = vsel %vm1918_vm9, %v1902_v49, %v1625_v3  ;;  %1134 = vrot.lane.b32.xlu0 %v625_v12, %s5244_s27  ;;  %v1707_v12 = vsel %vm258_vm0, %v6003_v62, %v8797_v9 }
 0x1d3   : > { %1260 = vrot.lane.b32.xlu1 %v656_v59, %s5245_s7  ;;  %5115 = vmatprep.mubr.msk.f32.mxu0 %vm1957_vm10, %v1935_v8 }
 0x1d4   : > { %v1119_v57 = vpop.permute.xlu0 %1118 }
 0x1d5   : > { %v1245_v17 = vpop.permute.xlu1 %1244 }
 0x1d6   : > { %1642 = vrot.lane.b32.xlu0 %v657_v27, %s5248_s16  ;;  %v1838_v31 = vsel %vm1819_vm6, %v1805_v35, %v1245_v17 }
 0x1d7   : > { %880 = vrot.lane.b32.xlu1 %v656_v59, %s5242_s25  ;;  %v1740_v59 = vsel %vm1720_vm3, %v1707_v12, %v6283_v21 }
 0x1d8   : > { %v1627_v10 = vpop.permute.xlu0 %1626  ;;  %v1773_v22 = vsel %vm1753_vm4, %v1740_v59, %v6298_v7 }
 0x1d9   : > { %v6323_v16 = vpop.permute.xlu1 %864  ;;  %v1936_v28 = vsel %vm1918_vm9, %v1903_v34, %v1627_v10  ;;  %v1806_v63 = vsel %vm1786_vm5, %v1773_v22, %v1119_v57  ;;  %v628_v57 = vld [vmem:[#allocation2 + $0x181] sm:$0xff] }
 0x1da   : > { %1262 = vrot.lane.b32.xlu0 %v657_v27, %s5245_s7  ;;  %5116 = vmatmul.mubr.msk.f32.gmra.mrb[16].mxu0 %vm1957_vm10, %v1936_v28  ;;  %v629_v28 = vld [vmem:[#allocation2 + $0x189] sm:$0xff]  ;;  %v631_v22 = vld [vmem:[#allocation2 + $0x1a1] sm:$0xff] }
 0x1db   : > { %1388 = vrot.lane.b32.xlu1 %v594_v41, %s5246_s12 }
 0x1dc   : > { %v1247_v40 = vpop.permute.xlu0 %1246 }
 0x1dd   : > { %v1373_v44 = vpop.permute.xlu1 %1372  ;;  %v1839_v49 = vsel %vm1819_vm6, %v1806_v63, %v1247_v40  ;;  %v660_v40 = vld [vmem:[#allocation2 + $0x182] sm:$0xff]  ;;  %v662_v63 = vld [vmem:[#allocation2 + $0x19a] sm:$0xff] }
 0x1de   : > { %882 = vrot.lane.b32.xlu0 %v657_v27, %s5242_s25  ;;  %v1871_v15 = vsel %vm1852_vm7, %v1838_v31, %v1373_v44 }
 0x1df   : > { %1008 = vrot.lane.b32.xlu1 %v594_v41, %s5243_s26  ;;  %v8798_v41 = vld [vmem:[#allocation40_spill] sm:$0xff] }
 0x1e0   : > { %v6331_v33 = vpop.permute.xlu0 %866  ;;  %v1708_v34 = vsel %vm258_vm0, %v6033_v26, %v8798_v41 }
 0x1e1   : > { %v6333_v14 = vpop.permute.xlu1 %992  ;;  %v1741_v10 = vsel %vm1720_vm3, %v1708_v34, %v6323_v16 }
 0x1e2   : > { %v6335_v0 = vpop.f32.mrb[0].mxu0  ;;  %1390 = vrot.lane.b32.xlu0 %v595_v61, %s5246_s12  ;;  %v1774_v44 = vsel %vm1753_vm4, %v1741_v10, %v6333_v14  ;;  %v8799_v14 = vld [vmem:[#allocation41_spill] sm:$0xff] }
 0x1e3   : > { %1516 = vrot.lane.b32.xlu1 %v626_v6, %s5247_s15  ;;  %v6339_v39 = vpop.f32.mrb[1].mxu0 }
 0x1e4   : > { %v1375_v5 = vpop.permute.xlu0 %1374 }
 0x1e5   : > { %v1501_v30 = vpop.permute.xlu1 %1500  ;;  %v1872_v62 = vsel %vm1852_vm7, %v1839_v49, %v1375_v5  ;;  %v663_v49 = vld [vmem:[#allocation2 + $0x1a2] sm:$0xff] }
 0x1e6   : > { %1010 = vrot.lane.b32.xlu0 %v595_v61, %s5243_s26  ;;  %v1904_v42 = vsel %vm1885_vm8, %v1871_v15, %v1501_v30 }
 0x1e7   : > { %1136 = vrot.lane.b32.xlu1 %v626_v6, %s5244_s27 }
 0x1e8   : > { %v6350_v46 = vpop.permute.xlu0 %994 }
 0x1e9   : > { %v1121_v18 = vpop.permute.xlu1 %1120 }
 0x1ea   : > { %1518 = vrot.lane.b32.xlu0 %v627_v38, %s5247_s15  ;;  %v1807_v5 = vsel %vm1786_vm5, %v1774_v44, %v1121_v18  ;;  %v8801_v44 = vld [vmem:[#allocation43_spill] sm:$0xff] }
 0x1eb   : > { %1644 = vrot.lane.b32.xlu1 %v658_v55, %s5248_s16 }
 0x1ec   : > { %v1503_v50 = vpop.permute.xlu0 %1502 }
 0x1ed   : > { %v1629_v51 = vpop.permute.xlu1 %1628  ;;  %v1905_v21 = vsel %vm1885_vm8, %v1872_v62, %v1503_v50  ;;  %v598_v50 = vld [vmem:[#allocation2 + $0x198] sm:$0xff] }
 0x1ee   : > { %v1937_v11 = vsel %vm1918_vm9, %v1904_v42, %v1629_v51  ;;  %1138 = vrot.lane.b32.xlu0 %v627_v38, %s5244_s27  ;;  %v1709_v38 = vsel %vm258_vm0, %v6059_v20, %v8799_v14 }
 0x1ef   : > { %1264 = vrot.lane.b32.xlu1 %v658_v55, %s5245_s7  ;;  %5118 = vmatprep.mubr.msk.f32.mxu0 %vm1957_vm10, %v1937_v11 }
 0x1f0   : > { %v1123_v43 = vpop.permute.xlu0 %1122 }
 0x1f1   : > { %v1249_v25 = vpop.permute.xlu1 %1248 }
 0x1f2   : > { %1646 = vrot.lane.b32.xlu0 %v659_v24, %s5248_s16  ;;  %v1840_v30 = vsel %vm1819_vm6, %v1807_v5, %v1249_v25 }
 0x1f3   : > { %884 = vrot.lane.b32.xlu1 %v658_v55, %s5242_s25  ;;  %v1742_v55 = vsel %vm1720_vm3, %v1709_v38, %v6331_v33  ;;  %v599_v33 = vld [vmem:[#allocation2 + $0x1a0] sm:$0xff] }
 0x1f4   : > { %v1631_v3 = vpop.permute.xlu0 %1630  ;;  %v1775_v18 = vsel %vm1753_vm4, %v1742_v55, %v6350_v46 }
 0x1f5   : > { %v6375_v8 = vpop.permute.xlu1 %868  ;;  %v1938_v7 = vsel %vm1918_vm9, %v1905_v21, %v1631_v3  ;;  %v1808_v15 = vsel %vm1786_vm5, %v1775_v18, %v1123_v43 }
 0x1f6   : > { %1266 = vrot.lane.b32.xlu0 %v659_v24, %s5245_s7  ;;  %5119 = vmatmul.mubr.msk.f32.gmra.mrb[18].mxu0 %vm1957_vm10, %v1938_v7  ;;  %v8800_v7 = vld [vmem:[#allocation42_spill] sm:$0xff] }
 0x1f7   : > { %1392 = vrot.lane.b32.xlu1 %v596_v19, %s5246_s12 }
 0x1f8   : > { %v1251_v47 = vpop.permute.xlu0 %1250 }
 0x1f9   : > { %v1377_v36 = vpop.permute.xlu1 %1376  ;;  %v1841_v42 = vsel %vm1819_vm6, %v1808_v15, %v1251_v47  ;;  %v1710_v47 = vsel %vm258_vm0, %v6101_v48, %v8800_v7  ;;  %v8802_v15 = vld [vmem:[#allocation44_spill] sm:$0xff] }
 0x1fa   : > { %v6381_v45 = vpop.f32.mrb[2].mxu0  ;;  %886 = vrot.lane.b32.xlu0 %v659_v24, %s5242_s25  ;;  %v1873_v26 = vsel %vm1852_vm7, %v1840_v30, %v1377_v36  ;;  %v630_v24 = vld [vmem:[#allocation2 + $0x199] sm:$0xff]  ;;  %v1743_v36 = vsel %vm1720_vm3, %v1710_v47, %v6375_v8  ;;  %v1711_v8 = vsel %vm258_vm0, %v6119_v2, %v8801_v44  ;;  %v8804_v44 = vld [vmem:[#allocation46_spill] sm:$0xff] }
 0x1fb   : > { %1012 = vrot.lane.b32.xlu1 %v596_v19, %s5243_s26  ;;  %v6385_v27 = vpop.f32.mrb[3].mxu0 }
 0x1fc   : > { %v6387_v17 = vpop.permute.xlu0 %870 }
 0x1fd   : > { %v6389_v32 = vpop.permute.xlu1 %996 }
 0x1fe   : > { %1394 = vrot.lane.b32.xlu0 %v597_v4, %s5246_s12 }
 0x1ff   : > { %1520 = vrot.lane.b32.xlu1 %v628_v57, %s5247_s15 }
 0x200   : > { %v1379_v37 = vpop.permute.xlu0 %1378 }
 0x201   : > { %v1505_v23 = vpop.permute.xlu1 %1504  ;;  %v1874_v20 = vsel %vm1852_vm7, %v1841_v42, %v1379_v37  ;;  %v1712_v42 = vsel %vm258_vm0, %v6166_v54, %v8802_v15 }
 0x202   : > { %1014 = vrot.lane.b32.xlu0 %v597_v4, %s5243_s26  ;;  %v1906_v16 = vsel %vm1885_vm8, %v1873_v26, %v1505_v23  ;;  %v1776_v4 = vsel %vm1753_vm4, %v1743_v36, %v6389_v32  ;;  %v1744_v32 = vsel %vm1720_vm3, %v1711_v8, %v6387_v17  ;;  %v1714_v8 = vsel %vm258_vm0, %v6225_v56, %v8804_v44 }
 0x203   : > { %1140 = vrot.lane.b32.xlu1 %v628_v57, %s5244_s27 }
 0x204   : > { %v6402_v61 = vpop.permute.xlu0 %998 }
 0x205   : > { %v1125_v6 = vpop.permute.xlu1 %1124 }
 0x206   : > { %1522 = vrot.lane.b32.xlu0 %v629_v28, %s5247_s15  ;;  %v1809_v23 = vsel %vm1786_vm5, %v1776_v4, %v1125_v6  ;;  %v1777_v6 = vsel %vm1753_vm4, %v1744_v32, %v6402_v61 }
 0x207   : > { %1648 = vrot.lane.b32.xlu1 %v660_v40, %s5248_s16 }
 0x208   : > { %v1507_v13 = vpop.permute.xlu0 %1506 }
 0x209   : > { %v1633_v1 = vpop.permute.xlu1 %1632  ;;  %v1907_v51 = vsel %vm1885_vm8, %v1874_v20, %v1507_v13 }
 0x20a   : > { %v1939_v58 = vsel %vm1918_vm9, %v1906_v16, %v1633_v1  ;;  %1142 = vrot.lane.b32.xlu0 %v629_v28, %s5244_s27 }
 0x20b   : > { %1268 = vrot.lane.b32.xlu1 %v660_v40, %s5245_s7  ;;  %5121 = vmatprep.mubr.msk.f32.mxu0 %vm1957_vm10, %v1939_v58 }
 0x20c   : > { %v1127_v35 = vpop.permute.xlu0 %1126 }
 0x20d   : > { %v1253_v31 = vpop.permute.xlu1 %1252  ;;  %v1810_v26 = vsel %vm1786_vm5, %v1777_v6, %v1127_v35 }
 0x20e   : > { %1650 = vrot.lane.b32.xlu0 %v661_v60, %s5248_s16  ;;  %v1842_v41 = vsel %vm1819_vm6, %v1809_v23, %v1253_v31 }
 0x20f   : > { %1270 = vrot.lane.b32.xlu1 %v661_v60, %s5245_s7 }
 0x210   : > { %v1635_v11 = vpop.permute.xlu0 %1634 }
 0x211   : > { %v873_v9 = vpop.permute.xlu1 %872  ;;  %v1940_v46 = vsel %vm1918_vm9, %v1907_v51, %v1635_v11 }
 0x212   : > { %v6428_v12 = vpop.f32.mrb[4].mxu0  ;;  %1396 = vrot.lane.b32.xlu0 %v598_v50, %s5246_s12  ;;  %5122 = vmatmul.mubr.msk.f32.gmra.mrb[20].mxu0 %vm1957_vm10, %v1940_v46  ;;  %v1745_v20 = vsel %vm1720_vm3, %v1712_v42, %v873_v9 }
 0x213   : > { %1398 = vrot.lane.b32.xlu1 %v599_v33, %s5246_s12  ;;  %v6432_v59 = vpop.f32.mrb[5].mxu0 }
 0x214   : > { %v1255_v43 = vpop.permute.xlu0 %1254 }
 0x215   : > { %v1381_v25 = vpop.permute.xlu1 %1380  ;;  %v1843_v16 = vsel %vm1819_vm6, %v1810_v26, %v1255_v43 }
 0x216   : > { %1524 = vrot.lane.b32.xlu0 %v630_v24, %s5247_s15  ;;  %v1875_v34 = vsel %vm1852_vm7, %v1842_v41, %v1381_v25 }
 0x217   : > { %1526 = vrot.lane.b32.xlu1 %v631_v22, %s5247_s15 }
 0x218   : > { %v875_v62 = vpop.permute.xlu0 %874 }
 0x219   : > { %v1001_v19 = vpop.permute.xlu1 %1000 }
 0x21a   : > { %1652 = vrot.lane.b32.xlu0 %v662_v63, %s5248_s16  ;;  %v1778_v50 = vsel %vm1753_vm4, %v1745_v20, %v1001_v19 }
 0x21b   : > { %1654 = vrot.lane.b32.xlu1 %v663_v49, %s5248_s16  ;;  %v8803_v49 = vld [vmem:[#allocation45_spill] sm:$0xff] }
 0x21c   : > { %v1383_v21 = vpop.permute.xlu0 %1382  ;;  %v1713_v54 = vsel %vm258_vm0, %v6182_v53, %v8803_v49  ;;  %v403_v49 = vld [vmem:[#allocation2 + $0x150] sm:$0xff] }
 0x21d   : > { %v1509_v3 = vpop.permute.xlu1 %1508  ;;  %v1876_v1 = vsel %vm1852_vm7, %v1843_v16, %v1383_v21  ;;  %v1746_v19 = vsel %vm1720_vm3, %v1713_v54, %v875_v62 }
 0x21e   : > { %v1908_v10 = vsel %vm1885_vm8, %v1875_v34, %v1509_v3 }
 0x220   : > { %v1003_v57 = vpop.permute.xlu0 %1002 }
 0x221   : > { %v1129_v37 = vpop.permute.xlu1 %1128  ;;  %v1779_v3 = vsel %vm1753_vm4, %v1746_v19, %v1003_v57 }
 0x222   : > { %v1811_v11 = vsel %vm1786_vm5, %v1778_v50, %v1129_v37 }
 0x224   : > { %v1511_v28 = vpop.permute.xlu0 %1510 }
 0x225   : > { %v1637_v40 = vpop.permute.xlu1 %1636  ;;  %v1909_v2 = vsel %vm1885_vm8, %v1876_v1, %v1511_v28 }
 0x226   : > { %v1941_v48 = vsel %vm1918_vm9, %v1908_v10, %v1637_v40 }
 0x227   : > { %5124 = vmatprep.mubr.msk.f32.mxu0 %vm1957_vm10, %v1941_v48 }
 0x228   : > { %v1131_v5 = vpop.permute.xlu0 %1130 }
 0x229   : > { %v1257_v30 = vpop.permute.xlu1 %1256  ;;  %v1812_v36 = vsel %vm1786_vm5, %v1779_v3, %v1131_v5  ;;  %v8806_v3 = vld [vmem:[#allocation48_spill] sm:$0xff] }
 0x22a   : > { %v6461_v13 = vpop.f32.mrb[6].mxu0  ;;  %v1844_v46 = vsel %vm1819_vm6, %v1811_v11, %v1257_v30 }
 0x22b   : > { %v6464_v58 = vpop.f32.mrb[7].mxu0 }
 0x22c   : > { %v1639_v14 = vpop.permute.xlu0 %1638 }
 0x22d   : > { %v877_v38 = vpop.permute.xlu1 %876  ;;  %v1942_v17 = vsel %vm1918_vm9, %v1909_v2, %v1639_v14  ;;  %v402_v2 = vld [vmem:[#allocation2 + $0x140] sm:$0xff] }
 0x22e   : > { %5125 = vmatmul.mubr.msk.f32.gmra.mrb[22].mxu0 %vm1957_vm10, %v1942_v17  ;;  %v1747_v32 = vsel %vm1720_vm3, %v1714_v8, %v877_v38 }
 0x230   : > { %v1259_v61 = vpop.permute.xlu0 %1258 }
 0x231   : > { %v1385_v55 = vpop.permute.xlu1 %1384  ;;  %v1845_v4 = vsel %vm1819_vm6, %v1812_v36, %v1259_v61 }
 0x232   : > { %v1877_v24 = vsel %vm1852_vm7, %v1844_v46, %v1385_v55 }
 0x234   : > { %v879_v60 = vpop.permute.xlu0 %878 }
 0x235   : > { %v1005_v18 = vpop.permute.xlu1 %1004 }
 0x236   : > { %v1780_v6 = vsel %vm1753_vm4, %v1747_v32, %v1005_v18  ;;  %v8805_v18 = vld [vmem:[#allocation47_spill] sm:$0xff] }
 0x238   : > { %v1387_v35 = vpop.permute.xlu0 %1386 }
 0x239   : > { %v1513_v31 = vpop.permute.xlu1 %1512  ;;  %v1878_v37 = vsel %vm1852_vm7, %v1845_v4, %v1387_v35  ;;  %v1715_v35 = vsel %vm258_vm0, %v402_v2, %v8805_v18 }
 0x23a   : > { %v1910_v22 = vsel %vm1885_vm8, %v1877_v24, %v1513_v31  ;;  %v1748_v31 = vsel %vm1720_vm3, %v1715_v35, %v879_v60  ;;  %v405_v35 = vld [vmem:[#allocation2 + $0x168] sm:$0xff] }
 0x23c   : > { %v1007_v33 = vpop.permute.xlu0 %1006 }
 0x23d   : > { %v1133_v51 = vpop.permute.xlu1 %1132  ;;  %v1781_v15 = vsel %vm1753_vm4, %v1748_v31, %v1007_v33 }
 0x23e   : > { %v1813_v26 = vsel %vm1786_vm5, %v1780_v6, %v1133_v51 }
 0x240   : > { %v1515_v43 = vpop.permute.xlu0 %1514 }
 0x241   : > { %v1641_v25 = vpop.permute.xlu1 %1640  ;;  %v1911_v53 = vsel %vm1885_vm8, %v1878_v37, %v1515_v43 }
 0x242   : > { %v1943_v63 = vsel %vm1918_vm9, %v1910_v22, %v1641_v25  ;;  %v6482_v9 = vpop.f32.mrb[8].mxu0 }
 0x243   : > { %5127 = vmatprep.mubr.msk.f32.mxu0 %vm1957_vm10, %v1943_v63  ;;  %v6486_v21 = vpop.f32.mrb[9].mxu0 }
 0x244   : > { %v1135_v7 = vpop.permute.xlu0 %1134 }
 0x245   : > { %v1261_v47 = vpop.permute.xlu1 %1260  ;;  %v1814_v50 = vsel %vm1786_vm5, %v1781_v15, %v1135_v7  ;;  %v1716_v7 = vsel %vm258_vm0, %v403_v49, %v8806_v3  ;;  %v8808_v15 = vld [vmem:[#allocation50_spill] sm:$0xff] }
 0x246   : > { %v1846_v16 = vsel %vm1819_vm6, %v1813_v26, %v1261_v47 }
 0x248   : > { %v1643_v23 = vpop.permute.xlu0 %1642 }
 0x249   : > { %v881_v41 = vpop.permute.xlu1 %880  ;;  %v1944_v34 = vsel %vm1918_vm9, %v1911_v53, %v1643_v23 }
 0x24a   : > { %5128 = vmatmul.mubr.msk.f32.gmra.mrb[24].mxu0 %vm1957_vm10, %v1944_v34  ;;  %v1749_v47 = vsel %vm1720_vm3, %v1716_v7, %v881_v41 }
 0x24c   : > { %v1263_v62 = vpop.permute.xlu0 %1262 }
 0x24d   : > { %v1389_v10 = vpop.permute.xlu1 %1388  ;;  %v1847_v51 = vsel %vm1819_vm6, %v1814_v50, %v1263_v62  ;;  %v404_v62 = vld [vmem:[#allocation2 + $0x158] sm:$0xff] }
 0x24e   : > { %v1879_v14 = vsel %vm1852_vm7, %v1846_v16, %v1389_v10 }
 0x250   : > { %v883_v28 = vpop.permute.xlu0 %882 }
 0x251   : > { %v1009_v57 = vpop.permute.xlu1 %1008 }
 0x252   : > { %v1782_v36 = vsel %vm1753_vm4, %v1749_v47, %v1009_v57  ;;  %v8807_v57 = vld [vmem:[#allocation49_spill] sm:$0xff] }
 0x253   : > { %v1717_v32 = vsel %vm258_vm0, %v404_v62, %v8807_v57 }
 0x254   : > { %v1391_v40 = vpop.permute.xlu0 %1390  ;;  %v1750_v6 = vsel %vm1720_vm3, %v1717_v32, %v883_v28  ;;  %v406_v28 = vld [vmem:[#allocation2 + $0x170] sm:$0xff] }
 0x255   : > { %v1517_v48 = vpop.permute.xlu1 %1516  ;;  %v1880_v11 = vsel %vm1852_vm7, %v1847_v51, %v1391_v40 }
 0x256   : > { %v1912_v61 = vsel %vm1885_vm8, %v1879_v14, %v1517_v48 }
 0x258   : > { %v1011_v5 = vpop.permute.xlu0 %1010 }
 0x259   : > { %v1137_v30 = vpop.permute.xlu1 %1136 }
 0x25a   : > { %v6502_v1 = vpop.f32.mrb[10].mxu0  ;;  %v1815_v53 = vsel %vm1786_vm5, %v1782_v36, %v1137_v30  ;;  %v1783_v30 = vsel %vm1753_vm4, %v1750_v6, %v1011_v5 }
 0x25b   : > { %v6505_v17 = vpop.f32.mrb[11].mxu0 }
 0x25c   : > { %v1519_v56 = vpop.permute.xlu0 %1518 }
 0x25d   : > { %v1645_v55 = vpop.permute.xlu1 %1644  ;;  %v1913_v46 = vsel %vm1885_vm8, %v1880_v11, %v1519_v56 }
 0x25e   : > { %v1945_v38 = vsel %vm1918_vm9, %v1912_v61, %v1645_v55 }
 0x25f   : > { %5130 = vmatprep.mubr.msk.f32.mxu0 %vm1957_vm10, %v1945_v38 }
 0x260   : > { %v1139_v42 = vpop.permute.xlu0 %1138 }
 0x261   : > { %v1265_v20 = vpop.permute.xlu1 %1264  ;;  %v1816_v2 = vsel %vm1786_vm5, %v1783_v30, %v1139_v42  ;;  %v8809_v42 = vld [vmem:[#allocation51_spill] sm:$0xff] }
 0x262   : > { %v1848_v23 = vsel %vm1819_vm6, %v1815_v53, %v1265_v20  ;;  %v1718_v20 = vsel %vm258_vm0, %v405_v35, %v8808_v15  ;;  %v1719_v50 = vsel %vm258_vm0, %v406_v28, %v8809_v42 }
 0x264   : > { %v1647_v24 = vpop.permute.xlu0 %1646 }
 0x265   : > { %v885_v22 = vpop.permute.xlu1 %884  ;;  %v1946_v43 = vsel %vm1918_vm9, %v1913_v46, %v1647_v24 }
 0x266   : > { %5131 = vmatmul.mubr.msk.f32.gmra.mrb[26].mxu0 %vm1957_vm10, %v1946_v43  ;;  %v1751_v51 = vsel %vm1720_vm3, %v1718_v20, %v885_v22 }
 0x268   : > { %v1267_v25 = vpop.permute.xlu0 %1266 }
 0x269   : > { %v1393_v60 = vpop.permute.xlu1 %1392  ;;  %v1849_v14 = vsel %vm1819_vm6, %v1816_v2, %v1267_v25 }
 0x26a   : > { %v1881_v10 = vsel %vm1852_vm7, %v1848_v23, %v1393_v60 }
 0x26c   : > { %v887_v63 = vpop.permute.xlu0 %886 }
 0x26d   : > { %v1013_v33 = vpop.permute.xlu1 %1012  ;;  %v1752_v11 = vsel %vm1720_vm3, %v1719_v50, %v887_v63 }
 0x26e   : > { %v1784_v46 = vsel %vm1753_vm4, %v1751_v51, %v1013_v33 }
 0x270   : > { %v1395_v54 = vpop.permute.xlu0 %1394 }
 0x271   : > { %v1521_v19 = vpop.permute.xlu1 %1520  ;;  %v1882_v61 = vsel %vm1852_vm7, %v1849_v14, %v1395_v54 }
 0x272   : > { %v1914_v48 = vsel %vm1885_vm8, %v1881_v10, %v1521_v19 }
 0x274   : > { %v1015_v4 = vpop.permute.xlu0 %1014 }
 0x275   : > { %v1141_v37 = vpop.permute.xlu1 %1140  ;;  %v6526_v34 = vpop.f32.mrb[12].mxu0  ;;  %v1785_v24 = vsel %vm1753_vm4, %v1752_v11, %v1015_v4 }
 0x276   : > { %v6529_v40 = vpop.f32.mrb[13].mxu0  ;;  %v1817_v60 = vsel %vm1786_vm5, %v1784_v46, %v1141_v37 }
 0x278   : > { %v1523_v44 = vpop.permute.xlu0 %1522 }
 0x279   : > { %v1649_v8 = vpop.permute.xlu1 %1648  ;;  %v1915_v56 = vsel %vm1885_vm8, %v1882_v61, %v1523_v44 }
 0x27a   : > { %v1947_v41 = vsel %vm1918_vm9, %v1914_v48, %v1649_v8 }
 0x27b   : > { %5133 = vmatprep.mubr.msk.f32.mxu0 %vm1957_vm10, %v1947_v41  ;;  %v6573_v41 = vld [vmem:[%s8704_s2] ss:$0 sm:$0xff] }
 0x27c   : > { %v1143_v26 = vpop.permute.xlu0 %1142  ;;  %v6581_v6 = vadd.f32 %v6335_v0, %v6573_v41  ;;  %v6585_v30 = vadd.f32 %v6573_v41, %v6339_v39  ;;  %v6599_v0 = vadd.f32 %v6381_v45, %v6573_v41  ;;  %v6603_v39 = vadd.f32 %v6573_v41, %v6432_v59 }
 0x27d   : > { %v1269_v16 = vpop.permute.xlu1 %1268  ;;  %v1818_v49 = vsel %vm1786_vm5, %v1785_v24, %v1143_v26  ;;  %v6589_v26 = vadd.f32 %v6573_v41, %v6385_v27  ;;  %v6615_v45 = vadd.f32 %v6573_v41, %v6464_v58  ;;  %v6635_v50 = vadd.f32 %v6482_v9, %v6573_v41 }
 0x27e   : > { %v1850_v54 = vsel %vm1819_vm6, %v1817_v60, %v1269_v16  ;;  %v2284_v16 = vsel %vm258_vm0, %v6581_v6, 0.0  ;;  %v2283_v2 = vsel %vm258_vm0, %v6585_v30, 0.0  ;;  %v6651_v9 = vadd.f32 %v6573_v41, %v6529_v40 }
 0x27f   : > { %v2286_v14 = vsel %vm258_vm0, %v6589_v26, 0.0  ;;  %v2285_v61 = vadd.f32 %v2284_v16, %v2283_v2  ;;  %v2294_v28 = vsel %vm258_vm0, %v6615_v45, 0.0  ;;  %v2300_v46 = vsel %vm258_vm0, %v6635_v50, 0.0 }
 0x280   : > { %v1651_v55 = vpop.permute.xlu0 %1650 }
 0x281   : > { %v1271_v38 = vpop.permute.xlu1 %1270  ;;  %v1948_v18 = vsel %vm1918_vm9, %v1915_v56, %v1651_v55  ;;  %v2287_v27 = vadd.f32 %v2286_v14, %v2285_v61  ;;  %v2288_v56 = vsel %vm258_vm0, %v6599_v0, 0.0  ;;  %v2290_v55 = vsel %vm258_vm0, %v6603_v39, 0.0 }
 0x282   : > { %5134 = vmatmul.mubr.msk.f32.gmra.mrb[28].mxu0 %vm1957_vm10, %v1948_v18  ;;  %v1851_v19 = vsel %vm1819_vm6, %v1818_v49, %v1271_v38  ;;  %v6611_v18 = vadd.f32 %v6428_v12, %v6573_v41  ;;  %v6627_v12 = vadd.f32 %v6573_v41, %v6486_v21  ;;  %v2306_v49 = vsel %vm258_vm0, %v6651_v9, 0.0 }
 0x283   : > { %v2289_v38 = vadd.f32 %v2288_v56, %v2287_v27 }
 0x284   : > { %v1397_v31 = vpop.permute.xlu0 %1396  ;;  %v2292_v59 = vsel %vm258_vm0, %v6611_v18, 0.0  ;;  %v2298_v20 = vsel %vm258_vm0, %v6627_v12, 0.0 }
 0x285   : > { %v1399_v5 = vpop.permute.xlu1 %1398  ;;  %v1883_v3 = vsel %vm1852_vm7, %v1850_v54, %v1397_v31  ;;  %v2291_v35 = vadd.f32 %v2290_v55, %v2289_v38 }
 0x286   : > { %v1884_v22 = vsel %vm1852_vm7, %v1851_v19, %v1399_v5  ;;  %v6623_v5 = vadd.f32 %v6461_v13, %v6573_v41  ;;  %v6639_v13 = vadd.f32 %v6573_v41, %v6505_v17  ;;  %v6659_v19 = vadd.f32 %v6526_v34, %v6573_v41 }
 0x287   : > { %v2293_v31 = vadd.f32 %v2292_v59, %v2291_v35 }
 0x288   : > { %v1525_v43 = vpop.permute.xlu0 %1524  ;;  %v2296_v58 = vsel %vm258_vm0, %v6623_v5, 0.0  ;;  %v2302_v24 = vsel %vm258_vm0, %v6639_v13, 0.0  ;;  %v2308_v40 = vsel %vm258_vm0, %v6659_v19, 0.0 }
 0x289   : > { %v1527_v25 = vpop.permute.xlu1 %1526  ;;  %v1916_v63 = vsel %vm1885_vm8, %v1883_v3, %v1525_v43  ;;  %v2295_v15 = vadd.f32 %v2294_v28, %v2293_v31 }
 0x28a   : > { %v1917_v33 = vsel %vm1885_vm8, %v1884_v22, %v1527_v25  ;;  %v6647_v25 = vadd.f32 %v6502_v1, %v6573_v41 }
 0x28b   : > { %v2297_v42 = vadd.f32 %v2296_v58, %v2295_v15 }
 0x28c   : > { %v1653_v7 = vpop.permute.xlu0 %1652  ;;  %v2304_v60 = vsel %vm258_vm0, %v6647_v25, 0.0 }
 0x28d   : > { %v1655_v47 = vpop.permute.xlu1 %1654  ;;  %v1949_v36 = vsel %vm1918_vm9, %v1916_v63, %v1653_v7  ;;  %v2299_v11 = vadd.f32 %v2298_v20, %v2297_v42 }
 0x28e   : > { %v1950_v4 = vsel %vm1918_vm9, %v1917_v33, %v1655_v47  ;;  %5136 = vmatprep.mubr.msk.f32.mxu0 %vm1957_vm10, %v1949_v36 }
 0x28f   : > { %5137 = vmatmul.mubr.msk.f32.gmra.mrb[30].mxu0 %vm1957_vm10, %v1950_v4  ;;  %v2301_v43 = vadd.f32 %v2300_v46, %v2299_v11 }
 0x291   : > { %v5114_v37 = vpop.f32.mrb[14].mxu0  ;;  %v2303_v17 = vadd.f32 %v2302_v24, %v2301_v43 }
 0x292   : > { %v2194_v53 = vpop.f32.mrb[15].mxu0  ;;  %v6669_v33 = vadd.f32 %v5114_v37, %v6573_v41 }
 0x293   : > { %v2305_v54 = vadd.f32 %v2304_v60, %v2303_v17  ;;  %v6662_v3 = vadd.f32 %v6573_v41, %v2194_v53 }
 0x294   : > { %v2312_v34 = vsel %vm258_vm0, %v6669_v33, 0.0 }
 0x295   : > { %v2307_v1 = vadd.f32 %v2306_v49, %v2305_v54  ;;  %v2310_v22 = vsel %vm258_vm0, %v6662_v3, 0.0 }
 0x297   : > { %v2309_v63 = vadd.f32 %v2308_v40, %v2307_v1 }
 0x299   : > { %v2311_v47 = vadd.f32 %v2310_v22, %v2309_v63 }
 0x29b   : > { %v2313_v4 = vadd.f32 %v2312_v34, %v2311_v47 }
 0x2ad   : > { %v5117_v23 = vpop.f32.mrb[16].mxu0 }
 0x2ae   : > { %v2204_v62 = vpop.f32.mrb[17].mxu0  ;;  %v6679_v53 = vadd.f32 %v5117_v23, %v6573_v41 }
 0x2af   : > { %v6672_v7 = vadd.f32 %v6573_v41, %v2204_v62 }
 0x2b0   : > { %v2316_v37 = vsel %vm258_vm0, %v6679_v53, 0.0 }
 0x2b1   : > { %v2314_v36 = vsel %vm258_vm0, %v6672_v7, 0.0 }
 0x2b2   : > { %v2315_v2 = vadd.f32 %v2314_v36, %v2313_v4 }
 0x2b4   : > { %v2317_v61 = vadd.f32 %v2316_v37, %v2315_v2 }
 0x2c9   : > { %v6564_v10 = vpop.f32.mrb[18].mxu0 }
 0x2ca   : > { %v2214_v48 = vpop.f32.mrb[19].mxu0  ;;  %v6690_v56 = vadd.f32 %v6564_v10, %v6573_v41 }
 0x2cb   : > { %v6682_v16 = vadd.f32 %v6573_v41, %v2214_v48 }
 0x2cc   : > { %v2320_v55 = vsel %vm258_vm0, %v6690_v56, 0.0 }
 0x2cd   : > { %v2318_v62 = vsel %vm258_vm0, %v6682_v16, 0.0 }
 0x2ce   : > { %v2319_v48 = vadd.f32 %v2318_v62, %v2317_v61 }
 0x2d0   : > { %v2321_v35 = vadd.f32 %v2320_v55, %v2319_v48 }
 0x2e5   : > { %v6566_v44 = vpop.f32.mrb[20].mxu0 }
 0x2e6   : > { %v6568_v8 = vpop.f32.mrb[21].mxu0  ;;  %v6702_v59 = vadd.f32 %v6566_v44, %v6573_v41 }
 0x2e7   : > { %v6694_v23 = vadd.f32 %v6573_v41, %v6568_v8 }
 0x2e8   : > { %v2324_v8 = vsel %vm258_vm0, %v6702_v59, 0.0 }
 0x2e9   : > { %v2322_v38 = vsel %vm258_vm0, %v6694_v23, 0.0 }
 0x2ea   : > { %v2323_v28 = vadd.f32 %v2322_v38, %v2321_v35 }
 0x2ec   : > { %v2325_v15 = vadd.f32 %v2324_v8, %v2323_v28 }
 0x301   : > { %v6575_v57 = vpop.f32.mrb[22].mxu0 }
 0x302   : > { %v6577_v32 = vpop.f32.mrb[23].mxu0  ;;  %v6714_v58 = vadd.f32 %v6575_v57, %v6573_v41 }
 0x303   : > { %v6706_v10 = vadd.f32 %v6573_v41, %v6577_v32 }
 0x304   : > { %v2328_v32 = vsel %vm258_vm0, %v6714_v58, 0.0 }
 0x305   : > { %v2326_v31 = vsel %vm258_vm0, %v6706_v10, 0.0 }
 0x306   : > { %v2327_v44 = vadd.f32 %v2326_v31, %v2325_v15 }
 0x308   : > { %v2329_v11 = vadd.f32 %v2328_v32, %v2327_v44 }
 0x31d   : > { %v5129_v51 = vpop.f32.mrb[24].mxu0 }
 0x31e   : > { %v2244_v21 = vpop.f32.mrb[25].mxu0  ;;  %v6724_v46 = vadd.f32 %v5129_v51, %v6573_v41 }
 0x31f   : > { %v6717_v20 = vadd.f32 %v6573_v41, %v2244_v21 }
 0x320   : > { %v2332_v57 = vsel %vm258_vm0, %v6724_v46, 0.0 }
 0x321   : > { %v2330_v42 = vsel %vm258_vm0, %v6717_v20, 0.0 }
 0x322   : > { %v2331_v43 = vadd.f32 %v2330_v42, %v2329_v11 }
 0x324   : > { %v2333_v17 = vadd.f32 %v2332_v57, %v2331_v43 }
 0x339   : > { %v5132_v14 = vpop.f32.mrb[26].mxu0 }
 0x33a   : > { %v2254_v27 = vpop.f32.mrb[27].mxu0  ;;  %v6734_v60 = vadd.f32 %v5132_v14, %v6573_v41 }
 0x33b   : > { %v6727_v24 = vadd.f32 %v6573_v41, %v2254_v27 }
 0x33c   : > { %v2336_v51 = vsel %vm258_vm0, %v6734_v60, 0.0 }
 0x33d   : > { %v2334_v21 = vsel %vm258_vm0, %v6727_v24, 0.0 }
 0x33e   : > { %v2335_v49 = vadd.f32 %v2334_v21, %v2333_v17 }
 0x340   : > { %v2337_v63 = vadd.f32 %v2336_v51, %v2335_v49 }
 0x355   : > { %v5135_v54 = vpop.f32.mrb[28].mxu0 }
 0x356   : > { %v2264_v1 = vpop.f32.mrb[29].mxu0  ;;  %v2270_v40 = vadd.f32 %v5135_v54, %v6573_v41 }
 0x357   : > { %v2265_v22 = vadd.f32 %v6573_v41, %v2264_v1 }
 0x358   : > { %v2340_v36 = vsel %vm258_vm0, %v2270_v40, 0.0 }
 0x359   : > { %v2338_v47 = vsel %vm258_vm0, %v2265_v22, 0.0 }
 0x35a   : > { %v2339_v34 = vadd.f32 %v2338_v47, %v2337_v63 }
 0x35c   : > { %v2341_v4 = vadd.f32 %v2340_v36, %v2339_v34 }
 0x362   : > { %v5138_v2 = vpop.f32.mrb[30].mxu0 }
 0x363   : > { %v2274_v37 = vpop.f32.mrb[31].mxu0  ;;  %v2280_v62 = vadd.f32 %v5138_v2, %v6573_v41 }
 0x364   : > { %v2275_v14 = vadd.f32 %v6573_v41, %v2274_v37 }
 0x365   : > { %v2344_v48 = vsel %vm258_vm0, %v2280_v62, 0.0 }
 0x366   : > { %v2342_v61 = vsel %vm258_vm0, %v2275_v14, 0.0 }
 0x367   : > { %v2343_v27 = vadd.f32 %v2342_v61, %v2341_v4 }
 0x369   : > { %v2345_v55 = vadd.f32 %v2344_v48, %v2343_v27 }
 0x36b   : > { %v2346_v38 = vrot.slane %v2345_v55, 4 }
 0x36d   : > { %v2347_v35 = vadd.f32 %v2346_v38, %v2345_v55 }
 0x36f   : > { %v2348_v28 = vrot.slane %v2347_v35, 2 }
 0x371   : > { %v2349_v8 = vadd.f32 %v2348_v28, %v2347_v35 }
 0x373   : > { %v2350_v31 = vrot.slane %v2349_v8, 1 }
 0x375   : > { %v2351_v15 = vadd.f32 %v2350_v31, %v2349_v8 }
 0x377   : > { %v6746_v44 = vmul.f32 0.00390625, %v2351_v15 }
 0x379   : > { %v6749_v32 = vsub.f32 %v2265_v22, %v6746_v44  ;;  %v6752_v42 = vsub.f32 %v2270_v40, %v6746_v44  ;;  %v6755_v41 = vsub.f32 %v2275_v14, %v6746_v44  ;;  %v6758_v11 = vsub.f32 %v2280_v62, %v6746_v44 }
 0x37a   : > { %v6762_v43 = vsub.f32 %v6585_v30, %v6746_v44  ;;  %v6766_v57 = vsub.f32 %v6581_v6, %v6746_v44  ;;  %v6770_v21 = vsub.f32 %v6589_v26, %v6746_v44  ;;  %v6774_v17 = vsub.f32 %v6599_v0, %v6746_v44 }
 0x37b   : > { %v6782_v30 = vsub.f32 %v6603_v39, %v6746_v44  ;;  %v6788_v26 = vsub.f32 %v6611_v18, %v6746_v44  ;;  %v6796_v22 = vsub.f32 %v6615_v45, %v6746_v44  ;;  %v6803_v18 = vsub.f32 %v6623_v5, %v6746_v44 }
 0x37c   : > { %v2386_v49 = vmul.f32 %v6762_v43, %v6762_v43  ;;  %v2387_v54 = vmul.f32 %v6766_v57, %v6766_v57  ;;  %v2388_v6 = vmul.f32 %v6770_v21, %v6770_v21  ;;  %v2389_v0 = vmul.f32 %v6774_v17, %v6774_v17 }
 0x37d   : > { %v2390_v39 = vmul.f32 %v6782_v30, %v6782_v30  ;;  %v2391_v34 = vmul.f32 %v6788_v26, %v6788_v26  ;;  %v6810_v45 = vsub.f32 %v6627_v12, %v6746_v44  ;;  %v2392_v2 = vmul.f32 %v6796_v22, %v6796_v22 }
 0x37e   : > { %v2418_v1 = vsel %vm258_vm0, %v2386_v49, 0.0  ;;  %v2419_v51 = vsel %vm258_vm0, %v2387_v54, 0.0  ;;  %v2421_v63 = vsel %vm258_vm0, %v2388_v6, 0.0  ;;  %v2423_v36 = vsel %vm258_vm0, %v2389_v0, 0.0 }
 0x37f   : > { %v2420_v40 = vadd.f32 %v2419_v51, %v2418_v1  ;;  %v2425_v37 = vsel %vm258_vm0, %v2390_v39, 0.0  ;;  %v6817_v5 = vsub.f32 %v6635_v50, %v6746_v44  ;;  %v2393_v14 = vmul.f32 %v6803_v18, %v6803_v18 }
 0x380   : > { %v2427_v61 = vsel %vm258_vm0, %v2391_v34, 0.0  ;;  %v6824_v12 = vsub.f32 %v6639_v13, %v6746_v44  ;;  %v2394_v48 = vmul.f32 %v6810_v45, %v6810_v45  ;;  %v2429_v55 = vsel %vm258_vm0, %v2392_v2, 0.0 }
 0x381   : > { %v2422_v47 = vadd.f32 %v2421_v63, %v2420_v40  ;;  %v6831_v50 = vsub.f32 %v6647_v25, %v6746_v44  ;;  %v2395_v35 = vmul.f32 %v6817_v5, %v6817_v5  ;;  %v2431_v28 = vsel %vm258_vm0, %v2393_v14, 0.0 }
 0x382   : > { %v6838_v13 = vsub.f32 %v6651_v9, %v6746_v44  ;;  %v2396_v31 = vmul.f32 %v6824_v12, %v6824_v12  ;;  %v2433_v15 = vsel %vm258_vm0, %v2394_v48, 0.0  ;;  %v6845_v25 = vsub.f32 %v6659_v19, %v6746_v44 }
 0x383   : > { %v2424_v4 = vadd.f32 %v2423_v36, %v2422_v47  ;;  %v2397_v54 = vmul.f32 %v6831_v50, %v6831_v50  ;;  %v2435_v6 = vsel %vm258_vm0, %v2395_v35, 0.0  ;;  %v6852_v9 = vsub.f32 %v6662_v3, %v6746_v44 }
 0x384   : > { %v2398_v1 = vmul.f32 %v6838_v13, %v6838_v13  ;;  %v2437_v51 = vsel %vm258_vm0, %v2396_v31, 0.0  ;;  %v6859_v19 = vsub.f32 %v6669_v33, %v6746_v44  ;;  %v2399_v39 = vmul.f32 %v6845_v25, %v6845_v25 }
 0x385   : > { %v2426_v62 = vadd.f32 %v2425_v37, %v2424_v4  ;;  %v2439_v63 = vsel %vm258_vm0, %v2397_v54, 0.0  ;;  %v6866_v3 = vsub.f32 %v6672_v7, %v6746_v44  ;;  %v2400_v34 = vmul.f32 %v6852_v9, %v6852_v9 }
 0x386   : > { %v2441_v36 = vsel %vm258_vm0, %v2398_v1, 0.0  ;;  %v6873_v33 = vsub.f32 %v6679_v53, %v6746_v44  ;;  %v2401_v2 = vmul.f32 %v6859_v19, %v6859_v19  ;;  %v2443_v37 = vsel %vm258_vm0, %v2399_v39, 0.0 }
 0x387   : > { %v2428_v27 = vadd.f32 %v2427_v61, %v2426_v62  ;;  %v6880_v7 = vsub.f32 %v6682_v16, %v6746_v44  ;;  %v2402_v14 = vmul.f32 %v6866_v3, %v6866_v3  ;;  %v2445_v61 = vsel %vm258_vm0, %v2400_v34, 0.0 }
 0x388   : > { %v6887_v53 = vsub.f32 %v6690_v56, %v6746_v44  ;;  %v2403_v48 = vmul.f32 %v6873_v33, %v6873_v33  ;;  %v6894_v16 = vsub.f32 %v6694_v23, %v6746_v44  ;;  %v6901_v56 = vsub.f32 %v6702_v59, %v6746_v44 }
 0x389   : > { %v2430_v38 = vadd.f32 %v2429_v55, %v2428_v27  ;;  %v2447_v55 = vsel %vm258_vm0, %v2401_v2, 0.0  ;;  %v2404_v35 = vmul.f32 %v6880_v7, %v6880_v7  ;;  %v6908_v23 = vsub.f32 %v6706_v10, %v6746_v44 }
 0x38a   : > { %v2405_v31 = vmul.f32 %v6887_v53, %v6887_v53  ;;  %v2406_v54 = vmul.f32 %v6894_v16, %v6894_v16  ;;  %v6915_v59 = vsub.f32 %v6714_v58, %v6746_v44  ;;  %v2407_v1 = vmul.f32 %v6901_v56, %v6901_v56 }
 0x38b   : > { %v2432_v8 = vadd.f32 %v2431_v28, %v2430_v38  ;;  %v2449_v28 = vsel %vm258_vm0, %v2402_v14, 0.0  ;;  %v6922_v10 = vsub.f32 %v6717_v20, %v6746_v44  ;;  %v2408_v39 = vmul.f32 %v6908_v23, %v6908_v23 }
 0x38c   : > { %v6929_v58 = vsub.f32 %v6724_v46, %v6746_v44  ;;  %v2409_v34 = vmul.f32 %v6915_v59, %v6915_v59  ;;  %v6936_v20 = vsub.f32 %v6727_v24, %v6746_v44  ;;  %v6943_v46 = vsub.f32 %v6734_v60, %v6746_v44 }
 0x38d   : > { %v2434_v49 = vadd.f32 %v2433_v15, %v2432_v8  ;;  %v2451_v15 = vsel %vm258_vm0, %v2403_v48, 0.0  ;;  %v2410_v2 = vmul.f32 %v6922_v10, %v6922_v10  ;;  %v2414_v60 = vmul.f32 %v6749_v32, %v6749_v32 }
 0x38e   : > { %v2411_v14 = vmul.f32 %v6929_v58, %v6929_v58  ;;  %v2412_v24 = vmul.f32 %v6936_v20, %v6936_v20 }
 0x38f   : > { %v2436_v0 = vadd.f32 %v2435_v6, %v2434_v49  ;;  %v2453_v6 = vsel %vm258_vm0, %v2404_v35, 0.0  ;;  %v2465_v48 = vsel %vm258_vm0, %v2410_v2, 0.0 }
 0x390   : > { %v2467_v35 = vsel %vm258_vm0, %v2411_v14, 0.0  ;;  %v2469_v44 = vsel %vm258_vm0, %v2412_v24, 0.0 }
 0x391   : > { %v2438_v40 = vadd.f32 %v2437_v51, %v2436_v0  ;;  %v2455_v51 = vsel %vm258_vm0, %v2405_v31, 0.0  ;;  %v2415_v31 = vmul.f32 %v6752_v42, %v6752_v42 }
 0x393   : > { %v2440_v47 = vadd.f32 %v2439_v63, %v2438_v40  ;;  %v2457_v63 = vsel %vm258_vm0, %v2406_v54, 0.0  ;;  %v2416_v54 = vmul.f32 %v6755_v41, %v6755_v41 }
 0x395   : > { %v2442_v4 = vadd.f32 %v2441_v36, %v2440_v47  ;;  %v2459_v36 = vsel %vm258_vm0, %v2407_v1, 0.0  ;;  %v2417_v1 = vmul.f32 %v6758_v11, %v6758_v11 }
 0x397   : > { %v2444_v62 = vadd.f32 %v2443_v37, %v2442_v4  ;;  %v2461_v37 = vsel %vm258_vm0, %v2408_v39, 0.0  ;;  %v2477_v39 = vsel %vm258_vm0, %v2416_v54, 0.0 }
 0x399   : > { %v2446_v27 = vadd.f32 %v2445_v61, %v2444_v62  ;;  %v2463_v61 = vsel %vm258_vm0, %v2409_v34, 0.0 }
 0x39b   : > { %v2448_v38 = vadd.f32 %v2447_v55, %v2446_v27 }
 0x39d   : > { %v2450_v8 = vadd.f32 %v2449_v28, %v2448_v38  ;;  %v2413_v38 = vmul.f32 %v6943_v46, %v6943_v46 }
 0x39f   : > { %v2452_v49 = vadd.f32 %v2451_v15, %v2450_v8  ;;  %v2471_v15 = vsel %vm258_vm0, %v2413_v38, 0.0 }
 0x3a1   : > { %v2454_v0 = vadd.f32 %v2453_v6, %v2452_v49  ;;  %v2473_v6 = vsel %vm258_vm0, %v2414_v60, 0.0 }
 0x3a3   : > { %v2456_v40 = vadd.f32 %v2455_v51, %v2454_v0  ;;  %v2475_v51 = vsel %vm258_vm0, %v2415_v31, 0.0 }
 0x3a5   : > { %v2458_v47 = vadd.f32 %v2457_v63, %v2456_v40 }
 0x3a7   : > { %v2460_v4 = vadd.f32 %v2459_v36, %v2458_v47  ;;  %v2479_v47 = vsel %vm258_vm0, %v2417_v1, 0.0 }
 0x3a9   : > { %v2462_v62 = vadd.f32 %v2461_v37, %v2460_v4 }
 0x3ab   : > { %v2464_v27 = vadd.f32 %v2463_v61, %v2462_v62 }
 0x3ad   : > { %v2466_v55 = vadd.f32 %v2465_v48, %v2464_v27 }
 0x3af   : > { %v2468_v28 = vadd.f32 %v2467_v35, %v2466_v55 }
 0x3b1   : > { %v2470_v8 = vadd.f32 %v2469_v44, %v2468_v28 }
 0x3b3   : > { %v2472_v49 = vadd.f32 %v2471_v15, %v2470_v8 }
 0x3b5   : > { %v2474_v0 = vadd.f32 %v2473_v6, %v2472_v49 }
 0x3b7   : > { %v2476_v40 = vadd.f32 %v2475_v51, %v2474_v0 }
 0x3b9   : > { %v2478_v63 = vadd.f32 %v2477_v39, %v2476_v40 }
 0x3bb   : > { %v2480_v34 = vadd.f32 %v2479_v47, %v2478_v63 }
 0x3bd   : > { %v2481_v36 = vrot.slane %v2480_v34, 4 }
 0x3bf   : > { %v2482_v4 = vadd.f32 %v2481_v36, %v2480_v34 }
 0x3c1   : > { %v2483_v2 = vrot.slane %v2482_v4, 2 }
 0x3c3   : > { %v2484_v37 = vadd.f32 %v2483_v2, %v2482_v4 }
 0x3c5   : > { %v2485_v62 = vrot.slane %v2484_v37, 1 }
 0x3c7   : > { %v2486_v14 = vadd.f32 %v2485_v62, %v2484_v37 }
 0x3c9   : > { %v2487_v61 = vmul.f32 0.00390625, %v2486_v14 }
 0x3cb   : > { %v2488_v27 = vadd.f32 1e-05, %v2487_v61 }
 0x3cd   : > { %5229 = vrsqrt.f32 %v2488_v27 }
 0x3d7   : > { %v5230_v24 = vpop.eup %5229 }
 0x3d8   : > { %v2520_v48 = vmul.f32 %v5230_v24, %v6755_v41  ;;  %v2490_v55 = vmul.f32 %v5230_v24, %v6762_v43  ;;  %v2491_v38 = vmul.f32 %v5230_v24, %v6766_v57  ;;  %v2492_v35 = vmul.f32 %v5230_v24, %v6770_v21 }
 0x3d9   : > { %v2493_v28 = vmul.f32 %v5230_v24, %v6774_v17  ;;  %v2494_v60 = vmul.f32 %v5230_v24, %v6782_v30  ;;  %v2495_v44 = vmul.f32 %v5230_v24, %v6788_v26  ;;  %v2496_v8 = vmul.f32 %v5230_v24, %v6796_v22 }
 0x3da   : > { %v2552_v31 = vmax.f32 %v2520_v48, 0.0  ;;  %v2497_v15 = vmul.f32 %v5230_v24, %v6803_v18  ;;  %v2498_v49 = vmul.f32 %v5230_v24, %v6810_v45  ;;  %v2499_v41 = vmul.f32 %v5230_v24, %v6817_v5 }
 0x3db   : > { %v2500_v43 = vmul.f32 %v5230_v24, %v6824_v12  ;;  %v2501_v57 = vmul.f32 %v5230_v24, %v6831_v50  ;;  %v2502_v21 = vmul.f32 %v5230_v24, %v6838_v13  ;;  %v2503_v17 = vmul.f32 %v5230_v24, %v6845_v25 }
 0x3dc   : > { %2585 = vst.msk [vmem:[#allocation3 + $0x181] sm:$0xff] %vm258_vm0, %v2552_v31  ;;  %v2504_v30 = vmul.f32 %v5230_v24, %v6852_v9  ;;  %v6986_v26 = vmul.f32 %v5230_v24, %v6859_v19  ;;  %v6989_v22 = vmul.f32 %v5230_v24, %v6866_v3  ;;  %v6992_v18 = vmul.f32 %v5230_v24, %v6873_v33 }
 0x3dd   : > { %v6995_v45 = vmul.f32 %v5230_v24, %v6880_v7  ;;  %v6998_v5 = vmul.f32 %v5230_v24, %v6887_v53  ;;  %v7001_v12 = vmul.f32 %v5230_v24, %v6894_v16  ;;  %v7004_v50 = vmul.f32 %v5230_v24, %v6901_v56 }
 0x3de   : > { %v7007_v13 = vmul.f32 %v5230_v24, %v6908_v23  ;;  %v7010_v25 = vmul.f32 %v5230_v24, %v6915_v59  ;;  %v7013_v9 = vmul.f32 %v5230_v24, %v6922_v10  ;;  %v7016_v19 = vmul.f32 %v5230_v24, %v6929_v58 }
 0x3df   : > { %v7019_v3 = vmul.f32 %v5230_v24, %v6936_v20  ;;  %v7022_v33 = vmul.f32 %v5230_v24, %v6943_v46  ;;  %v7025_v7 = vmul.f32 %v5230_v24, %v6749_v32  ;;  %v7028_v53 = vmul.f32 %v5230_v24, %v6752_v42 }
 0x3e0   : > { %v7031_v16 = vmul.f32 %v5230_v24, %v6758_v11  ;;  %v2525_v56 = vmax.f32 %v2493_v28, 0.0  ;;  %v2522_v23 = vmax.f32 %v2490_v55, 0.0  ;;  %v2523_v59 = vmax.f32 %v2491_v38, 0.0 }
 0x3e1   : > { %v2524_v10 = vmax.f32 %v2492_v35, 0.0  ;;  %v2526_v58 = vmax.f32 %v2494_v60, 0.0  ;;  %v2527_v54 = vmax.f32 %v2495_v44, 0.0  ;;  %v2528_v20 = vmax.f32 %v2496_v8, 0.0 }
 0x3e2   : > { %2588 = vst.msk [vmem:[#allocation3 + $0x9] sm:$0xff] %vm258_vm0, %v2525_v56  ;;  %v2529_v46 = vmax.f32 %v2497_v15, 0.0  ;;  %v2530_v6 = vmax.f32 %v2498_v49, 0.0  ;;  %v2531_v0 = vmax.f32 %v2499_v41, 0.0  ;;  %v2532_v32 = vmax.f32 %v2500_v43, 0.0  ;;  %2558 = vst.msk [vmem:[#allocation3 + $0x39] sm:$0xff] %vm258_vm0, %v2525_v56 }
 0x3e3   : > { %2555 = vst.msk [vmem:[#allocation3 + $0x19] sm:$0xff] %vm258_vm0, %v2522_v23  ;;  %2556 = vst.msk [vmem:[#allocation3 + $0x21] sm:$0xff] %vm258_vm0, %v2523_v59  ;;  %v2533_v42 = vmax.f32 %v2501_v57, 0.0  ;;  %v2534_v11 = vmax.f32 %v2502_v21, 0.0  ;;  %v2535_v1 = vmax.f32 %v2503_v17, 0.0  ;;  %v2536_v51 = vmax.f32 %v2504_v30, 0.0 }
 0x3e4   : > { %2587 = vst.msk [vmem:[#allocation3 + $0x1] sm:$0xff] %vm258_vm0, %v2524_v10  ;;  %2557 = vst.msk [vmem:[#allocation3 + $0x31] sm:$0xff] %vm258_vm0, %v2524_v10  ;;  %v2608_v40 = vld [vmem:[#allocation3 + $0x182] sm:$0x1]  ;;  %v2537_v39 = vmax.f32 %v6986_v26, 0.0  ;;  %v2538_v63 = vmax.f32 %v6989_v22, 0.0 }
 0x3e5   : > { %2559 = vst.msk [vmem:[#allocation3 + $0x49] sm:$0xff] %vm258_vm0, %v2526_v58  ;;  %2560 = vst.msk [vmem:[#allocation3 + $0x51] sm:$0xff] %vm258_vm0, %v2527_v54  ;;  %v2539_v47 = vmax.f32 %v6992_v18, 0.0  ;;  %v2540_v34 = vmax.f32 %v6995_v45, 0.0  ;;  %v2541_v36 = vmax.f32 %v6998_v5, 0.0  ;;  %v2542_v4 = vmax.f32 %v7001_v12, 0.0 }
 0x3e6   : > { %2561 = vst.msk [vmem:[#allocation3 + $0x61] sm:$0xff] %vm258_vm0, %v2528_v20  ;;  %2562 = vst.msk [vmem:[#allocation3 + $0x69] sm:$0xff] %vm258_vm0, %v2529_v46  ;;  %v2543_v2 = vmax.f32 %v7004_v50, 0.0  ;;  %v2544_v37 = vmax.f32 %v7007_v13, 0.0  ;;  %v2545_v62 = vmax.f32 %v7010_v25, 0.0  ;;  %v2546_v14 = vmax.f32 %v7013_v9, 0.0 }
 0x3e7   : > { %2563 = vst.msk [vmem:[#allocation3 + $0x79] sm:$0xff] %vm258_vm0, %v2530_v6  ;;  %2564 = vst.msk [vmem:[#allocation3 + $0x81] sm:$0xff] %vm258_vm0, %v2531_v0  ;;  %v2547_v61 = vmax.f32 %v7016_v19, 0.0  ;;  %v2548_v27 = vmax.f32 %v7019_v3, 0.0  ;;  %v2549_v24 = vmax.f32 %v7022_v33, 0.0  ;;  %v2550_v48 = vmax.f32 %v7025_v7, 0.0 }
 0x3e8   : > { %2565 = vst.msk [vmem:[#allocation3 + $0x91] sm:$0xff] %vm258_vm0, %v2532_v32  ;;  %2566 = vst.msk [vmem:[#allocation3 + $0x99] sm:$0xff] %vm258_vm0, %v2533_v42  ;;  %v2551_v55 = vmax.f32 %v7028_v53, 0.0  ;;  %v2553_v38 = vmax.f32 %v7031_v16, 0.0 }
 0x3e9   : > { %2626 = vst.msk [vmem:[#allocation3 + $0x180] sm:$0x1] %vm314_vm1, %v2608_v40  ;;  %v2703_v35 = vld [vmem:[#allocation3 + $0x9] sm:$0xff]  ;;  %v7095_v8 = vld [vmem:[#allocation3 + $0x39] sm:$0xff] }
 0x3ea   : > { %2567 = vst.msk [vmem:[#allocation3 + $0xa9] sm:$0xff] %vm258_vm0, %v2534_v11  ;;  %2568 = vst.msk [vmem:[#allocation3 + $0xb1] sm:$0xff] %vm258_vm0, %v2535_v1  ;;  %2993 = vrot.lane.b32.xlu1 %v2703_v35, %s5241_s24  ;;  %v7087_v60 = vld [vmem:[#allocation3 + $0x21] sm:$0xff]  ;;  %v7091_v44 = vld [vmem:[#allocation3 + $0x19] sm:$0xff] }
 0x3eb   : > { %2569 = vst.msk [vmem:[#allocation3 + $0xc1] sm:$0xff] %vm258_vm0, %v2536_v51  ;;  %2570 = vst.msk [vmem:[#allocation3 + $0xc9] sm:$0xff] %vm258_vm0, %v2537_v39  ;;  %v2702_v28 = vld [vmem:[#allocation3 + $0x1] sm:$0xff]  ;;  %v7099_v31 = vld [vmem:[#allocation3 + $0x31] sm:$0xff] }
 0x3ec   : > { %2571 = vst.msk [vmem:[#allocation3 + $0xd9] sm:$0xff] %vm258_vm0, %v2538_v63  ;;  %2572 = vst.msk [vmem:[#allocation3 + $0xe1] sm:$0xff] %vm258_vm0, %v2539_v47  ;;  %2991 = vrot.lane.b32.xlu0 %v2702_v28, %s5241_s24  ;;  %v2628_v15 = vld [vmem:[#allocation3 + $0xf] sm:$0x1]  ;;  %v2593_v49 = vld [vmem:[#allocation3 + $0x1a] sm:$0x1] }
 0x3ed   : > { %2573 = vst.msk [vmem:[#allocation3 + $0xf1] sm:$0xff] %vm258_vm0, %v2540_v34  ;;  %2574 = vst.msk [vmem:[#allocation3 + $0xf9] sm:$0xff] %vm258_vm0, %v2541_v36  ;;  %v2629_v41 = vld [vmem:[#allocation3 + $0x27] sm:$0x1]  ;;  %v2594_v43 = vld [vmem:[#allocation3 + $0x32] sm:$0x1] }
 0x3ee   : > { %2575 = vst.msk [vmem:[#allocation3 + $0x109] sm:$0xff] %vm258_vm0, %v2542_v4  ;;  %2576 = vst.msk [vmem:[#allocation3 + $0x111] sm:$0xff] %vm258_vm0, %v2543_v2  ;;  %2997 = vrot.lane.b32.xlu1 %v7087_v60, %s5241_s24  ;;  %v7106_v57 = vld [vmem:[#allocation3 + $0x51] sm:$0xff]  ;;  %v2630_v21 = vld [vmem:[#allocation3 + $0x3f] sm:$0x1] }
 0x3ef   : > { %2577 = vst.msk [vmem:[#allocation3 + $0x121] sm:$0xff] %vm258_vm0, %v2544_v37  ;;  %2578 = vst.msk [vmem:[#allocation3 + $0x129] sm:$0xff] %vm258_vm0, %v2545_v62  ;;  %v2595_v17 = vld [vmem:[#allocation3 + $0x4a] sm:$0x1]  ;;  %v2592_v26 = vld [vmem:[#allocation3 + $0x2] sm:$0x1] }
 0x3f0   : > { %2579 = vst.msk [vmem:[#allocation3 + $0x139] sm:$0xff] %vm258_vm0, %v2546_v14  ;;  %2580 = vst.msk [vmem:[#allocation3 + $0x141] sm:$0xff] %vm258_vm0, %v2547_v61  ;;  %2995 = vrot.lane.b32.xlu0 %v7091_v44, %s5241_s24  ;;  %v7111_v30 = vld [vmem:[#allocation3 + $0x49] sm:$0xff]  ;;  %v2631_v22 = vld [vmem:[#allocation3 + $0x57] sm:$0x1] }
 0x3f1   : > { %2581 = vst.msk [vmem:[#allocation3 + $0x151] sm:$0xff] %vm258_vm0, %v2548_v27  ;;  %2582 = vst.msk [vmem:[#allocation3 + $0x159] sm:$0xff] %vm258_vm0, %v2549_v24  ;;  %v2596_v18 = vld [vmem:[#allocation3 + $0x62] sm:$0x1]  ;;  %v2597_v45 = vld [vmem:[#allocation3 + $0x7a] sm:$0x1] }
 0x3f2   : > { %2583 = vst.msk [vmem:[#allocation3 + $0x169] sm:$0xff] %vm258_vm0, %v2550_v48  ;;  %2584 = vst.msk [vmem:[#allocation3 + $0x171] sm:$0xff] %vm258_vm0, %v2551_v55  ;;  %3001 = vrot.lane.b32.xlu1 %v7095_v8, %s5241_s24  ;;  %v7120_v5 = vld [vmem:[#allocation3 + $0x69] sm:$0xff]  ;;  %v2598_v12 = vld [vmem:[#allocation3 + $0x92] sm:$0x1] }
 0x3f3   : > { %2586 = vst.msk [vmem:[#allocation3 + $0x189] sm:$0xff] %vm258_vm0, %v2553_v38  ;;  %2590 = vst.msk [vmem:[#allocation3 + $0x199] sm:$0xff] %vm258_vm0, %v2550_v48  ;;  %v2599_v50 = vld [vmem:[#allocation3 + $0xaa] sm:$0x1]  ;;  %v7125_v13 = vld [vmem:[#allocation3 + $0x61] sm:$0xff] }
 0x3f4   : > { %2591 = vst.msk [vmem:[#allocation3 + $0x1a1] sm:$0xff] %vm258_vm0, %v2551_v55  ;;  %2999 = vrot.lane.b32.xlu0 %v7099_v31, %s5241_s24  ;;  %v2600_v25 = vld [vmem:[#allocation3 + $0xc2] sm:$0x1]  ;;  %v2632_v9 = vld [vmem:[#allocation3 + $0x6f] sm:$0x1]  ;;  %v7137_v33 = vld [vmem:[#allocation3 + $0x79] sm:$0xff] }
 0x3f5   : > { %2646 = vst.msk [vmem:[#allocation3 + $0x11] sm:$0x1] %vm314_vm1, %v2628_v15  ;;  %2611 = vst.msk [vmem:[#allocation3 + $0x18] sm:$0x1] %vm314_vm1, %v2593_v49  ;;  %v7132_v19 = vld [vmem:[#allocation3 + $0x81] sm:$0xff]  ;;  %v7143_v16 = vld [vmem:[#allocation3 + $0x99] sm:$0xff] }
 0x3f6   : > { %2647 = vst.msk [vmem:[#allocation3 + $0x29] sm:$0x1] %vm314_vm1, %v2629_v41  ;;  %2612 = vst.msk [vmem:[#allocation3 + $0x30] sm:$0x1] %vm314_vm1, %v2594_v43  ;;  %3005 = vrot.lane.b32.xlu1 %v7106_v57, %s5241_s24  ;;  %v2601_v3 = vld [vmem:[#allocation3 + $0xda] sm:$0x1] }
 0x3f7   : > { %2648 = vst.msk [vmem:[#allocation3 + $0x41] sm:$0x1] %vm314_vm1, %v2630_v21  ;;  %2613 = vst.msk [vmem:[#allocation3 + $0x48] sm:$0x1] %vm314_vm1, %v2595_v17  ;;  %v2602_v7 = vld [vmem:[#allocation3 + $0xf2] sm:$0x1] }
 0x3f8   : > { %3003 = vrot.lane.b32.xlu0 %v7111_v30, %s5241_s24  ;;  %2610 = vst.msk [vmem:[#allocation3] sm:$0x1] %vm314_vm1, %v2592_v26  ;;  %2649 = vst.msk [vmem:[#allocation3 + $0x59] sm:$0x1] %vm314_vm1, %v2631_v22  ;;  %v2603_v53 = vld [vmem:[#allocation3 + $0x10a] sm:$0x1] }
 0x3f9   : > { %2614 = vst.msk [vmem:[#allocation3 + $0x60] sm:$0x1] %vm314_vm1, %v2596_v18  ;;  %2615 = vst.msk [vmem:[#allocation3 + $0x78] sm:$0x1] %vm314_vm1, %v2597_v45  ;;  %v2604_v56 = vld [vmem:[#allocation3 + $0x122] sm:$0x1] }
 0x3fa   : > { %3009 = vrot.lane.b32.xlu1 %v7120_v5, %s5241_s24  ;;  %2616 = vst.msk [vmem:[#allocation3 + $0x90] sm:$0x1] %vm314_vm1, %v2598_v12  ;;  %2617 = vst.msk [vmem:[#allocation3 + $0xa8] sm:$0x1] %vm314_vm1, %v2599_v50  ;;  %v7148_v23 = vld [vmem:[#allocation3 + $0x91] sm:$0xff]  ;;  %v7161_v6 = vld [vmem:[#allocation3 + $0xa9] sm:$0xff] }
 0x3fb   : > { %2618 = vst.msk [vmem:[#allocation3 + $0xc0] sm:$0x1] %vm314_vm1, %v2600_v25  ;;  %2650 = vst.msk [vmem:[#allocation3 + $0x71] sm:$0x1] %vm314_vm1, %v2632_v9  ;;  %v2605_v59 = vld [vmem:[#allocation3 + $0x13a] sm:$0x1] }
 0x3fc   : > { %3007 = vrot.lane.b32.xlu0 %v7125_v13, %s5241_s24  ;;  %2619 = vst.msk [vmem:[#allocation3 + $0xd8] sm:$0x1] %vm314_vm1, %v2601_v3  ;;  %2620 = vst.msk [vmem:[#allocation3 + $0xf0] sm:$0x1] %vm314_vm1, %v2602_v7  ;;  %v2633_v10 = vld [vmem:[#allocation3 + $0x87] sm:$0x1] }
 0x3fd   : > { %2621 = vst.msk [vmem:[#allocation3 + $0x108] sm:$0x1] %vm314_vm1, %v2603_v53  ;;  %2622 = vst.msk [vmem:[#allocation3 + $0x120] sm:$0x1] %vm314_vm1, %v2604_v56  ;;  %v2634_v58 = vld [vmem:[#allocation3 + $0x9f] sm:$0x1] }
 0x3fe   : > { %3013 = vrot.lane.b32.xlu1 %v7132_v19, %s5241_s24  ;;  %2623 = vst.msk [vmem:[#allocation3 + $0x138] sm:$0x1] %vm314_vm1, %v2605_v59  ;;  %2651 = vst.msk [vmem:[#allocation3 + $0x89] sm:$0x1] %vm314_vm1, %v2633_v10  ;;  %v2635_v54 = vld [vmem:[#allocation3 + $0xb7] sm:$0x1] }
 0x3ff   : > { %2652 = vst.msk [vmem:[#allocation3 + $0xa1] sm:$0x1] %vm314_vm1, %v2634_v58  ;;  %v7156_v20 = vld [vmem:[#allocation3 + $0xb1] sm:$0xff]  ;;  %2653 = vst.msk [vmem:[#allocation3 + $0xb9] sm:$0x1] %vm314_vm1, %v2635_v54  ;;  %v7167_v42 = vld [vmem:[#allocation3 + $0xc9] sm:$0xff] }
 0x400   : > { %3011 = vrot.lane.b32.xlu0 %v7137_v33, %s5241_s24  ;;  %v2636_v46 = vld [vmem:[#allocation3 + $0xcf] sm:$0x1]  ;;  %v2637_v0 = vld [vmem:[#allocation3 + $0xe7] sm:$0x1]  ;;  %v2638_v32 = vld [vmem:[#allocation3 + $0xff] sm:$0x1] }
 0x401   : > { %2654 = vst.msk [vmem:[#allocation3 + $0xd1] sm:$0x1] %vm314_vm1, %v2636_v46  ;;  %2655 = vst.msk [vmem:[#allocation3 + $0xe9] sm:$0x1] %vm314_vm1, %v2637_v0  ;;  %v7172_v11 = vld [vmem:[#allocation3 + $0xc1] sm:$0xff]  ;;  %v7181_v39 = vld [vmem:[#allocation3 + $0xd9] sm:$0xff] }
 0x402   : > { %3017 = vrot.lane.b32.xlu1 %v7143_v16, %s5241_s24  ;;  %2656 = vst.msk [vmem:[#allocation3 + $0x101] sm:$0x1] %vm314_vm1, %v2638_v32  ;;  %v2639_v1 = vld [vmem:[#allocation3 + $0x117] sm:$0x1]  ;;  %v7177_v51 = vld [vmem:[#allocation3 + $0xe1] sm:$0xff]  ;;  %v2723_v34 = vld [vmem:[#allocation3 + $0xf9] sm:$0xff] }
 0x403   : > { %2657 = vst.msk [vmem:[#allocation3 + $0x119] sm:$0x1] %vm314_vm1, %v2639_v1  ;;  %v2640_v40 = vld [vmem:[#allocation3 + $0x12f] sm:$0x1]  ;;  %v2641_v63 = vld [vmem:[#allocation3 + $0x147] sm:$0x1] }
 0x404   : > { %3015 = vrot.lane.b32.xlu0 %v7148_v23, %s5241_s24  ;;  %2658 = vst.msk [vmem:[#allocation3 + $0x131] sm:$0x1] %vm314_vm1, %v2640_v40  ;;  %v2606_v47 = vld [vmem:[#allocation3 + $0x152] sm:$0x1]  ;;  %2659 = vst.msk [vmem:[#allocation3 + $0x149] sm:$0x1] %vm314_vm1, %v2641_v63 }
 0x405   : > { %2624 = vst.msk [vmem:[#allocation3 + $0x150] sm:$0x1] %vm314_vm1, %v2606_v47  ;;  %v2642_v36 = vld [vmem:[#allocation3 + $0x15f] sm:$0x1]  ;;  %v2722_v4 = vld [vmem:[#allocation3 + $0xf1] sm:$0xff]  ;;  %v2724_v14 = vld [vmem:[#allocation3 + $0x109] sm:$0xff] }
 0x406   : > { %3021 = vrot.lane.b32.xlu1 %v7156_v20, %s5241_s24  ;;  %2660 = vst.msk [vmem:[#allocation3 + $0x161] sm:$0x1] %vm314_vm1, %v2642_v36  ;;  %v2607_v2 = vld [vmem:[#allocation3 + $0x16a] sm:$0x1]  ;;  %v2643_v37 = vld [vmem:[#allocation3 + $0x177] sm:$0x1] }
 0x407   : > { %2625 = vst.msk [vmem:[#allocation3 + $0x168] sm:$0x1] %vm314_vm1, %v2607_v2  ;;  %v2725_v62 = vld [vmem:[#allocation3 + $0x111] sm:$0xff]  ;;  %2661 = vst.msk [vmem:[#allocation3 + $0x179] sm:$0x1] %vm314_vm1, %v2643_v37  ;;  %v2727_v48 = vld [vmem:[#allocation3 + $0x129] sm:$0xff] }
 0x408   : > { %3019 = vrot.lane.b32.xlu0 %v7161_v6, %s5241_s24  ;;  %v2644_v61 = vld [vmem:[#allocation3 + $0x18f] sm:$0x1]  ;;  %v2609_v27 = vld [vmem:[#allocation3 + $0x19a] sm:$0x1]  ;;  %v2645_v24 = vld [vmem:[#allocation3 + $0x1a7] sm:$0x1] }
 0x409   : > { %2662 = vst.msk [vmem:[#allocation3 + $0x191] sm:$0x1] %vm314_vm1, %v2644_v61  ;;  %2627 = vst.msk [vmem:[#allocation3 + $0x198] sm:$0x1] %vm314_vm1, %v2609_v27  ;;  %v2726_v55 = vld [vmem:[#allocation3 + $0x121] sm:$0xff]  ;;  %v2728_v35 = vld [vmem:[#allocation3 + $0x139] sm:$0xff] }
 0x40a   : > { %3025 = vrot.lane.b32.xlu1 %v7167_v42, %s5241_s24  ;;  %2663 = vst.msk [vmem:[#allocation3 + $0x1a9] sm:$0x1] %vm314_vm1, %v2645_v24  ;;  %v2734_v38 = vld [vmem:[#allocation3 + $0x2] sm:$0xff]  ;;  %v7202_v28 = vld [vmem:[#allocation3 + $0x18] sm:$0xff]  ;;  %v2735_v15 = vld [vmem:[#allocation3 + $0xa] sm:$0xff] }
 0x40b   : > { %v7207_v49 = vld [vmem:[#allocation3 + $0x20] sm:$0xff]  ;;  %v2664_v21 = vld [vmem:[%s8705_s3] sm:$0xff]  ;;  %v2667_v22 = vld [vmem:[%s8705_s3 + $0x18] sm:$0xff] }
 0x40c   : > { %3023 = vrot.lane.b32.xlu0 %v7172_v11, %s5241_s24  ;;  %v2830_v41 = vld [vmem:[#allocation3 + $0x1a] sm:$0xff]  ;;  %v2831_v43 = vld [vmem:[#allocation3 + $0x22] sm:$0xff]  ;;  %v7224_v26 = vld [vmem:[#allocation3 + $0x30] sm:$0xff] }
 0x40d   : > { %v7235_v45 = vld [vmem:[#allocation3 + $0x38] sm:$0xff]  ;;  %v2668_v12 = vld [vmem:[%s8705_s3 + $0x20] sm:$0xf]  ;;  %v7261_v9 = vld [vmem:[#allocation3 + $0x48] sm:$0xff] }
 0x40e   : > { %3029 = vrot.lane.b32.xlu1 %v7177_v51, %s5241_s24  ;;  %v2927_v50 = vld [vmem:[#allocation3 + $0x32] sm:$0xff]  ;;  %v2928_v25 = vld [vmem:[#allocation3 + $0x3a] sm:$0xff]  ;;  %v2929_v7 = vld [vmem:[#allocation3 + $0x4a] sm:$0xff] }
 0x40f   : > { %v2930_v59 = vld [vmem:[#allocation3 + $0x52] sm:$0xff]  ;;  %v7303_v54 = vld [vmem:[#allocation3 + $0x60] sm:$0xff]  ;;  %v7310_v0 = vld [vmem:[#allocation3 + $0x68] sm:$0xff] }
 0x410   : > { %3027 = vrot.lane.b32.xlu0 %v7181_v39, %s5241_s24  ;;  %v7357_v27 = vld [vmem:[#allocation3 + $0x78] sm:$0xff]  ;;  %v2670_v52 = vld [vmem:[#allocation3] sm:$0xff] }
 0x412   : > { %3033 = vrot.lane.b32.xlu1 %v2723_v34, %s5241_s24 }
 0x414   : > { %3031 = vrot.lane.b32.xlu0 %v2722_v4, %s5241_s24  ;;  %v2931_v4 = vld [vmem:[#allocation3 + $0x62] sm:$0xff] }
 0x416   : > { %3037 = vrot.lane.b32.xlu1 %v2725_v62, %s5241_s24  ;;  %v2932_v62 = vld [vmem:[#allocation3 + $0x6a] sm:$0xff] }
 0x418   : > { %3035 = vrot.lane.b32.xlu0 %v2724_v14, %s5241_s24 }
 0x41a   : > { %3041 = vrot.lane.b32.xlu1 %v2727_v48, %s5241_s24  ;;  %v7364_v48 = vld [vmem:[#allocation3 + $0x80] sm:$0xff] }
 0x41c   : > { %3039 = vrot.lane.b32.xlu0 %v2726_v55, %s5241_s24 }
 0x41e   : > { %3119 = vrot.lane.b32.xlu1 %v2734_v38, %s5242_s25 }
 0x420   : > { %3043 = vrot.lane.b32.xlu0 %v2728_v35, %s5241_s24 }
 0x422   : > { %3247 = vrot.lane.b32.xlu1 %v7202_v28, %s5243_s26 }
 0x424   : > { %3121 = vrot.lane.b32.xlu0 %v2735_v15, %s5242_s25 }
 0x426   : > { %3375 = vrot.lane.b32.xlu1 %v7091_v44, %s5244_s27  ;;  %v2665_v44 = vld [vmem:[%s8705_s3 + $0x8] sm:$0xff] }
 0x427   : > { %v5205_v17 = vpack.c.bf16 %v2665_v44, %v2664_v21  ;;  %v2933_v44 = vld [vmem:[#allocation3 + $0x7a] sm:$0xff] }
 0x428   : > { %3249 = vrot.lane.b32.xlu0 %v7207_v49, %s5243_s26 }
 0x429   : > { %5206 = vmatprep.subr.bf16.mxu1 %v5205_v17 }
 0x42a   : > { %3503 = vrot.lane.b32.xlu1 %v2830_v41, %s5245_s7  ;;  %5208 = vmatpush3.bf16.msra.mxu1 %v5205_v17 }
 0x42c   : > { %3377 = vrot.lane.b32.xlu0 %v7087_v60, %s5244_s27  ;;  %v2666_v60 = vld [vmem:[%s8705_s3 + $0x10] sm:$0xff] }
 0x42d   : > { %v5209_v18 = vpack.c.bf16 %v2667_v22, %v2666_v60  ;;  %v2934_v22 = vld [vmem:[#allocation3 + $0x82] sm:$0xff] }
 0x42e   : > { %3505 = vrot.lane.b32.xlu1 %v2831_v43, %s5245_s7 }
 0x42f   : > { %5210 = vmatprep.subr.bf16.mxu1 %v5209_v18 }
 0x430   : > { %3123 = vrot.lane.b32.xlu0 %v2830_v41, %s5242_s25  ;;  %5212 = vmatpush3.bf16.msra.mxu1 %v5209_v18 }
 0x431   : > { %5147 = vmatprep.subr.msk.mxu1 %vm2054_vm2, %v2668_v12 }
 0x432   : > { %3125 = vrot.lane.b32.xlu1 %v2831_v43, %s5242_s25 }
 0x434   : > { %3631 = vrot.lane.b32.xlu0 %v7224_v26, %s5246_s12  ;;  %5148 = vmatpush3.msk.msra.mxu1 %vm2054_vm2, %v2668_v12 }
 0x436   : > { %3633 = vrot.lane.b32.xlu1 %v7235_v45, %s5246_s12 }
 0x438   : > { %3251 = vrot.lane.b32.xlu0 %v7224_v26, %s5243_s26 }
 0x43a   : > { %3253 = vrot.lane.b32.xlu1 %v7235_v45, %s5243_s26 }
 0x43c   : > { %3759 = vrot.lane.b32.xlu0 %v7099_v31, %s5247_s15 }
 0x43e   : > { %3761 = vrot.lane.b32.xlu1 %v7095_v8, %s5247_s15 }
 0x440   : > { %3379 = vrot.lane.b32.xlu0 %v7099_v31, %s5244_s27  ;;  %v7266_v31 = vld [vmem:[#allocation3 + $0x50] sm:$0xff] }
 0x442   : > { %3381 = vrot.lane.b32.xlu1 %v7095_v8, %s5244_s27 }
 0x444   : > { %3887 = vrot.lane.b32.xlu0 %v2927_v50, %s5248_s16 }
 0x446   : > { %3889 = vrot.lane.b32.xlu1 %v2928_v25, %s5248_s16 }
 0x448   : > { %3507 = vrot.lane.b32.xlu0 %v2927_v50, %s5245_s7 }
 0x44a   : > { %3509 = vrot.lane.b32.xlu1 %v2928_v25, %s5245_s7 }
 0x44c   : > { %3127 = vrot.lane.b32.xlu0 %v2927_v50, %s5242_s25 }
 0x44e   : > { %3129 = vrot.lane.b32.xlu1 %v2928_v25, %s5242_s25  ;;  %v7395_v25 = vld [vmem:[#allocation3 + $0x90] sm:$0xff] }
 0x450   : > { %3635 = vrot.lane.b32.xlu0 %v7261_v9, %s5246_s12 }
 0x452   : > { %3637 = vrot.lane.b32.xlu1 %v7266_v31, %s5246_s12 }
 0x454   : > { %3255 = vrot.lane.b32.xlu0 %v7261_v9, %s5243_s26 }
 0x456   : > { %3257 = vrot.lane.b32.xlu1 %v7266_v31, %s5243_s26 }
 0x458   : > { %3763 = vrot.lane.b32.xlu0 %v7111_v30, %s5247_s15 }
 0x45a   : > { %3765 = vrot.lane.b32.xlu1 %v7106_v57, %s5247_s15 }
 0x45c   : > { %3383 = vrot.lane.b32.xlu0 %v7111_v30, %s5244_s27  ;;  %v7280_v8 = vpop.permute.xlu1 %2993 }
 0x45e   : > { %v7282_v3 = vpop.permute.xlu0 %2991  ;;  %3385 = vrot.lane.b32.xlu1 %v7106_v57, %s5244_s27 }
 0x45f   : > { %v3983_v29 = vsel %vm258_vm0, %v2670_v52, %v7282_v3 }
 0x460   : > { %3891 = vrot.lane.b32.xlu0 %v2929_v7, %s5248_s16  ;;  %v7287_v53 = vpop.permute.xlu1 %2997 }
 0x462   : > { %v7289_v56 = vpop.permute.xlu0 %2995  ;;  %3893 = vrot.lane.b32.xlu1 %v2930_v59, %s5248_s16 }
 0x464   : > { %3511 = vrot.lane.b32.xlu0 %v2929_v7, %s5245_s7  ;;  %v7293_v30 = vpop.permute.xlu1 %3001 }
 0x466   : > { %v7295_v10 = vpop.permute.xlu0 %2999  ;;  %3513 = vrot.lane.b32.xlu1 %v2930_v59, %s5245_s7 }
 0x468   : > { %3131 = vrot.lane.b32.xlu0 %v2929_v7, %s5242_s25  ;;  %v7299_v57 = vpop.permute.xlu1 %3005  ;;  %v7402_v7 = vld [vmem:[#allocation3 + $0x98] sm:$0xff] }
 0x46a   : > { %v7301_v58 = vpop.permute.xlu0 %3003  ;;  %3133 = vrot.lane.b32.xlu1 %v2930_v59, %s5242_s25 }
 0x46c   : > { %3639 = vrot.lane.b32.xlu0 %v7303_v54, %s5246_s12  ;;  %v7308_v46 = vpop.permute.xlu1 %3009 }
 0x46e   : > { %v7312_v32 = vpop.permute.xlu0 %3007  ;;  %3641 = vrot.lane.b32.xlu1 %v7310_v0, %s5246_s12 }
 0x470   : > { %3259 = vrot.lane.b32.xlu0 %v7303_v54, %s5243_s26  ;;  %v7318_v1 = vpop.permute.xlu1 %3013 }
 0x472   : > { %v7320_v40 = vpop.permute.xlu0 %3011  ;;  %3261 = vrot.lane.b32.xlu1 %v7310_v0, %s5243_s26 }
 0x474   : > { %3767 = vrot.lane.b32.xlu0 %v7125_v13, %s5247_s15  ;;  %v7326_v63 = vpop.permute.xlu1 %3017 }
 0x476   : > { %v7328_v47 = vpop.permute.xlu0 %3015  ;;  %3769 = vrot.lane.b32.xlu1 %v7120_v5, %s5247_s15 }
 0x478   : > { %3387 = vrot.lane.b32.xlu0 %v7125_v13, %s5244_s27  ;;  %v7334_v34 = vpop.permute.xlu1 %3021 }
 0x47a   : > { %v7336_v36 = vpop.permute.xlu0 %3019  ;;  %3389 = vrot.lane.b32.xlu1 %v7120_v5, %s5244_s27 }
 0x47c   : > { %3895 = vrot.lane.b32.xlu0 %v2931_v4, %s5248_s16  ;;  %v7341_v2 = vpop.permute.xlu1 %3025 }
 0x47e   : > { %v7343_v37 = vpop.permute.xlu0 %3023  ;;  %3897 = vrot.lane.b32.xlu1 %v2932_v62, %s5248_s16 }
 0x480   : > { %3515 = vrot.lane.b32.xlu0 %v2931_v4, %s5245_s7  ;;  %v7347_v13 = vpop.permute.xlu1 %3029 }
 0x481   : > { %8810 = vst [vmem:[#allocation34_spill] sm:$0xff] %v7347_v13  ;;  %v2935_v13 = vld [vmem:[#allocation3 + $0x92] sm:$0xff] }
 0x482   : > { %v7349_v14 = vpop.permute.xlu0 %3027  ;;  %3517 = vrot.lane.b32.xlu1 %v2932_v62, %s5245_s7 }
 0x484   : > { %3135 = vrot.lane.b32.xlu0 %v2931_v4, %s5242_s25  ;;  %v7353_v5 = vpop.permute.xlu1 %3033 }
 0x485   : > { %8811 = vst [vmem:[#allocation52_spill] sm:$0xff] %v7353_v5 }
 0x486   : > { %v7355_v61 = vpop.permute.xlu0 %3031  ;;  %3137 = vrot.lane.b32.xlu1 %v2932_v62, %s5242_s25 }
 0x487   : > { %8812 = vst [vmem:[#allocation35_spill] sm:$0xff] %v7355_v61 }
 0x488   : > { %3643 = vrot.lane.b32.xlu0 %v7357_v27, %s5246_s12  ;;  %v7362_v24 = vpop.permute.xlu1 %3037 }
 0x489   : > { %8813 = vst [vmem:[#allocation36_spill] sm:$0xff] %v7362_v24 }
 0x48a   : > { %v7366_v55 = vpop.permute.xlu0 %3035  ;;  %3645 = vrot.lane.b32.xlu1 %v7364_v48, %s5246_s12 }
 0x48b   : > { %8814 = vst [vmem:[#allocation37_spill] sm:$0xff] %v7366_v55 }
 0x48c   : > { %3263 = vrot.lane.b32.xlu0 %v7357_v27, %s5243_s26  ;;  %v7372_v38 = vpop.permute.xlu1 %3041 }
 0x48d   : > { %8815 = vst [vmem:[#allocation38_spill] sm:$0xff] %v7372_v38 }
 0x48e   : > { %v7374_v35 = vpop.permute.xlu0 %3039  ;;  %3265 = vrot.lane.b32.xlu1 %v7364_v48, %s5243_s26 }
 0x48f   : > { %8816 = vst [vmem:[#allocation39_spill] sm:$0xff] %v7374_v35  ;;  %v2671_v35 = vld [vmem:[#allocation3 + $0x8] sm:$0xff] }
 0x490   : > { %3771 = vrot.lane.b32.xlu0 %v7137_v33, %s5247_s15  ;;  %v3120_v15 = vpop.permute.xlu1 %3119  ;;  %v3984_v5 = vsel %vm258_vm0, %v2671_v35, %v7280_v8  ;;  %v2936_v35 = vld [vmem:[#allocation3 + $0x9a] sm:$0xff] }
 0x492   : > { %v7380_v41 = vpop.permute.xlu0 %3043  ;;  %3773 = vrot.lane.b32.xlu1 %v7132_v19, %s5247_s15 }
 0x493   : > { %8817 = vst [vmem:[#allocation40_spill] sm:$0xff] %v7380_v41  ;;  %v4015_v41 = vsel %vm1720_vm3, %v3983_v29, %v3120_v15 }
 0x494   : > { %3391 = vrot.lane.b32.xlu0 %v7137_v33, %s5244_s27  ;;  %v3248_v43 = vpop.permute.xlu1 %3247 }
 0x495   : > { %v4047_v24 = vsel %vm1753_vm4, %v4015_v41, %v3248_v43 }
 0x496   : > { %v3122_v21 = vpop.permute.xlu0 %3121  ;;  %3393 = vrot.lane.b32.xlu1 %v7132_v19, %s5244_s27 }
 0x497   : > { %v4016_v52 = vsel %vm1720_vm3, %v3984_v5, %v3122_v21 }
 0x498   : > { %3899 = vrot.lane.b32.xlu0 %v2933_v44, %s5248_s16  ;;  %v3376_v17 = vpop.permute.xlu1 %3375 }
 0x499   : > { %v4079_v61 = vsel %vm1786_vm5, %v4047_v24, %v3376_v17 }
 0x49a   : > { %v3250_v60 = vpop.permute.xlu0 %3249  ;;  %3901 = vrot.lane.b32.xlu1 %v2934_v22, %s5248_s16 }
 0x49b   : > { %v4048_v29 = vsel %vm1753_vm4, %v4016_v52, %v3250_v60 }
 0x49c   : > { %3519 = vrot.lane.b32.xlu0 %v2933_v44, %s5245_s7  ;;  %v3504_v18 = vpop.permute.xlu1 %3503 }
 0x49e   : > { %v3378_v12 = vpop.permute.xlu0 %3377  ;;  %3521 = vrot.lane.b32.xlu1 %v2934_v22, %s5245_s7 }
 0x49f   : > { %v4080_v41 = vsel %vm1786_vm5, %v4048_v29, %v3378_v12  ;;  %v3985_v29 = vsel %vm258_vm0, %v7202_v28, %v7289_v56 }
 0x4a0   : > { %3139 = vrot.lane.b32.xlu0 %v2933_v44, %s5242_s25  ;;  %v3506_v33 = vpop.permute.xlu1 %3505 }
 0x4a1   : > { %v4112_v43 = vsel %vm1819_vm6, %v4080_v41, %v3506_v33  ;;  %v7449_v33 = vld [vmem:[#allocation3 + $0xa8] sm:$0xff] }
 0x4a2   : > { %v7393_v50 = vpop.permute.xlu0 %3123  ;;  %3141 = vrot.lane.b32.xlu1 %v2934_v22, %s5242_s25 }
 0x4a4   : > { %3647 = vrot.lane.b32.xlu0 %v7395_v25, %s5246_s12  ;;  %v7400_v19 = vpop.permute.xlu1 %3125 }
 0x4a6   : > { %v3632_v59 = vpop.permute.xlu0 %3631  ;;  %3649 = vrot.lane.b32.xlu1 %v7402_v7, %s5246_s12 }
 0x4a8   : > { %3267 = vrot.lane.b32.xlu0 %v7395_v25, %s5243_s26  ;;  %v3634_v4 = vpop.permute.xlu1 %3633 }
 0x4a9   : > { %v4144_v5 = vsel %vm1852_vm7, %v4112_v43, %v3634_v4 }
 0x4aa   : > { %v7408_v62 = vpop.permute.xlu0 %3251  ;;  %3269 = vrot.lane.b32.xlu1 %v7402_v7, %s5243_s26 }
 0x4ac   : > { %3775 = vrot.lane.b32.xlu0 %v7148_v23, %s5247_s15  ;;  %v7414_v44 = vpop.permute.xlu1 %3253 }
 0x4ae   : > { %v3760_v22 = vpop.permute.xlu0 %3759  ;;  %3777 = vrot.lane.b32.xlu1 %v7143_v16, %s5247_s15 }
 0x4b0   : > { %3395 = vrot.lane.b32.xlu0 %v7148_v23, %s5244_s27  ;;  %v3762_v38 = vpop.permute.xlu1 %3761  ;;  %v4111_v23 = vsel %vm1819_vm6, %v4079_v61, %v3504_v18 }
 0x4b1   : > { %v4143_v3 = vsel %vm1852_vm7, %v4111_v23, %v3632_v59  ;;  %v4176_v61 = vsel %vm1885_vm8, %v4144_v5, %v3762_v38  ;;  %v7456_v59 = vld [vmem:[#allocation3 + $0xb0] sm:$0xff] }
 0x4b2   : > { %v3380_v55 = vpop.permute.xlu0 %3379  ;;  %3397 = vrot.lane.b32.xlu1 %v7143_v16, %s5244_s27  ;;  %v4175_v8 = vsel %vm1885_vm8, %v4143_v3, %v3760_v22  ;;  %v4017_v3 = vsel %vm1720_vm3, %v3985_v29, %v7393_v50  ;;  %v2938_v5 = vld [vmem:[#allocation3 + $0xb2] sm:$0xff] }
 0x4b4   : > { %3903 = vrot.lane.b32.xlu0 %v2935_v13, %s5248_s16  ;;  %v3382_v15 = vpop.permute.xlu1 %3381 }
 0x4b6   : > { %v3888_v24 = vpop.permute.xlu0 %3887  ;;  %3905 = vrot.lane.b32.xlu1 %v2936_v35, %s5248_s16 }
 0x4b7   : > { %v4207_v16 = vsel %vm1918_vm9, %v4175_v8, %v3888_v24  ;;  %v4049_v8 = vsel %vm1753_vm4, %v4017_v3, %v7408_v62 }
 0x4b8   : > { %3523 = vrot.lane.b32.xlu0 %v2935_v13, %s5245_s7  ;;  %5149 = vmatprep.mubr.msk.f32.mxu1 %vm1957_vm10, %v4207_v16  ;;  %v3890_v21 = vpop.permute.xlu1 %3889  ;;  %v4081_v43 = vsel %vm1786_vm5, %v4049_v8, %v3380_v55  ;;  %v2937_v16 = vld [vmem:[#allocation3 + $0xaa] sm:$0xff] }
 0x4b9   : > { %v4208_v60 = vsel %vm1918_vm9, %v4176_v61, %v3890_v21 }
 0x4ba   : > { %v3508_v17 = vpop.permute.xlu0 %3507  ;;  %3525 = vrot.lane.b32.xlu1 %v2936_v35, %s5245_s7  ;;  %5150 = vmatmul.mubr.msk.f32.vlgmr.msra.gmra.mrb[0].mxu1 %vm1957_vm10, %v4208_v60 }
 0x4bb   : > { %v4113_v28 = vsel %vm1819_vm6, %v4081_v43, %v3508_v17  ;;  %v3987_v43 = vsel %vm258_vm0, %v7224_v26, %v7295_v10 }
 0x4bc   : > { %3143 = vrot.lane.b32.xlu0 %v2935_v13, %s5242_s25  ;;  %v3510_v18 = vpop.permute.xlu1 %3509 }
 0x4be   : > { %v7447_v12 = vpop.permute.xlu0 %3127  ;;  %3145 = vrot.lane.b32.xlu1 %v2936_v35, %s5242_s25  ;;  %v3986_v35 = vsel %vm258_vm0, %v7207_v49, %v7287_v53 }
 0x4c0   : > { %3651 = vrot.lane.b32.xlu0 %v7449_v33, %s5246_s12  ;;  %v7454_v38 = vpop.permute.xlu1 %3129 }
 0x4c2   : > { %v3636_v4 = vpop.permute.xlu0 %3635  ;;  %3653 = vrot.lane.b32.xlu1 %v7456_v59, %s5246_s12 }
 0x4c3   : > { %v4145_v50 = vsel %vm1852_vm7, %v4113_v28, %v3636_v4  ;;  %v7507_v4 = vld [vmem:[#allocation3 + $0xc0] sm:$0xff] }
 0x4c4   : > { %3271 = vrot.lane.b32.xlu0 %v7449_v33, %s5243_s26  ;;  %v3638_v13 = vpop.permute.xlu1 %3637 }
 0x4c6   : > { %v3256_v22 = vpop.permute.xlu0 %3255  ;;  %3273 = vrot.lane.b32.xlu1 %v7456_v59, %s5243_s26 }
 0x4c8   : > { %3779 = vrot.lane.b32.xlu0 %v7161_v6, %s5247_s15  ;;  %v7466_v52 = vpop.permute.xlu1 %3257 }
 0x4ca   : > { %v3764_v23 = vpop.permute.xlu0 %3763  ;;  %3781 = vrot.lane.b32.xlu1 %v7156_v20, %s5247_s15 }
 0x4cb   : > { %v4177_v53 = vsel %vm1885_vm8, %v4145_v50, %v3764_v23  ;;  %v7514_v23 = vld [vmem:[#allocation3 + $0xc8] sm:$0xff]  ;;  %v3988_v50 = vsel %vm258_vm0, %v7235_v45, %v7293_v30 }
 0x4cc   : > { %3399 = vrot.lane.b32.xlu0 %v7161_v6, %s5244_s27  ;;  %v3766_v41 = vpop.permute.xlu1 %3765  ;;  %v4018_v6 = vsel %vm1720_vm3, %v3986_v35, %v7400_v19 }
 0x4cd   : > { %v4050_v56 = vsel %vm1753_vm4, %v4018_v6, %v7414_v44 }
 0x4ce   : > { %v3384_v24 = vpop.permute.xlu0 %3383  ;;  %3401 = vrot.lane.b32.xlu1 %v7156_v20, %s5244_s27  ;;  %v4082_v49 = vsel %vm1786_vm5, %v4050_v56, %v3382_v15 }
 0x4cf   : > { %v4114_v20 = vsel %vm1819_vm6, %v4082_v49, %v3510_v18 }
 0x4d0   : > { %3907 = vrot.lane.b32.xlu0 %v2937_v16, %s5248_s16  ;;  %v3386_v62 = vpop.permute.xlu1 %3385  ;;  %v4146_v61 = vsel %vm1852_vm7, %v4114_v20, %v3638_v13 }
 0x4d1   : > { %v4178_v44 = vsel %vm1885_vm8, %v4146_v61, %v3766_v41 }
 0x4d2   : > { %v3892_v55 = vpop.permute.xlu0 %3891  ;;  %3909 = vrot.lane.b32.xlu1 %v2938_v5, %s5248_s16 }
 0x4d3   : > { %v4209_v19 = vsel %vm1918_vm9, %v4177_v53, %v3892_v55  ;;  %v2939_v53 = vld [vmem:[#allocation3 + $0xc2] sm:$0xff]  ;;  %v2940_v55 = vld [vmem:[#allocation3 + $0xca] sm:$0xff] }
 0x4d4   : > { %3527 = vrot.lane.b32.xlu0 %v2937_v16, %s5245_s7  ;;  %5152 = vmatprep.mubr.msk.f32.mxu1 %vm1957_vm10, %v4209_v19  ;;  %v3894_v21 = vpop.permute.xlu1 %3893 }
 0x4d5   : > { %v4210_v17 = vsel %vm1918_vm9, %v4178_v44, %v3894_v21  ;;  %v7564_v21 = vld [vmem:[#allocation3 + $0xd8] sm:$0xff] }
 0x4d6   : > { %v3512_v15 = vpop.permute.xlu0 %3511  ;;  %3529 = vrot.lane.b32.xlu1 %v2938_v5, %s5245_s7  ;;  %5153 = vmatmul.mubr.msk.f32.gmra.mrb[2].mxu1 %vm1957_vm10, %v4210_v17  ;;  %v7571_v17 = vld [vmem:[#allocation3 + $0xe0] sm:$0xff] }
 0x4d8   : > { %3147 = vrot.lane.b32.xlu0 %v2937_v16, %s5242_s25  ;;  %v3514_v60 = vpop.permute.xlu1 %3513  ;;  %v4019_v16 = vsel %vm1720_vm3, %v3987_v43, %v7447_v12 }
 0x4d9   : > { %v4051_v28 = vsel %vm1753_vm4, %v4019_v16, %v3256_v22  ;;  %v3989_v16 = vsel %vm258_vm0, %v7261_v9, %v7301_v58 }
 0x4da   : > { %v7505_v18 = vpop.permute.xlu0 %3131  ;;  %3149 = vrot.lane.b32.xlu1 %v2938_v5, %s5242_s25  ;;  %v4083_v49 = vsel %vm1786_vm5, %v4051_v28, %v3384_v24 }
 0x4db   : > { %v4115_v26 = vsel %vm1819_vm6, %v4083_v49, %v3512_v15 }
 0x4dc   : > { %3655 = vrot.lane.b32.xlu0 %v7507_v4, %s5246_s12  ;;  %v7512_v13 = vpop.permute.xlu1 %3133 }
 0x4de   : > { %v3640_v29 = vpop.permute.xlu0 %3639  ;;  %3657 = vrot.lane.b32.xlu1 %v7514_v23, %s5246_s12 }
 0x4df   : > { %v4147_v12 = vsel %vm1852_vm7, %v4115_v26, %v3640_v29  ;;  %v2941_v26 = vld [vmem:[#allocation3 + $0xda] sm:$0xff] }
 0x4e0   : > { %3275 = vrot.lane.b32.xlu0 %v7507_v4, %s5243_s26  ;;  %v3642_v3 = vpop.permute.xlu1 %3641 }
 0x4e2   : > { %v3260_v41 = vpop.permute.xlu0 %3259  ;;  %3277 = vrot.lane.b32.xlu1 %v7514_v23, %s5243_s26 }
 0x4e4   : > { %3783 = vrot.lane.b32.xlu0 %v7172_v11, %s5247_s15  ;;  %v7524_v8 = vpop.permute.xlu1 %3261 }
 0x4e6   : > { %v3768_v35 = vpop.permute.xlu0 %3767  ;;  %3785 = vrot.lane.b32.xlu1 %v7167_v42, %s5247_s15 }
 0x4e7   : > { %v4179_v30 = vsel %vm1885_vm8, %v4147_v12, %v3768_v35 }
 0x4e8   : > { %3403 = vrot.lane.b32.xlu0 %v7172_v11, %s5244_s27  ;;  %v3770_v6 = vpop.permute.xlu1 %3769  ;;  %v4020_v11 = vsel %vm1720_vm3, %v3988_v50, %v7454_v38 }
 0x4e9   : > { %v4052_v10 = vsel %vm1753_vm4, %v4020_v11, %v7466_v52  ;;  %v3990_v11 = vsel %vm258_vm0, %v7266_v31, %v7299_v57 }
 0x4ea   : > { %v3388_v56 = vpop.permute.xlu0 %3387  ;;  %3405 = vrot.lane.b32.xlu1 %v7167_v42, %s5244_s27  ;;  %v4084_v45 = vsel %vm1786_vm5, %v4052_v10, %v3386_v62  ;;  %v2942_v10 = vld [vmem:[#allocation3 + $0xe2] sm:$0xff] }
 0x4eb   : > { %v4116_v42 = vsel %vm1819_vm6, %v4084_v45, %v3514_v60 }
 0x4ec   : > { %3911 = vrot.lane.b32.xlu0 %v2939_v53, %s5248_s16  ;;  %v3390_v22 = vpop.permute.xlu1 %3389  ;;  %v4148_v5 = vsel %vm1852_vm7, %v4116_v42, %v3642_v3 }
 0x4ed   : > { %v4180_v52 = vsel %vm1885_vm8, %v4148_v5, %v3770_v6  ;;  %v4021_v6 = vsel %vm1720_vm3, %v3989_v16, %v7505_v18  ;;  %v3991_v16 = vsel %vm258_vm0, %v7303_v54, %v7312_v32 }
 0x4ee   : > { %v3896_v24 = vpop.permute.xlu0 %3895  ;;  %3913 = vrot.lane.b32.xlu1 %v2940_v55, %s5248_s16  ;;  %v4053_v50 = vsel %vm1753_vm4, %v4021_v6, %v3260_v41 }
 0x4ef   : > { %v4211_v38 = vsel %vm1918_vm9, %v4179_v30, %v3896_v24 }
 0x4f0   : > { %3531 = vrot.lane.b32.xlu0 %v2939_v53, %s5245_s7  ;;  %5155 = vmatprep.mubr.msk.f32.mxu1 %vm1957_vm10, %v4211_v38  ;;  %v3898_v20 = vpop.permute.xlu1 %3897  ;;  %v7622_v38 = vld [vmem:[#allocation3 + $0xf0] sm:$0xff] }
 0x4f1   : > { %v4212_v19 = vsel %vm1918_vm9, %v4180_v52, %v3898_v20  ;;  %v7629_v52 = vld [vmem:[#allocation3 + $0xf8] sm:$0xff] }
 0x4f2   : > { %v3516_v62 = vpop.permute.xlu0 %3515  ;;  %3533 = vrot.lane.b32.xlu1 %v2940_v55, %s5245_s7  ;;  %5156 = vmatmul.mubr.msk.f32.gmra.mrb[4].mxu1 %vm1957_vm10, %v4212_v19 }
 0x4f4   : > { %3151 = vrot.lane.b32.xlu0 %v2939_v53, %s5242_s25  ;;  %v3518_v61 = vpop.permute.xlu1 %3517  ;;  %v2815_v53 = vld [vmem:[#allocation3 + $0xe1] sm:$0xff] }
 0x4f6   : > { %v7562_v44 = vpop.permute.xlu0 %3135  ;;  %3153 = vrot.lane.b32.xlu1 %v2940_v55, %s5242_s25 }
 0x4f7   : > { %v4023_v6 = vsel %vm1720_vm3, %v3991_v16, %v7562_v44 }
 0x4f8   : > { %3659 = vrot.lane.b32.xlu0 %v7564_v21, %s5246_s12  ;;  %v7569_v15 = vpop.permute.xlu1 %3137 }
 0x4fa   : > { %v3644_v60 = vpop.permute.xlu0 %3643  ;;  %3661 = vrot.lane.b32.xlu1 %v7571_v17, %s5246_s12 }
 0x4fc   : > { %3279 = vrot.lane.b32.xlu0 %v7564_v21, %s5243_s26  ;;  %v3646_v29 = vpop.permute.xlu1 %3645 }
 0x4fe   : > { %v7577_v3 = vpop.permute.xlu0 %3263  ;;  %3281 = vrot.lane.b32.xlu1 %v7571_v17, %s5243_s26 }
 0x500   : > { %3787 = vrot.lane.b32.xlu0 %v7181_v39, %s5247_s15  ;;  %v7583_v35 = vpop.permute.xlu1 %3265 }
 0x502   : > { %v3772_v43 = vpop.permute.xlu0 %3771  ;;  %3789 = vrot.lane.b32.xlu1 %v7177_v51, %s5247_s15  ;;  %v4085_v51 = vsel %vm1786_vm5, %v4053_v50, %v3388_v56  ;;  %v4055_v50 = vsel %vm1753_vm4, %v4023_v6, %v7577_v3 }
 0x503   : > { %v4117_v9 = vsel %vm1819_vm6, %v4085_v51, %v3516_v62 }
 0x504   : > { %3407 = vrot.lane.b32.xlu0 %v7181_v39, %s5244_s27  ;;  %v3774_v28 = vpop.permute.xlu1 %3773  ;;  %v4022_v39 = vsel %vm1720_vm3, %v3990_v11, %v7512_v13  ;;  %v4149_v18 = vsel %vm1852_vm7, %v4117_v9, %v3644_v60  ;;  %v3992_v11 = vsel %vm258_vm0, %v7310_v0, %v7308_v46  ;;  %v2944_v9 = vld [vmem:[#allocation3 + $0xfa] sm:$0xff] }
 0x505   : > { %v4054_v58 = vsel %vm1753_vm4, %v4022_v39, %v7524_v8  ;;  %v4181_v57 = vsel %vm1885_vm8, %v4149_v18, %v3772_v43  ;;  %v2912_v43 = vld [vmem:[#allocation3 + $0xf9] sm:$0xff]  ;;  %v4024_v54 = vsel %vm1720_vm3, %v3992_v11, %v7569_v15  ;;  %v2945_v11 = vld [vmem:[#allocation3 + $0x10a] sm:$0xff] }
 0x506   : > { %v3392_v49 = vpop.permute.xlu0 %3391  ;;  %3409 = vrot.lane.b32.xlu1 %v2815_v53, %s5244_s27  ;;  %v4086_v31 = vsel %vm1786_vm5, %v4054_v58, %v3390_v22  ;;  %v4056_v44 = vsel %vm1753_vm4, %v4024_v54, %v7583_v35 }
 0x507   : > { %v4118_v12 = vsel %vm1819_vm6, %v4086_v31, %v3518_v61  ;;  %v2911_v61 = vld [vmem:[#allocation3 + $0xf1] sm:$0xff]  ;;  %v4087_v51 = vsel %vm1786_vm5, %v4055_v50, %v3392_v49 }
 0x508   : > { %3915 = vrot.lane.b32.xlu0 %v2941_v26, %s5248_s16  ;;  %v3394_v41 = vpop.permute.xlu1 %3393  ;;  %v4150_v45 = vsel %vm1852_vm7, %v4118_v12, %v3646_v29  ;;  %v7678_v12 = vld [vmem:[#allocation3 + $0x108] sm:$0xff] }
 0x509   : > { %v4182_v8 = vsel %vm1885_vm8, %v4150_v45, %v3774_v28  ;;  %v4088_v46 = vsel %vm1786_vm5, %v4056_v44, %v3394_v41  ;;  %v7685_v45 = vld [vmem:[#allocation3 + $0x110] sm:$0xff] }
 0x50a   : > { %v3900_v56 = vpop.permute.xlu0 %3899  ;;  %3917 = vrot.lane.b32.xlu1 %v2942_v10, %s5248_s16 }
 0x50b   : > { %v4213_v13 = vsel %vm1918_vm9, %v4181_v57, %v3900_v56 }
 0x50c   : > { %3535 = vrot.lane.b32.xlu0 %v2941_v26, %s5245_s7  ;;  %5158 = vmatprep.mubr.msk.f32.mxu1 %vm1957_vm10, %v4213_v13  ;;  %v3902_v30 = vpop.permute.xlu1 %3901 }
 0x50d   : > { %v4214_v24 = vsel %vm1918_vm9, %v4182_v8, %v3902_v30 }
 0x50e   : > { %v3520_v22 = vpop.permute.xlu0 %3519  ;;  %3537 = vrot.lane.b32.xlu1 %v2942_v10, %s5245_s7  ;;  %5159 = vmatmul.mubr.msk.f32.gmra.mrb[6].mxu1 %vm1957_vm10, %v4214_v24  ;;  %v2913_v24 = vld [vmem:[#allocation3 + $0x109] sm:$0xff] }
 0x50f   : > { %v4119_v32 = vsel %vm1819_vm6, %v4087_v51, %v3520_v22 }
 0x510   : > { %3155 = vrot.lane.b32.xlu0 %v2941_v26, %s5242_s25  ;;  %v3522_v55 = vpop.permute.xlu1 %3521  ;;  %v2943_v26 = vld [vmem:[#allocation3 + $0xf2] sm:$0xff] }
 0x511   : > { %v4120_v58 = vsel %vm1819_vm6, %v4088_v46, %v3522_v55 }
 0x512   : > { %v7620_v42 = vpop.permute.xlu0 %3139  ;;  %3157 = vrot.lane.b32.xlu1 %v2942_v10, %s5242_s25 }
 0x514   : > { %3663 = vrot.lane.b32.xlu0 %v7622_v38, %s5246_s12  ;;  %v7627_v5 = vpop.permute.xlu1 %3141 }
 0x516   : > { %v3648_v20 = vpop.permute.xlu0 %3647  ;;  %3665 = vrot.lane.b32.xlu1 %v7629_v52, %s5246_s12 }
 0x517   : > { %v4151_v3 = vsel %vm1852_vm7, %v4119_v32, %v3648_v20 }
 0x518   : > { %3283 = vrot.lane.b32.xlu0 %v7622_v38, %s5243_s26  ;;  %v3650_v62 = vpop.permute.xlu1 %3649 }
 0x519   : > { %v4152_v18 = vsel %vm1852_vm7, %v4120_v58, %v3650_v62  ;;  %v2914_v62 = vld [vmem:[#allocation3 + $0x111] sm:$0xff]  ;;  %v7741_v58 = vld [vmem:[#allocation3 + $0x128] sm:$0xff] }
 0x51a   : > { %v7635_v19 = vpop.permute.xlu0 %3267  ;;  %3285 = vrot.lane.b32.xlu1 %v7629_v52, %s5243_s26 }
 0x51c   : > { %3791 = vrot.lane.b32.xlu0 %v2911_v61, %s5247_s15  ;;  %v7640_v60 = vpop.permute.xlu1 %3269 }
 0x51e   : > { %v3776_v29 = vpop.permute.xlu0 %3775  ;;  %3793 = vrot.lane.b32.xlu1 %v2912_v43, %s5247_s15 }
 0x51f   : > { %v4183_v0 = vsel %vm1885_vm8, %v4151_v3, %v3776_v29 }
 0x520   : > { %3411 = vrot.lane.b32.xlu0 %v2911_v61, %s5244_s27  ;;  %v3778_v28 = vpop.permute.xlu1 %3777  ;;  %v3993_v61 = vsel %vm258_vm0, %v7357_v27, %v7320_v40 }
 0x521   : > { %v4184_v35 = vsel %vm1885_vm8, %v4152_v18, %v3778_v28  ;;  %v4025_v29 = vsel %vm1720_vm3, %v3993_v61, %v7620_v42  ;;  %v3994_v28 = vsel %vm258_vm0, %v7364_v48, %v7318_v1  ;;  %v3996_v61 = vsel %vm258_vm0, %v7402_v7, %v7326_v63 }
 0x522   : > { %v3396_v53 = vpop.permute.xlu0 %3395  ;;  %3413 = vrot.lane.b32.xlu1 %v2912_v43, %s5244_s27  ;;  %v4057_v16 = vsel %vm1753_vm4, %v4025_v29, %v7635_v19  ;;  %v4026_v40 = vsel %vm1720_vm3, %v3994_v28, %v7627_v5  ;;  %v2948_v28 = vld [vmem:[#allocation3 + $0x12a] sm:$0xff] }
 0x523   : > { %v4089_v50 = vsel %vm1786_vm5, %v4057_v16, %v3396_v53  ;;  %v4058_v42 = vsel %vm1753_vm4, %v4026_v40, %v7640_v60 }
 0x524   : > { %3919 = vrot.lane.b32.xlu0 %v2943_v26, %s5248_s16  ;;  %v3398_v39 = vpop.permute.xlu1 %3397 }
 0x525   : > { %v4090_v1 = vsel %vm1786_vm5, %v4058_v42, %v3398_v39 }
 0x526   : > { %v3904_v49 = vpop.permute.xlu0 %3903  ;;  %3921 = vrot.lane.b32.xlu1 %v2944_v9, %s5248_s16 }
 0x527   : > { %v4215_v15 = vsel %vm1918_vm9, %v4183_v0, %v3904_v49  ;;  %v7734_v49 = vld [vmem:[#allocation3 + $0x120] sm:$0xff] }
 0x528   : > { %3539 = vrot.lane.b32.xlu0 %v2943_v26, %s5245_s7  ;;  %5161 = vmatprep.mubr.msk.f32.mxu1 %vm1957_vm10, %v4215_v15  ;;  %v3906_v31 = vpop.permute.xlu1 %3905 }
 0x529   : > { %v4216_v57 = vsel %vm1918_vm9, %v4184_v35, %v3906_v31  ;;  %v2915_v31 = vld [vmem:[#allocation3 + $0x121] sm:$0xff] }
 0x52a   : > { %v3524_v41 = vpop.permute.xlu0 %3523  ;;  %3541 = vrot.lane.b32.xlu1 %v2944_v9, %s5245_s7  ;;  %5162 = vmatmul.mubr.msk.f32.gmra.mrb[8].mxu1 %vm1957_vm10, %v4216_v57 }
 0x52b   : > { %v4121_v27 = vsel %vm1819_vm6, %v4089_v50, %v3524_v41 }
 0x52c   : > { %3159 = vrot.lane.b32.xlu0 %v2943_v26, %s5242_s25  ;;  %v3526_v56 = vpop.permute.xlu1 %3525  ;;  %v2946_v26 = vld [vmem:[#allocation3 + $0x112] sm:$0xff] }
 0x52d   : > { %v4122_v54 = vsel %vm1819_vm6, %v4090_v1, %v3526_v56  ;;  %v2916_v56 = vld [vmem:[#allocation3 + $0x129] sm:$0xff]  ;;  %v7790_v1 = vld [vmem:[#allocation3 + $0x138] sm:$0xff] }
 0x52e   : > { %v7676_v10 = vpop.permute.xlu0 %3143  ;;  %3161 = vrot.lane.b32.xlu1 %v2944_v9, %s5242_s25 }
 0x530   : > { %3667 = vrot.lane.b32.xlu0 %v7678_v12, %s5246_s12  ;;  %v7683_v13 = vpop.permute.xlu1 %3145 }
 0x532   : > { %v3652_v8 = vpop.permute.xlu0 %3651  ;;  %3669 = vrot.lane.b32.xlu1 %v7685_v45, %s5246_s12 }
 0x533   : > { %v4153_v19 = vsel %vm1852_vm7, %v4121_v27, %v3652_v8  ;;  %v3995_v8 = vsel %vm258_vm0, %v7395_v25, %v7328_v47  ;;  %v4028_v47 = vsel %vm1720_vm3, %v3996_v61, %v7683_v13 }
 0x534   : > { %3287 = vrot.lane.b32.xlu0 %v7678_v12, %s5243_s26  ;;  %v3654_v30 = vpop.permute.xlu1 %3653 }
 0x535   : > { %v4154_v32 = vsel %vm1852_vm7, %v4122_v54, %v3654_v30  ;;  %v4027_v30 = vsel %vm1720_vm3, %v3995_v8, %v7676_v10  ;;  %v2949_v8 = vld [vmem:[#allocation3 + $0x13a] sm:$0xff] }
 0x536   : > { %v7691_v22 = vpop.permute.xlu0 %3271  ;;  %3289 = vrot.lane.b32.xlu1 %v7685_v45, %s5243_s26 }
 0x538   : > { %3795 = vrot.lane.b32.xlu0 %v2913_v24, %s5247_s15  ;;  %v7696_v55 = vpop.permute.xlu1 %3273 }
 0x539   : > { %v4060_v10 = vsel %vm1753_vm4, %v4028_v47, %v7696_v55 }
 0x53a   : > { %v3780_v20 = vpop.permute.xlu0 %3779  ;;  %3797 = vrot.lane.b32.xlu1 %v2914_v62, %s5247_s15 }
 0x53b   : > { %v4185_v48 = vsel %vm1885_vm8, %v4153_v19, %v3780_v20  ;;  %v4059_v20 = vsel %vm1753_vm4, %v4027_v30, %v7691_v22 }
 0x53c   : > { %3415 = vrot.lane.b32.xlu0 %v2913_v24, %s5244_s27  ;;  %v3782_v43 = vpop.permute.xlu1 %3781 }
 0x53d   : > { %v4186_v60 = vsel %vm1885_vm8, %v4154_v32, %v3782_v43  ;;  %v2947_v43 = vld [vmem:[#allocation3 + $0x122] sm:$0xff]  ;;  %v2917_v32 = vld [vmem:[#allocation3 + $0x139] sm:$0xff] }
 0x53e   : > { %v3400_v6 = vpop.permute.xlu0 %3399  ;;  %3417 = vrot.lane.b32.xlu1 %v2914_v62, %s5244_s27 }
 0x53f   : > { %v4091_v29 = vsel %vm1786_vm5, %v4059_v20, %v3400_v6  ;;  %v2950_v20 = vld [vmem:[#allocation3 + $0x142] sm:$0xff] }
 0x540   : > { %3923 = vrot.lane.b32.xlu0 %v2945_v11, %s5248_s16  ;;  %v3402_v51 = vpop.permute.xlu1 %3401 }
 0x541   : > { %v4092_v63 = vsel %vm1786_vm5, %v4060_v10, %v3402_v51 }
 0x542   : > { %v3908_v53 = vpop.permute.xlu0 %3907  ;;  %3925 = vrot.lane.b32.xlu1 %v2946_v26, %s5248_s16 }
 0x543   : > { %v4217_v5 = vsel %vm1918_vm9, %v4185_v48, %v3908_v53 }
 0x544   : > { %3543 = vrot.lane.b32.xlu0 %v2945_v11, %s5245_s7  ;;  %5164 = vmatprep.mubr.msk.f32.mxu1 %vm1957_vm10, %v4217_v5  ;;  %v3910_v44 = vpop.permute.xlu1 %3909 }
 0x545   : > { %v4218_v39 = vsel %vm1918_vm9, %v4186_v60, %v3910_v44 }
 0x546   : > { %v3528_v3 = vpop.permute.xlu0 %3527  ;;  %3545 = vrot.lane.b32.xlu1 %v2946_v26, %s5245_s7  ;;  %5165 = vmatmul.mubr.msk.f32.gmra.mrb[10].mxu1 %vm1957_vm10, %v4218_v39  ;;  %v3997_v39 = vsel %vm258_vm0, %v7449_v33, %v7336_v36 }
 0x547   : > { %v4123_v25 = vsel %vm1819_vm6, %v4091_v29, %v3528_v3  ;;  %v2918_v3 = vld [vmem:[#allocation3 + $0x141] sm:$0xff] }
 0x548   : > { %3163 = vrot.lane.b32.xlu0 %v2945_v11, %s5242_s25  ;;  %v3530_v46 = vpop.permute.xlu1 %3529 }
 0x549   : > { %v4124_v50 = vsel %vm1819_vm6, %v4092_v63, %v3530_v46 }
 0x54a   : > { %v7732_v0 = vpop.permute.xlu0 %3147  ;;  %3165 = vrot.lane.b32.xlu1 %v2946_v26, %s5242_s25  ;;  %v7797_v26 = vld [vmem:[#allocation3 + $0x140] sm:$0xff] }
 0x54b   : > { %v4029_v46 = vsel %vm1720_vm3, %v3997_v39, %v7732_v0  ;;  %v2920_v39 = vld [vmem:[#allocation3 + $0x159] sm:$0xff] }
 0x54c   : > { %3671 = vrot.lane.b32.xlu0 %v7734_v49, %s5246_s12  ;;  %v7739_v9 = vpop.permute.xlu1 %3149 }
 0x54e   : > { %v3656_v15 = vpop.permute.xlu0 %3655  ;;  %3673 = vrot.lane.b32.xlu1 %v7741_v58, %s5246_s12 }
 0x54f   : > { %v4155_v22 = vsel %vm1852_vm7, %v4123_v25, %v3656_v15 }
 0x550   : > { %3291 = vrot.lane.b32.xlu0 %v7734_v49, %s5243_s26  ;;  %v3658_v18 = vpop.permute.xlu1 %3657 }
 0x551   : > { %v4156_v11 = vsel %vm1852_vm7, %v4124_v50, %v3658_v18  ;;  %v7858_v50 = vld [vmem:[#allocation3 + $0x158] sm:$0xff] }
 0x552   : > { %v7747_v35 = vpop.permute.xlu0 %3275  ;;  %3293 = vrot.lane.b32.xlu1 %v7741_v58, %s5243_s26 }
 0x553   : > { %v4061_v18 = vsel %vm1753_vm4, %v4029_v46, %v7747_v35 }
 0x554   : > { %3799 = vrot.lane.b32.xlu0 %v2915_v31, %s5247_s15  ;;  %v7752_v41 = vpop.permute.xlu1 %3277 }
 0x556   : > { %v3784_v57 = vpop.permute.xlu0 %3783  ;;  %3801 = vrot.lane.b32.xlu1 %v2916_v56, %s5247_s15 }
 0x557   : > { %v4187_v7 = vsel %vm1885_vm8, %v4155_v22, %v3784_v57  ;;  %v3998_v57 = vsel %vm258_vm0, %v7456_v59, %v7334_v34  ;;  %v7846_v22 = vld [vmem:[#allocation3 + $0x150] sm:$0xff] }
 0x558   : > { %3419 = vrot.lane.b32.xlu0 %v2915_v31, %s5244_s27  ;;  %v3786_v24 = vpop.permute.xlu1 %3785  ;;  %v4030_v36 = vsel %vm1720_vm3, %v3998_v57, %v7739_v9 }
 0x559   : > { %v4188_v55 = vsel %vm1885_vm8, %v4156_v11, %v3786_v24  ;;  %v4062_v0 = vsel %vm1753_vm4, %v4030_v36, %v7752_v41  ;;  %v2952_v36 = vld [vmem:[#allocation3 + $0x15a] sm:$0xff] }
 0x55a   : > { %v3404_v62 = vpop.permute.xlu0 %3403  ;;  %3421 = vrot.lane.b32.xlu1 %v2916_v56, %s5244_s27 }
 0x55b   : > { %v4093_v56 = vsel %vm1786_vm5, %v4061_v18, %v3404_v62 }
 0x55c   : > { %3927 = vrot.lane.b32.xlu0 %v2947_v43, %s5248_s16  ;;  %v3406_v16 = vpop.permute.xlu1 %3405 }
 0x55d   : > { %v4094_v34 = vsel %vm1786_vm5, %v4062_v0, %v3406_v16 }
 0x55e   : > { %v3912_v6 = vpop.permute.xlu0 %3911  ;;  %3929 = vrot.lane.b32.xlu1 %v2948_v28, %s5248_s16 }
 0x55f   : > { %v4219_v13 = vsel %vm1918_vm9, %v4187_v7, %v3912_v6 }
 0x560   : > { %3547 = vrot.lane.b32.xlu0 %v2947_v43, %s5245_s7  ;;  %5167 = vmatprep.mubr.msk.f32.mxu1 %vm1957_vm10, %v4219_v13  ;;  %v3914_v40 = vpop.permute.xlu1 %3913 }
 0x561   : > { %v4220_v42 = vsel %vm1918_vm9, %v4188_v55, %v3914_v40 }
 0x562   : > { %v3532_v27 = vpop.permute.xlu0 %3531  ;;  %3549 = vrot.lane.b32.xlu1 %v2948_v28, %s5245_s7  ;;  %5168 = vmatmul.mubr.msk.f32.gmra.mrb[12].mxu1 %vm1957_vm10, %v4220_v42 }
 0x563   : > { %v4125_v33 = vsel %vm1819_vm6, %v4093_v56, %v3532_v27  ;;  %v3999_v27 = vsel %vm258_vm0, %v7507_v4, %v7343_v37 }
 0x564   : > { %3167 = vrot.lane.b32.xlu0 %v2947_v43, %s5242_s25  ;;  %v3534_v19 = vpop.permute.xlu1 %3533 }
 0x565   : > { %v4126_v62 = vsel %vm1819_vm6, %v4094_v34, %v3534_v19  ;;  %v7910_v34 = vld [vmem:[#allocation3 + $0x168] sm:$0xff] }
 0x566   : > { %v7788_v51 = vpop.permute.xlu0 %3151  ;;  %3169 = vrot.lane.b32.xlu1 %v2948_v28, %s5242_s25  ;;  %v2919_v28 = vld [vmem:[#allocation3 + $0x151] sm:$0xff] }
 0x567   : > { %v4031_v42 = vsel %vm1720_vm3, %v3999_v27, %v7788_v51 }
 0x568   : > { %3675 = vrot.lane.b32.xlu0 %v7790_v1, %s5246_s12  ;;  %v7795_v48 = vpop.permute.xlu1 %3153 }
 0x56a   : > { %v3660_v53 = vpop.permute.xlu0 %3659  ;;  %3677 = vrot.lane.b32.xlu1 %v7797_v26, %s5246_s12 }
 0x56b   : > { %v4157_v35 = vsel %vm1852_vm7, %v4125_v33, %v3660_v53 }
 0x56c   : > { %3295 = vrot.lane.b32.xlu0 %v7790_v1, %s5243_s26  ;;  %v3662_v54 = vpop.permute.xlu1 %3661 }
 0x56d   : > { %v4158_v61 = vsel %vm1852_vm7, %v4126_v62, %v3662_v54 }
 0x56e   : > { %v7803_v5 = vpop.permute.xlu0 %3279  ;;  %3297 = vrot.lane.b32.xlu1 %v7797_v26, %s5243_s26 }
 0x56f   : > { %v4063_v53 = vsel %vm1753_vm4, %v4031_v42, %v7803_v5 }
 0x570   : > { %3803 = vrot.lane.b32.xlu0 %v2917_v32, %s5247_s15  ;;  %v7808_v60 = vpop.permute.xlu1 %3281 }
 0x572   : > { %v3788_v44 = vpop.permute.xlu0 %3787  ;;  %3805 = vrot.lane.b32.xlu1 %v2918_v3, %s5247_s15 }
 0x573   : > { %v4189_v59 = vsel %vm1885_vm8, %v4157_v35, %v3788_v44  ;;  %v4000_v44 = vsel %vm258_vm0, %v7514_v23, %v7341_v2 }
 0x574   : > { %3423 = vrot.lane.b32.xlu0 %v2917_v32, %s5244_s27  ;;  %v3790_v15 = vpop.permute.xlu1 %3789  ;;  %v2951_v32 = vld [vmem:[#allocation3 + $0x152] sm:$0xff]  ;;  %v4032_v37 = vsel %vm1720_vm3, %v4000_v44, %v7795_v48 }
 0x575   : > { %v4190_v41 = vsel %vm1885_vm8, %v4158_v61, %v3790_v15  ;;  %v4064_v51 = vsel %vm1753_vm4, %v4032_v37, %v7808_v60  ;;  %v2921_v61 = vld [vmem:[#allocation3 + $0x169] sm:$0xff]  ;;  %v2922_v44 = vld [vmem:[#allocation3 + $0x171] sm:$0xff] }
 0x576   : > { %v3408_v31 = vpop.permute.xlu0 %3407  ;;  %3425 = vrot.lane.b32.xlu1 %v2918_v3, %s5244_s27 }
 0x578   : > { %3931 = vrot.lane.b32.xlu0 %v2949_v8, %s5248_s16  ;;  %v3410_v30 = vpop.permute.xlu1 %3409 }
 0x579   : > { %v4096_v2 = vsel %vm1786_vm5, %v4064_v51, %v3410_v30 }
 0x57a   : > { %v3916_v24 = vpop.permute.xlu0 %3915  ;;  %3933 = vrot.lane.b32.xlu1 %v2950_v20, %s5248_s16 }
 0x57b   : > { %v4221_v9 = vsel %vm1918_vm9, %v4189_v59, %v3916_v24 }
 0x57c   : > { %3551 = vrot.lane.b32.xlu0 %v2949_v8, %s5245_s7  ;;  %5170 = vmatprep.mubr.msk.f32.mxu1 %vm1957_vm10, %v4221_v9  ;;  %v3918_v29 = vpop.permute.xlu1 %3917 }
 0x57d   : > { %v4222_v47 = vsel %vm1918_vm9, %v4190_v41, %v3918_v29  ;;  %v7924_v41 = vld [vmem:[#allocation3 + $0x170] sm:$0xff] }
 0x57e   : > { %v3536_v43 = vpop.permute.xlu0 %3535  ;;  %3171 = vrot.lane.b32.xlu1 %v2949_v8, %s5242_s25  ;;  %5171 = vmatmul.mubr.msk.f32.gmra.mrb[14].mxu1 %vm1957_vm10, %v4222_v47 }
 0x580   : > { %3045 = vrot.lane.b32.xlu0 %v2918_v3, %s5241_s24  ;;  %v3538_v25 = vpop.permute.xlu1 %3537  ;;  %v4095_v3 = vsel %vm1786_vm5, %v4063_v53, %v3408_v31 }
 0x581   : > { %v4127_v4 = vsel %vm1819_vm6, %v4095_v3, %v3536_v43  ;;  %v4128_v18 = vsel %vm1819_vm6, %v4096_v2, %v3538_v25  ;;  %v4001_v43 = vsel %vm258_vm0, %v7564_v21, %v7349_v14 }
 0x582   : > { %v7844_v10 = vpop.permute.xlu0 %3155  ;;  %3679 = vrot.lane.b32.xlu1 %v7846_v22, %s5246_s12 }
 0x583   : > { %v4033_v47 = vsel %vm1720_vm3, %v4001_v43, %v7844_v10  ;;  %v8820_v43 = vld [vmem:[#allocation52_spill] sm:$0xff] }
 0x584   : > { %3553 = vrot.lane.b32.xlu0 %v2950_v20, %s5245_s7  ;;  %v7851_v16 = vpop.permute.xlu1 %3157 }
 0x586   : > { %v3664_v63 = vpop.permute.xlu0 %3663  ;;  %3299 = vrot.lane.b32.xlu1 %v7846_v22, %s5243_s26 }
 0x587   : > { %v4159_v5 = vsel %vm1852_vm7, %v4127_v4, %v3664_v63 }
 0x588   : > { %3173 = vrot.lane.b32.xlu0 %v2950_v20, %s5242_s25  ;;  %v3666_v7 = vpop.permute.xlu1 %3665 }
 0x589   : > { %v4160_v48 = vsel %vm1852_vm7, %v4128_v18, %v3666_v7 }
 0x58a   : > { %v7856_v6 = vpop.permute.xlu0 %3283  ;;  %3807 = vrot.lane.b32.xlu1 %v2919_v28, %s5247_s15 }
 0x58b   : > { %v4065_v63 = vsel %vm1753_vm4, %v4033_v47, %v7856_v6  ;;  %v4004_v47 = vsel %vm258_vm0, %v7629_v52, %v8820_v43  ;;  %v8822_v43 = vld [vmem:[#allocation36_spill] sm:$0xff] }
 0x58c   : > { %3681 = vrot.lane.b32.xlu0 %v7858_v50, %s5246_s12  ;;  %v7863_v13 = vpop.permute.xlu1 %3285 }
 0x58d   : > { %v7865_v55 = vpop.f32.mrb[0].mxu1 }
 0x58e   : > { %v3792_v11 = vpop.permute.xlu0 %3791  ;;  %v7867_v40 = vpop.f32.mrb[1].mxu1  ;;  %3427 = vrot.lane.b32.xlu1 %v2919_v28, %s5244_s27 }
 0x58f   : > { %v4191_v23 = vsel %vm1885_vm8, %v4159_v5, %v3792_v11 }
 0x590   : > { %3301 = vrot.lane.b32.xlu0 %v7858_v50, %s5243_s26  ;;  %v3794_v19 = vpop.permute.xlu1 %3793 }
 0x591   : > { %v4192_v60 = vsel %vm1885_vm8, %v4160_v48, %v3794_v19 }
 0x592   : > { %v3412_v54 = vpop.permute.xlu0 %3411  ;;  %3935 = vrot.lane.b32.xlu1 %v2951_v32, %s5248_s16 }
 0x593   : > { %v4097_v27 = vsel %vm1786_vm5, %v4065_v63, %v3412_v54  ;;  %v2953_v54 = vld [vmem:[#allocation3 + $0x16a] sm:$0xff] }
 0x594   : > { %3809 = vrot.lane.b32.xlu0 %v2920_v39, %s5247_s15  ;;  %v3414_v46 = vpop.permute.xlu1 %3413  ;;  %v2892_v63 = vld [vmem:[#allocation3 + $0x188] sm:$0xff] }
 0x596   : > { %v3920_v15 = vpop.permute.xlu0 %3919  ;;  %3429 = vrot.lane.b32.xlu1 %v2920_v39, %s5244_s27 }
 0x597   : > { %v4223_v31 = vsel %vm1918_vm9, %v4191_v23, %v3920_v15 }
 0x598   : > { %3047 = vrot.lane.b32.xlu0 %v2919_v28, %s5241_s24  ;;  %5173 = vmatprep.mubr.msk.f32.mxu1 %vm1957_vm10, %v4223_v31  ;;  %v3922_v57 = vpop.permute.xlu1 %3921  ;;  %v8818_v28 = vld [vmem:[#allocation34_spill] sm:$0xff] }
 0x599   : > { %v4224_v8 = vsel %vm1918_vm9, %v4192_v60, %v3922_v57  ;;  %v4002_v11 = vsel %vm258_vm0, %v7571_v17, %v8818_v28  ;;  %v2891_v31 = vld [vmem:[#allocation3 + $0x180] sm:$0xff] }
 0x59a   : > { %v3540_v56 = vpop.permute.xlu0 %3539  ;;  %3937 = vrot.lane.b32.xlu1 %v2952_v36, %s5248_s16  ;;  %5174 = vmatmul.mubr.msk.f32.gmra.mrb[16].mxu1 %vm1957_vm10, %v4224_v8  ;;  %v4034_v14 = vsel %vm1720_vm3, %v4002_v11, %v7851_v16  ;;  %v8819_v8 = vld [vmem:[#allocation35_spill] sm:$0xff] }
 0x59b   : > { %v4129_v21 = vsel %vm1819_vm6, %v4097_v27, %v3540_v56  ;;  %v4066_v10 = vsel %vm1753_vm4, %v4034_v14, %v7863_v13 }
 0x59c   : > { %3555 = vrot.lane.b32.xlu0 %v2951_v32, %s5245_s7  ;;  %v3542_v33 = vpop.permute.xlu1 %3541  ;;  %v4098_v17 = vsel %vm1786_vm5, %v4066_v10, %v3414_v46  ;;  %v2954_v46 = vld [vmem:[#allocation3 + $0x172] sm:$0xff] }
 0x59e   : > { %v7904_v0 = vpop.permute.xlu0 %3159  ;;  %3175 = vrot.lane.b32.xlu1 %v2951_v32, %s5242_s25  ;;  %v4130_v32 = vsel %vm1819_vm6, %v4098_v17, %v3542_v33  ;;  %v2955_v17 = vld [vmem:[#allocation3 + $0x182] sm:$0xff] }
 0x5a0   : > { %3049 = vrot.lane.b32.xlu0 %v2920_v39, %s5241_s24  ;;  %v7908_v35 = vpop.permute.xlu1 %3161 }
 0x5a2   : > { %v3668_v30 = vpop.permute.xlu0 %3667  ;;  %3683 = vrot.lane.b32.xlu1 %v7910_v34, %s5246_s12 }
 0x5a3   : > { %v4161_v6 = vsel %vm1852_vm7, %v4129_v21, %v3668_v30 }
 0x5a4   : > { %3557 = vrot.lane.b32.xlu0 %v2952_v36, %s5245_s7  ;;  %v3670_v59 = vpop.permute.xlu1 %3669 }
 0x5a5   : > { %v4162_v3 = vsel %vm1852_vm7, %v4130_v32, %v3670_v59 }
 0x5a6   : > { %v7915_v24 = vpop.permute.xlu0 %3287  ;;  %3303 = vrot.lane.b32.xlu1 %v7910_v34, %s5243_s26 }
 0x5a8   : > { %3177 = vrot.lane.b32.xlu0 %v2952_v36, %s5242_s25  ;;  %v7920_v20 = vpop.permute.xlu1 %3289  ;;  %v4003_v36 = vsel %vm258_vm0, %v7622_v38, %v8819_v8  ;;  %v4036_v38 = vsel %vm1720_vm3, %v4004_v47, %v7908_v35  ;;  %v4006_v47 = vsel %vm258_vm0, %v7685_v45, %v8822_v43 }
 0x5a9   : > { %v7922_v9 = vpop.f32.mrb[2].mxu1  ;;  %v4035_v33 = vsel %vm1720_vm3, %v4003_v36, %v7904_v0 }
 0x5aa   : > { %v3796_v62 = vpop.permute.xlu0 %3795  ;;  %3811 = vrot.lane.b32.xlu1 %v2921_v61, %s5247_s15  ;;  %v7927_v29 = vpop.f32.mrb[3].mxu1  ;;  %v4067_v59 = vsel %vm1753_vm4, %v4035_v33, %v7915_v24  ;;  %v4068_v24 = vsel %vm1753_vm4, %v4036_v38, %v7920_v20 }
 0x5ab   : > { %v4193_v19 = vsel %vm1885_vm8, %v4161_v6, %v3796_v62 }
 0x5ac   : > { %3685 = vrot.lane.b32.xlu0 %v7924_v41, %s5246_s12  ;;  %v3798_v25 = vpop.permute.xlu1 %3797 }
 0x5ad   : > { %v4194_v13 = vsel %vm1885_vm8, %v4162_v3, %v3798_v25 }
 0x5ae   : > { %v3416_v7 = vpop.permute.xlu0 %3415  ;;  %3431 = vrot.lane.b32.xlu1 %v2921_v61, %s5244_s27 }
 0x5af   : > { %v4099_v25 = vsel %vm1786_vm5, %v4067_v59, %v3416_v7 }
 0x5b0   : > { %3305 = vrot.lane.b32.xlu0 %v7924_v41, %s5243_s26  ;;  %v3418_v42 = vpop.permute.xlu1 %3417 }
 0x5b1   : > { %v4100_v52 = vsel %vm1786_vm5, %v4068_v24, %v3418_v42 }
 0x5b2   : > { %v3924_v53 = vpop.permute.xlu0 %3923  ;;  %3939 = vrot.lane.b32.xlu1 %v2953_v54, %s5248_s16 }
 0x5b3   : > { %v4225_v16 = vsel %vm1918_vm9, %v4193_v19, %v3924_v53  ;;  %v2924_v19 = vld [vmem:[#allocation3 + $0x189] sm:$0xff] }
 0x5b4   : > { %3813 = vrot.lane.b32.xlu0 %v2922_v44, %s5247_s15  ;;  %5176 = vmatprep.mubr.msk.f32.mxu1 %vm1957_vm10, %v4225_v16  ;;  %v3926_v39 = vpop.permute.xlu1 %3925 }
 0x5b5   : > { %v4226_v4 = vsel %vm1918_vm9, %v4194_v13, %v3926_v39  ;;  %v2894_v39 = vld [vmem:[#allocation3 + $0x1a0] sm:$0xff] }
 0x5b6   : > { %v3544_v37 = vpop.permute.xlu0 %3543  ;;  %3433 = vrot.lane.b32.xlu1 %v2922_v44, %s5244_s27  ;;  %5177 = vmatmul.mubr.msk.f32.gmra.mrb[18].mxu1 %vm1957_vm10, %v4226_v4 }
 0x5b7   : > { %v4131_v0 = vsel %vm1819_vm6, %v4099_v25, %v3544_v37  ;;  %v2893_v37 = vld [vmem:[#allocation3 + $0x198] sm:$0xff] }
 0x5b8   : > { %3051 = vrot.lane.b32.xlu0 %v2921_v61, %s5241_s24  ;;  %v3546_v51 = vpop.permute.xlu1 %3545  ;;  %v2923_v61 = vld [vmem:[#allocation3 + $0x181] sm:$0xff] }
 0x5b9   : > { %v4132_v14 = vsel %vm1819_vm6, %v4100_v52, %v3546_v51 }
 0x5ba   : > { %v7964_v5 = vpop.permute.xlu0 %3163  ;;  %3941 = vrot.lane.b32.xlu1 %v2954_v46, %s5248_s16 }
 0x5bc   : > { %3559 = vrot.lane.b32.xlu0 %v2953_v54, %s5245_s7  ;;  %v7968_v2 = vpop.permute.xlu1 %3165 }
 0x5be   : > { %v3672_v23 = vpop.permute.xlu0 %3671  ;;  %3179 = vrot.lane.b32.xlu1 %v2953_v54, %s5242_s25 }
 0x5bf   : > { %v4163_v28 = vsel %vm1852_vm7, %v4131_v0, %v3672_v23  ;;  %v2926_v23 = vld [vmem:[#allocation3 + $0x1a1] sm:$0xff] }
 0x5c0   : > { %3053 = vrot.lane.b32.xlu0 %v2922_v44, %s5241_s24  ;;  %v3674_v15 = vpop.permute.xlu1 %3673  ;;  %v2956_v44 = vld [vmem:[#allocation3 + $0x18a] sm:$0xff] }
 0x5c1   : > { %v4164_v35 = vsel %vm1852_vm7, %v4132_v14, %v3674_v15  ;;  %v2925_v15 = vld [vmem:[#allocation3 + $0x199] sm:$0xff] }
 0x5c2   : > { %v7972_v18 = vpop.permute.xlu0 %3291  ;;  %3687 = vrot.lane.b32.xlu1 %v2891_v31, %s5246_s12 }
 0x5c4   : > { %3561 = vrot.lane.b32.xlu0 %v2954_v46, %s5245_s7  ;;  %v7976_v48 = vpop.permute.xlu1 %3293 }
 0x5c5   : > { %v7978_v57 = vpop.f32.mrb[4].mxu1 }
 0x5c6   : > { %v3800_v60 = vpop.permute.xlu0 %3799  ;;  %3307 = vrot.lane.b32.xlu1 %v2891_v31, %s5243_s26  ;;  %v7981_v56 = vpop.f32.mrb[5].mxu1 }
 0x5c7   : > { %v4195_v7 = vsel %vm1885_vm8, %v4163_v28, %v3800_v60  ;;  %v8821_v60 = vld [vmem:[#allocation37_spill] sm:$0xff] }
 0x5c8   : > { %3181 = vrot.lane.b32.xlu0 %v2954_v46, %s5242_s25  ;;  %v3802_v30 = vpop.permute.xlu1 %3801  ;;  %v4005_v8 = vsel %vm258_vm0, %v7678_v12, %v8821_v60  ;;  %v4038_v12 = vsel %vm1720_vm3, %v4006_v47, %v7968_v2 }
 0x5c9   : > { %v4196_v20 = vsel %vm1885_vm8, %v4164_v35, %v3802_v30  ;;  %v4037_v36 = vsel %vm1720_vm3, %v4005_v8, %v7964_v5 }
 0x5ca   : > { %v3420_v62 = vpop.permute.xlu0 %3419  ;;  %3815 = vrot.lane.b32.xlu1 %v2923_v61, %s5247_s15  ;;  %v4069_v30 = vsel %vm1753_vm4, %v4037_v36, %v7972_v18  ;;  %v4070_v18 = vsel %vm1753_vm4, %v4038_v12, %v7976_v48 }
 0x5cb   : > { %v4101_v25 = vsel %vm1786_vm5, %v4069_v30, %v3420_v62  ;;  %v8824_v30 = vld [vmem:[#allocation38_spill] sm:$0xff] }
 0x5cc   : > { %3689 = vrot.lane.b32.xlu0 %v2892_v63, %s5246_s12  ;;  %v3422_v11 = vpop.permute.xlu1 %3421 }
 0x5cd   : > { %v4102_v45 = vsel %vm1786_vm5, %v4070_v18, %v3422_v11 }
 0x5ce   : > { %v3928_v27 = vpop.permute.xlu0 %3927  ;;  %3435 = vrot.lane.b32.xlu1 %v2923_v61, %s5244_s27  ;;  %v2958_v61 = vld [vmem:[#allocation3 + $0x1a2] sm:$0xff] }
 0x5cf   : > { %v4227_v21 = vsel %vm1918_vm9, %v4195_v7, %v3928_v27 }
 0x5d0   : > { %3309 = vrot.lane.b32.xlu0 %v2892_v63, %s5243_s26  ;;  %5179 = vmatprep.mubr.msk.f32.mxu1 %vm1957_vm10, %v4227_v21  ;;  %v3930_v10 = vpop.permute.xlu1 %3929  ;;  %v2957_v63 = vld [vmem:[#allocation3 + $0x19a] sm:$0xff] }
 0x5d1   : > { %v4228_v42 = vsel %vm1918_vm9, %v4196_v20, %v3930_v10 }
 0x5d2   : > { %v3548_v6 = vpop.permute.xlu0 %3547  ;;  %3943 = vrot.lane.b32.xlu1 %v2955_v17, %s5248_s16  ;;  %5180 = vmatmul.mubr.msk.f32.gmra.mrb[20].mxu1 %vm1957_vm10, %v4228_v42 }
 0x5d3   : > { %v4133_v5 = vsel %vm1819_vm6, %v4101_v25, %v3548_v6 }
 0x5d4   : > { %3817 = vrot.lane.b32.xlu0 %v2924_v19, %s5247_s15  ;;  %v3550_v53 = vpop.permute.xlu1 %3549 }
 0x5d5   : > { %v4134_v28 = vsel %vm1819_vm6, %v4102_v45, %v3550_v53  ;;  %v8823_v53 = vld [vmem:[#allocation39_spill] sm:$0xff] }
 0x5d6   : > { %v3168_v54 = vpop.permute.xlu0 %3167  ;;  %3563 = vrot.lane.b32.xlu1 %v2955_v17, %s5245_s7 }
 0x5d8   : > { %3437 = vrot.lane.b32.xlu0 %v2924_v19, %s5244_s27  ;;  %v8018_v32 = vpop.permute.xlu1 %3169 }
 0x5da   : > { %v3676_v16 = vpop.permute.xlu0 %3675  ;;  %3565 = vrot.lane.b32.xlu1 %v2956_v44, %s5245_s7  ;;  %s8597_s7 = scalar_lea.vmem %s8707_s5, %s5005_s20 }
 0x5db   : > { %v4165_v38 = vsel %vm1852_vm7, %v4133_v5, %v3676_v16  ;;  %v4007_v16 = vsel %vm258_vm0, %v7734_v49, %v8823_v53 }
 0x5dc   : > { %3945 = vrot.lane.b32.xlu0 %v2956_v44, %s5248_s16  ;;  %v3678_v3 = vpop.permute.xlu1 %3677 }
 0x5dd   : > { %v4166_v2 = vsel %vm1852_vm7, %v4134_v28, %v3678_v3  ;;  %v4039_v3 = vsel %vm1720_vm3, %v4007_v16, %v3168_v54  ;;  %v4008_v54 = vsel %vm258_vm0, %v7741_v58, %v8824_v30 }
 0x5de   : > { %v3296_v13 = vpop.permute.xlu0 %3295  ;;  %3693 = vrot.lane.b32.xlu1 %v2894_v39, %s5246_s12 }
 0x5df   : > { %v4071_v39 = vsel %vm1753_vm4, %v4039_v3, %v3296_v13  ;;  %v4040_v13 = vsel %vm1720_vm3, %v4008_v54, %v8018_v32 }
 0x5e0   : > { %3691 = vrot.lane.b32.xlu0 %v2893_v37, %s5246_s12  ;;  %v3298_v4 = vpop.permute.xlu1 %3297 }
 0x5e1   : > { %v8024_v46 = vpop.f32.mrb[6].mxu1 }
 0x5e2   : > { %v3804_v51 = vpop.permute.xlu0 %3803  ;;  %3821 = vrot.lane.b32.xlu1 %v2926_v23, %s5247_s15  ;;  %v8027_v31 = vpop.f32.mrb[7].mxu1 }
 0x5e3   : > { %v4197_v62 = vsel %vm1885_vm8, %v4165_v38, %v3804_v51 }
 0x5e4   : > { %3819 = vrot.lane.b32.xlu0 %v2925_v15, %s5247_s15  ;;  %v3806_v33 = vpop.permute.xlu1 %3805 }
 0x5e5   : > { %v4198_v7 = vsel %vm1885_vm8, %v4166_v2, %v3806_v33 }
 0x5e6   : > { %v3424_v59 = vpop.permute.xlu0 %3423  ;;  %3949 = vrot.lane.b32.xlu1 %v2958_v61, %s5248_s16 }
 0x5e7   : > { %v4103_v51 = vsel %vm1786_vm5, %v4071_v39, %v3424_v59  ;;  %v4072_v59 = vsel %vm1753_vm4, %v4040_v13, %v3298_v4 }
 0x5e8   : > { %3947 = vrot.lane.b32.xlu0 %v2957_v63, %s5248_s16  ;;  %v3426_v0 = vpop.permute.xlu1 %3425 }
 0x5e9   : > { %v4104_v43 = vsel %vm1786_vm5, %v4072_v59, %v3426_v0 }
 0x5ea   : > { %v3932_v24 = vpop.permute.xlu0 %3931 }
 0x5eb   : > { %v4229_v52 = vsel %vm1918_vm9, %v4197_v62, %v3932_v24 }
 0x5ec   : > { %5182 = vmatprep.mubr.msk.f32.mxu1 %vm1957_vm10, %v4229_v52  ;;  %v3934_v27 = vpop.permute.xlu1 %3933 }
 0x5ed   : > { %v4230_v14 = vsel %vm1918_vm9, %v4198_v7, %v3934_v27  ;;  %v8825_v7 = vld [vmem:[#allocation40_spill] sm:$0xff] }
 0x5ee   : > { %v3552_v48 = vpop.permute.xlu0 %3551  ;;  %5183 = vmatmul.mubr.msk.f32.gmra.mrb[22].mxu1 %vm1957_vm10, %v4230_v14  ;;  %v4009_v27 = vsel %vm258_vm0, %v7790_v1, %v8825_v7 }
 0x5ef   : > { %v4135_v15 = vsel %vm1819_vm6, %v4103_v51, %v3552_v48 }
 0x5f0   : > { %v3172_v11 = vpop.permute.xlu1 %3171 }
 0x5f1   : > { %v4041_v48 = vsel %vm1720_vm3, %v4009_v27, %v3172_v11 }
 0x5f2   : > { %v3046_v21 = vpop.permute.xlu0 %3045 }
 0x5f3   : > { %v4010_v1 = vsel %vm258_vm0, %v7797_v26, %v3046_v21 }
 0x5f4   : > { %v3680_v35 = vpop.permute.xlu1 %3679 }
 0x5f5   : > { %v4167_v60 = vsel %vm1852_vm7, %v4135_v15, %v3680_v35 }
 0x5f6   : > { %v3554_v20 = vpop.permute.xlu0 %3553 }
 0x5f7   : > { %v4136_v25 = vsel %vm1819_vm6, %v4104_v43, %v3554_v20 }
 0x5f8   : > { %v3300_v10 = vpop.permute.xlu1 %3299 }
 0x5f9   : > { %v4073_v14 = vsel %vm1753_vm4, %v4041_v48, %v3300_v10 }
 0x5fa   : > { %v3174_v6 = vpop.permute.xlu0 %3173 }
 0x5fb   : > { %v4042_v11 = vsel %vm1720_vm3, %v4010_v1, %v3174_v6 }
 0x5fc   : > { %v3808_v42 = vpop.permute.xlu1 %3807 }
 0x5fd   : > { %v8058_v19 = vpop.f32.mrb[8].mxu1  ;;  %v4199_v8 = vsel %vm1885_vm8, %v4167_v60, %v3808_v42 }
 0x5fe   : > { %v3682_v17 = vpop.permute.xlu0 %3681  ;;  %v8063_v44 = vpop.f32.mrb[9].mxu1 }
 0x5ff   : > { %v4168_v63 = vsel %vm1852_vm7, %v4136_v25, %v3682_v17 }
 0x600   : > { %v3428_v37 = vpop.permute.xlu1 %3427 }
 0x601   : > { %v4105_v20 = vsel %vm1786_vm5, %v4073_v14, %v3428_v37 }
 0x602   : > { %v3302_v23 = vpop.permute.xlu0 %3301 }
 0x603   : > { %v4074_v10 = vsel %vm1753_vm4, %v4042_v11, %v3302_v23 }
 0x604   : > { %v3936_v36 = vpop.permute.xlu1 %3935 }
 0x605   : > { %v4231_v49 = vsel %vm1918_vm9, %v4199_v8, %v3936_v36 }
 0x606   : > { %v3810_v33 = vpop.permute.xlu0 %3809  ;;  %5185 = vmatprep.mubr.msk.f32.mxu1 %vm1957_vm10, %v4231_v49 }
 0x607   : > { %v4200_v12 = vsel %vm1885_vm8, %v4168_v63, %v3810_v33 }
 0x608   : > { %v3430_v61 = vpop.permute.xlu1 %3429 }
 0x609   : > { %v4106_v15 = vsel %vm1786_vm5, %v4074_v10, %v3430_v61 }
 0x60a   : > { %v3048_v47 = vpop.permute.xlu0 %3047 }
 0x60c   : > { %v3938_v5 = vpop.permute.xlu1 %3937 }
 0x60d   : > { %v4232_v58 = vsel %vm1918_vm9, %v4200_v12, %v3938_v5  ;;  %v4011_v12 = vsel %vm258_vm0, %v7846_v22, %v3048_v47 }
 0x60e   : > { %v3556_v18 = vpop.permute.xlu0 %3555  ;;  %5186 = vmatmul.mubr.msk.f32.gmra.mrb[24].mxu1 %vm1957_vm10, %v4232_v58 }
 0x60f   : > { %v4137_v17 = vsel %vm1819_vm6, %v4105_v20, %v3556_v18 }
 0x610   : > { %v3176_v38 = vpop.permute.xlu1 %3175 }
 0x611   : > { %v4043_v5 = vsel %vm1720_vm3, %v4011_v12, %v3176_v38 }
 0x612   : > { %v3050_v32 = vpop.permute.xlu0 %3049 }
 0x613   : > { %v4012_v22 = vsel %vm258_vm0, %v7858_v50, %v3050_v32 }
 0x614   : > { %v3684_v45 = vpop.permute.xlu1 %3683 }
 0x615   : > { %v4169_v53 = vsel %vm1852_vm7, %v4137_v17, %v3684_v45 }
 0x616   : > { %v3558_v4 = vpop.permute.xlu0 %3557 }
 0x617   : > { %v4138_v8 = vsel %vm1819_vm6, %v4106_v15, %v3558_v4 }
 0x618   : > { %v3304_v62 = vpop.permute.xlu1 %3303 }
 0x619   : > { %v8085_v0 = vpop.f32.mrb[10].mxu1  ;;  %v4075_v18 = vsel %vm1753_vm4, %v4043_v5, %v3304_v62 }
 0x61a   : > { %v3178_v24 = vpop.permute.xlu0 %3177  ;;  %v8087_v28 = vpop.f32.mrb[11].mxu1 }
 0x61b   : > { %v4044_v47 = vsel %vm1720_vm3, %v4012_v22, %v3178_v24 }
 0x61c   : > { %v3812_v52 = vpop.permute.xlu1 %3811 }
 0x61d   : > { %v4201_v16 = vsel %vm1885_vm8, %v4169_v53, %v3812_v52 }
 0x61e   : > { %v3686_v2 = vpop.permute.xlu0 %3685 }
 0x61f   : > { %v4170_v36 = vsel %vm1852_vm7, %v4138_v8, %v3686_v2 }
 0x620   : > { %v3432_v35 = vpop.permute.xlu1 %3431 }
 0x621   : > { %v4107_v45 = vsel %vm1786_vm5, %v4075_v18, %v3432_v35 }
 0x622   : > { %v3306_v42 = vpop.permute.xlu0 %3305 }
 0x623   : > { %v4076_v62 = vsel %vm1753_vm4, %v4044_v47, %v3306_v42 }
 0x624   : > { %v3940_v3 = vpop.permute.xlu1 %3939 }
 0x625   : > { %v4233_v51 = vsel %vm1918_vm9, %v4201_v16, %v3940_v3 }
 0x626   : > { %v3814_v39 = vpop.permute.xlu0 %3813  ;;  %5188 = vmatprep.mubr.msk.f32.mxu1 %vm1957_vm10, %v4233_v51 }
 0x627   : > { %v4202_v33 = vsel %vm1885_vm8, %v4170_v36, %v3814_v39 }
 0x628   : > { %v3434_v37 = vpop.permute.xlu1 %3433 }
 0x629   : > { %v4108_v20 = vsel %vm1786_vm5, %v4076_v62, %v3434_v37 }
 0x62a   : > { %v3052_v60 = vpop.permute.xlu0 %3051 }
 0x62b   : > { %v4013_v11 = vsel %vm258_vm0, %v7910_v34, %v3052_v60 }
 0x62c   : > { %v3942_v49 = vpop.permute.xlu1 %3941 }
 0x62d   : > { %v4234_v26 = vsel %vm1918_vm9, %v4202_v33, %v3942_v49 }
 0x62e   : > { %v3560_v30 = vpop.permute.xlu0 %3559  ;;  %5189 = vmatmul.mubr.msk.f32.gmra.mrb[26].mxu1 %vm1957_vm10, %v4234_v26 }
 0x62f   : > { %v4139_v52 = vsel %vm1819_vm6, %v4107_v45, %v3560_v30 }
 0x630   : > { %v3180_v21 = vpop.permute.xlu1 %3179 }
 0x631   : > { %v4045_v37 = vsel %vm1720_vm3, %v4013_v11, %v3180_v21 }
 0x632   : > { %v3054_v6 = vpop.permute.xlu0 %3053 }
 0x633   : > { %v4014_v42 = vsel %vm258_vm0, %v7924_v41, %v3054_v6 }
 0x634   : > { %v3688_v54 = vpop.permute.xlu1 %3687 }
 0x635   : > { %v8110_v13 = vpop.f32.mrb[12].mxu1  ;;  %v4171_v2 = vsel %vm1852_vm7, %v4139_v52, %v3688_v54  ;;  %v8171_v52 = vld [vmem:[%s8706_s4] ss:$0 sm:$0xff] }
 0x636   : > { %v3562_v23 = vpop.permute.xlu0 %3561  ;;  %v8112_v59 = vpop.f32.mrb[13].mxu1  ;;  %v8229_v11 = vadd.f32 %v8058_v19, %v8171_v52 }
 0x637   : > { %v4140_v17 = vsel %vm1819_vm6, %v4108_v20, %v3562_v23  ;;  %v8205_v20 = vadd.f32 %v7978_v57, %v8171_v52  ;;  %v8221_v57 = vadd.f32 %v8171_v52, %v8063_v44  ;;  %v8245_v19 = vadd.f32 %v8171_v52, %v8112_v59 }
 0x638   : > { %v3308_v61 = vpop.permute.xlu1 %3307  ;;  %v4586_v44 = vsel %vm258_vm0, %v8229_v11, 0.0 }
 0x639   : > { %v4077_v36 = vsel %vm1753_vm4, %v4045_v37, %v3308_v61 }
 0x63a   : > { %v3182_v43 = vpop.permute.xlu0 %3181 }
 0x63b   : > { %v4046_v10 = vsel %vm1720_vm3, %v4014_v42, %v3182_v43 }
 0x63c   : > { %v3816_v25 = vpop.permute.xlu1 %3815 }
 0x63d   : > { %v4203_v7 = vsel %vm1885_vm8, %v4171_v2, %v3816_v25  ;;  %v8175_v2 = vadd.f32 %v7865_v55, %v8171_v52  ;;  %v8193_v55 = vadd.f32 %v7922_v9, %v8171_v52  ;;  %v8209_v9 = vadd.f32 %v8171_v52, %v8027_v31 }
 0x63e   : > { %v3690_v63 = vpop.permute.xlu0 %3689 }
 0x63f   : > { %v4172_v53 = vsel %vm1852_vm7, %v4140_v17, %v3690_v63 }
 0x640   : > { %v3436_v58 = vpop.permute.xlu1 %3435 }
 0x641   : > { %v4109_v30 = vsel %vm1786_vm5, %v4077_v36, %v3436_v58 }
 0x642   : > { %v3310_v4 = vpop.permute.xlu0 %3309 }
 0x643   : > { %v4078_v15 = vsel %vm1753_vm4, %v4046_v10, %v3310_v4 }
 0x644   : > { %v3944_v27 = vpop.permute.xlu1 %3943 }
 0x645   : > { %v4235_v14 = vsel %vm1918_vm9, %v4203_v7, %v3944_v27  ;;  %v8179_v7 = vadd.f32 %v8171_v52, %v7867_v40  ;;  %v8183_v27 = vadd.f32 %v8171_v52, %v7927_v29  ;;  %v8197_v40 = vadd.f32 %v8171_v52, %v7981_v56 }
 0x646   : > { %v3818_v48 = vpop.permute.xlu0 %3817  ;;  %5191 = vmatprep.mubr.msk.f32.mxu1 %vm1957_vm10, %v4235_v14  ;;  %v4578_v56 = vsel %vm258_vm0, %v8205_v20, 0.0 }
 0x647   : > { %v4204_v3 = vsel %vm1885_vm8, %v4172_v53, %v3818_v48  ;;  %v4570_v48 = vsel %vm258_vm0, %v8175_v2, 0.0  ;;  %v4569_v14 = vsel %vm258_vm0, %v8179_v7, 0.0  ;;  %v4572_v22 = vsel %vm258_vm0, %v8183_v27, 0.0 }
 0x648   : > { %v3564_v38 = vpop.permute.xlu1 %3563  ;;  %v4571_v47 = vadd.f32 %v4570_v48, %v4569_v14  ;;  %v4576_v62 = vsel %vm258_vm0, %v8197_v40, 0.0 }
 0x649   : > { %v4141_v26 = vsel %vm1819_vm6, %v4109_v30, %v3564_v38  ;;  %v4574_v38 = vsel %vm258_vm0, %v8193_v55, 0.0  ;;  %v8253_v30 = vadd.f32 %v8110_v13, %v8171_v52 }
 0x64a   : > { %v3438_v35 = vpop.permute.xlu0 %3437  ;;  %v4573_v29 = vadd.f32 %v4572_v22, %v4571_v47 }
 0x64b   : > { %v4110_v33 = vsel %vm1786_vm5, %v4078_v15, %v3438_v35  ;;  %v4594_v59 = vsel %vm258_vm0, %v8253_v30, 0.0 }
 0x64c   : > { %v3566_v16 = vpop.permute.xlu1 %3565  ;;  %v4575_v35 = vadd.f32 %v4574_v38, %v4573_v29 }
 0x64d   : > { %v4142_v41 = vsel %vm1819_vm6, %v4110_v33, %v3566_v16  ;;  %v4580_v16 = vsel %vm258_vm0, %v8209_v9, 0.0  ;;  %v4592_v33 = vsel %vm258_vm0, %v8245_v19, 0.0 }
 0x64e   : > { %v3946_v39 = vpop.permute.xlu0 %3945  ;;  %v4577_v17 = vadd.f32 %v4576_v62, %v4575_v35 }
 0x64f   : > { %v4236_v51 = vsel %vm1918_vm9, %v4204_v3, %v3946_v39 }
 0x650   : > { %5192 = vmatmul.mubr.msk.f32.gmra.mrb[28].mxu1 %vm1957_vm10, %v4236_v51  ;;  %v3694_v50 = vpop.permute.xlu1 %3693  ;;  %v4579_v39 = vadd.f32 %v4578_v56, %v4577_v17  ;;  %v8217_v51 = vadd.f32 %v8024_v46, %v8171_v52  ;;  %v8233_v46 = vadd.f32 %v8171_v52, %v8087_v28 }
 0x651   : > { %v8134_v24 = vpop.f32.mrb[14].mxu1  ;;  %v4174_v34 = vsel %vm1852_vm7, %v4142_v41, %v3694_v50 }
 0x652   : > { %v3692_v32 = vpop.permute.xlu0 %3691  ;;  %v8138_v1 = vpop.f32.mrb[15].mxu1  ;;  %v4581_v31 = vadd.f32 %v4580_v16, %v4579_v39  ;;  %v4582_v50 = vsel %vm258_vm0, %v8217_v51, 0.0  ;;  %v4588_v37 = vsel %vm258_vm0, %v8233_v46, 0.0 }
 0x653   : > { %v4173_v60 = vsel %vm1852_vm7, %v4141_v26, %v3692_v32  ;;  %v4584_v32 = vsel %vm258_vm0, %v8221_v57, 0.0 }
 0x654   : > { %v3822_v8 = vpop.permute.xlu1 %3821  ;;  %v4583_v42 = vadd.f32 %v4582_v50, %v4581_v31 }
 0x655   : > { %v4206_v21 = vsel %vm1885_vm8, %v4174_v34, %v3822_v8  ;;  %v8241_v8 = vadd.f32 %v8085_v0, %v8171_v52  ;;  %v8257_v0 = vadd.f32 %v8171_v52, %v8138_v1 }
 0x656   : > { %v3820_v49 = vpop.permute.xlu0 %3819  ;;  %v4585_v10 = vadd.f32 %v4584_v32, %v4583_v42 }
 0x657   : > { %v4205_v54 = vsel %vm1885_vm8, %v4173_v60, %v3820_v49  ;;  %v4590_v28 = vsel %vm258_vm0, %v8241_v8, 0.0  ;;  %v4596_v26 = vsel %vm258_vm0, %v8257_v0, 0.0  ;;  %v8265_v60 = vadd.f32 %v8134_v24, %v8171_v52 }
 0x658   : > { %v3950_v6 = vpop.permute.xlu1 %3949  ;;  %v4587_v15 = vadd.f32 %v4586_v44, %v4585_v10 }
 0x659   : > { %v4238_v61 = vsel %vm1918_vm9, %v4206_v21, %v3950_v6  ;;  %v4598_v1 = vsel %vm258_vm0, %v8265_v60, 0.0 }
 0x65a   : > { %v3948_v23 = vpop.permute.xlu0 %3947  ;;  %v4589_v36 = vadd.f32 %v4588_v37, %v4587_v15 }
 0x65b   : > { %v4237_v43 = vsel %vm1918_vm9, %v4205_v54, %v3948_v23 }
 0x65c   : > { %5194 = vmatprep.mubr.msk.f32.mxu1 %vm1957_vm10, %v4237_v43  ;;  %v4591_v49 = vadd.f32 %v4590_v28, %v4589_v36 }
 0x65d   : > { %5195 = vmatmul.mubr.msk.f32.gmra.mrb[30].mxu1 %vm1957_vm10, %v4238_v61 }
 0x65e   : > { %v4593_v41 = vadd.f32 %v4592_v33, %v4591_v49 }
 0x660   : > { %v4595_v34 = vadd.f32 %v4594_v59, %v4593_v41 }
 0x662   : > { %v4597_v13 = vadd.f32 %v4596_v26, %v4595_v34 }
 0x664   : > { %v4599_v54 = vadd.f32 %v4598_v1, %v4597_v13 }
 0x66d   : > { %v5175_v25 = vpop.f32.mrb[16].mxu1 }
 0x66e   : > { %v4490_v63 = vpop.f32.mrb[17].mxu1  ;;  %v8275_v61 = vadd.f32 %v5175_v25, %v8171_v52 }
 0x66f   : > { %v8268_v21 = vadd.f32 %v8171_v52, %v4490_v63 }
 0x670   : > { %v4602_v63 = vsel %vm258_vm0, %v8275_v61, 0.0 }
 0x671   : > { %v4600_v6 = vsel %vm258_vm0, %v8268_v21, 0.0 }
 0x672   : > { %v4601_v48 = vadd.f32 %v4600_v6, %v4599_v54 }
 0x674   : > { %v4603_v22 = vadd.f32 %v4602_v63, %v4601_v48 }
 0x689   : > { %v8158_v12 = vpop.f32.mrb[18].mxu1 }
 0x68a   : > { %v4500_v5 = vpop.f32.mrb[19].mxu1  ;;  %v8286_v47 = vadd.f32 %v8158_v12, %v8171_v52 }
 0x68b   : > { %v8278_v43 = vadd.f32 %v8171_v52, %v4500_v5 }
 0x68c   : > { %v4606_v5 = vsel %vm258_vm0, %v8286_v47, 0.0 }
 0x68d   : > { %v4604_v14 = vsel %vm258_vm0, %v8278_v43, 0.0 }
 0x68e   : > { %v4605_v29 = vadd.f32 %v4604_v14, %v4603_v22 }
 0x690   : > { %v4607_v62 = vadd.f32 %v4606_v5, %v4605_v29 }
 0x6a5   : > { %v8160_v18 = vpop.f32.mrb[20].mxu1 }
 0x6a6   : > { %v8162_v58 = vpop.f32.mrb[21].mxu1  ;;  %v8298_v35 = vadd.f32 %v8160_v18, %v8171_v52 }
 0x6a7   : > { %v8290_v25 = vadd.f32 %v8171_v52, %v8162_v58 }
 0x6a8   : > { %v4610_v58 = vsel %vm258_vm0, %v8298_v35, 0.0 }
 0x6a9   : > { %v4608_v38 = vsel %vm258_vm0, %v8290_v25, 0.0 }
 0x6aa   : > { %v4609_v17 = vadd.f32 %v4608_v38, %v4607_v62 }
 0x6ac   : > { %v4611_v16 = vadd.f32 %v4610_v58, %v4609_v17 }
 0x6c1   : > { %v8164_v45 = vpop.f32.mrb[22].mxu1 }
 0x6c2   : > { %v8166_v4 = vpop.f32.mrb[23].mxu1  ;;  %v8310_v39 = vadd.f32 %v8164_v45, %v8171_v52 }
 0x6c3   : > { %v8302_v12 = vadd.f32 %v8171_v52, %v8166_v4 }
 0x6c4   : > { %v4614_v4 = vsel %vm258_vm0, %v8310_v39, 0.0 }
 0x6c5   : > { %v4612_v56 = vsel %vm258_vm0, %v8302_v12, 0.0 }
 0x6c6   : > { %v4613_v18 = vadd.f32 %v4612_v56, %v4611_v16 }
 0x6c8   : > { %v4615_v32 = vadd.f32 %v4614_v4, %v4613_v18 }
 0x6e1   : > { %v5187_v53 = vpop.f32.mrb[24].mxu1 }
 0x6e2   : > { %v4530_v3 = vpop.f32.mrb[25].mxu1  ;;  %v8320_v42 = vadd.f32 %v5187_v53, %v8171_v52 }
 0x6e3   : > { %v8313_v31 = vadd.f32 %v8171_v52, %v4530_v3 }
 0x6e4   : > { %v4618_v45 = vsel %vm258_vm0, %v8320_v42, 0.0 }
 0x6e5   : > { %v4616_v50 = vsel %vm258_vm0, %v8313_v31, 0.0 }
 0x6e6   : > { %v4617_v44 = vadd.f32 %v4616_v50, %v4615_v32 }
 0x6e8   : > { %v4619_v37 = vadd.f32 %v4618_v45, %v4617_v44 }
 0x701   : > { %v5190_v23 = vpop.f32.mrb[26].mxu1 }
 0x702   : > { %v4540_v24 = vpop.f32.mrb[27].mxu1  ;;  %v8330_v15 = vadd.f32 %v5190_v23, %v8171_v52 }
 0x703   : > { %v8323_v10 = vadd.f32 %v8171_v52, %v4540_v24 }
 0x704   : > { %v4622_v53 = vsel %vm258_vm0, %v8330_v15, 0.0 }
 0x705   : > { %v4620_v3 = vsel %vm258_vm0, %v8323_v10, 0.0 }
 0x706   : > { %v4621_v36 = vadd.f32 %v4620_v3, %v4619_v37 }
 0x708   : > { %v4623_v59 = vadd.f32 %v4622_v53, %v4621_v36 }
 0x723   : > { %v5193_v28 = vpop.f32.mrb[28].mxu1 }
 0x724   : > { %v4550_v33 = vpop.f32.mrb[29].mxu1  ;;  %v4556_v49 = vadd.f32 %v5193_v28, %v8171_v52 }
 0x725   : > { %v4551_v41 = vadd.f32 %v8171_v52, %v4550_v33 }
 0x726   : > { %v4626_v13 = vsel %vm258_vm0, %v4556_v49, 0.0 }
 0x727   : > { %v4624_v26 = vsel %vm258_vm0, %v4551_v41, 0.0 }
 0x728   : > { %v4625_v34 = vadd.f32 %v4624_v26, %v4623_v59 }
 0x72a   : > { %v4627_v1 = vadd.f32 %v4626_v13, %v4625_v34 }
 0x730   : > { %v5196_v6 = vpop.f32.mrb[30].mxu1 }
 0x731   : > { %v4560_v54 = vpop.f32.mrb[31].mxu1  ;;  %v4566_v23 = vadd.f32 %v5196_v6, %v8171_v52 }
 0x732   : > { %v4561_v24 = vadd.f32 %v8171_v52, %v4560_v54 }
 0x733   : > { %v4630_v14 = vsel %vm258_vm0, %v4566_v23, 0.0 }
 0x734   : > { %v4628_v48 = vsel %vm258_vm0, %v4561_v24, 0.0 }
 0x735   : > { %v4629_v63 = vadd.f32 %v4628_v48, %v4627_v1 }
 0x737   : > { %v4631_v22 = vadd.f32 %v4630_v14, %v4629_v63 }
 0x739   : > { %v4632_v29 = vrot.slane %v4631_v22, 4 }
 0x73b   : > { %v4633_v5 = vadd.f32 %v4632_v29, %v4631_v22 }
 0x73d   : > { %v4634_v38 = vrot.slane %v4633_v5, 2 }
 0x73f   : > { %v4635_v62 = vadd.f32 %v4634_v38, %v4633_v5 }
 0x741   : > { %v4636_v17 = vrot.slane %v4635_v62, 1 }
 0x743   : > { %v4637_v58 = vadd.f32 %v4636_v17, %v4635_v62 }
 0x745   : > { %v8342_v56 = vmul.f32 0.00390625, %v4637_v58 }
 0x747   : > { %v8345_v16 = vsub.f32 %v4551_v41, %v8342_v56  ;;  %v8348_v18 = vsub.f32 %v4556_v49, %v8342_v56  ;;  %v8351_v52 = vsub.f32 %v4561_v24, %v8342_v56  ;;  %v8354_v4 = vsub.f32 %v4566_v23, %v8342_v56 }
 0x748   : > { %v8358_v50 = vsub.f32 %v8179_v7, %v8342_v56  ;;  %v8362_v32 = vsub.f32 %v8175_v2, %v8342_v56  ;;  %v8366_v44 = vsub.f32 %v8183_v27, %v8342_v56  ;;  %v8370_v45 = vsub.f32 %v8193_v55, %v8342_v56 }
 0x749   : > { %v8378_v7 = vsub.f32 %v8197_v40, %v8342_v56  ;;  %v8384_v27 = vsub.f32 %v8205_v20, %v8342_v56  ;;  %v8392_v53 = vsub.f32 %v8209_v9, %v8342_v56  ;;  %v8399_v20 = vsub.f32 %v8217_v51, %v8342_v56 }
 0x74a   : > { %v4671_v3 = vmul.f32 %v8358_v50, %v8358_v50  ;;  %v4672_v37 = vmul.f32 %v8362_v32, %v8362_v32  ;;  %v4673_v2 = vmul.f32 %v8366_v44, %v8366_v44  ;;  %v4674_v55 = vmul.f32 %v8370_v45, %v8370_v45 }
 0x74b   : > { %v4675_v40 = vmul.f32 %v8378_v7, %v8378_v7  ;;  %v4676_v59 = vmul.f32 %v8384_v27, %v8384_v27  ;;  %v8406_v9 = vsub.f32 %v8221_v57, %v8342_v56  ;;  %v4677_v13 = vmul.f32 %v8392_v53, %v8392_v53 }
 0x74c   : > { %v4703_v36 = vsel %vm258_vm0, %v4671_v3, 0.0  ;;  %v4704_v28 = vsel %vm258_vm0, %v4672_v37, 0.0  ;;  %v4706_v49 = vsel %vm258_vm0, %v4673_v2, 0.0  ;;  %v4708_v26 = vsel %vm258_vm0, %v4674_v55, 0.0 }
 0x74d   : > { %v4705_v33 = vadd.f32 %v4704_v28, %v4703_v36  ;;  %v4710_v1 = vsel %vm258_vm0, %v4675_v40, 0.0  ;;  %v8413_v51 = vsub.f32 %v8229_v11, %v8342_v56  ;;  %v4678_v54 = vmul.f32 %v8399_v20, %v8399_v20 }
 0x74e   : > { %v4712_v23 = vsel %vm258_vm0, %v4676_v59, 0.0  ;;  %v8420_v57 = vsub.f32 %v8233_v46, %v8342_v56  ;;  %v4679_v48 = vmul.f32 %v8406_v9, %v8406_v9  ;;  %v4714_v63 = vsel %vm258_vm0, %v4677_v13, 0.0 }
 0x74f   : > { %v4707_v41 = vadd.f32 %v4706_v49, %v4705_v33  ;;  %v8427_v11 = vsub.f32 %v8241_v8, %v8342_v56  ;;  %v4680_v22 = vmul.f32 %v8413_v51, %v8413_v51  ;;  %v4716_v29 = vsel %vm258_vm0, %v4678_v54, 0.0 }
 0x750   : > { %v8434_v46 = vsub.f32 %v8245_v19, %v8342_v56  ;;  %v4681_v38 = vmul.f32 %v8420_v57, %v8420_v57  ;;  %v4718_v62 = vsel %vm258_vm0, %v4679_v48, 0.0  ;;  %v8441_v8 = vsub.f32 %v8253_v30, %v8342_v56 }
 0x751   : > { %v4709_v34 = vadd.f32 %v4708_v26, %v4707_v41  ;;  %v4682_v58 = vmul.f32 %v8427_v11, %v8427_v11  ;;  %v4720_v3 = vsel %vm258_vm0, %v4680_v22, 0.0  ;;  %v8448_v19 = vsub.f32 %v8257_v0, %v8342_v56 }
 0x752   : > { %v4683_v2 = vmul.f32 %v8434_v46, %v8434_v46  ;;  %v4722_v55 = vsel %vm258_vm0, %v4681_v38, 0.0  ;;  %v8455_v30 = vsub.f32 %v8265_v60, %v8342_v56  ;;  %v4684_v28 = vmul.f32 %v8441_v8, %v8441_v8 }
 0x753   : > { %v4711_v6 = vadd.f32 %v4710_v1, %v4709_v34  ;;  %v4724_v33 = vsel %vm258_vm0, %v4682_v58, 0.0  ;;  %v8462_v0 = vsub.f32 %v8268_v21, %v8342_v56  ;;  %v4685_v49 = vmul.f32 %v8448_v19, %v8448_v19 }
 0x754   : > { %v4726_v41 = vsel %vm258_vm0, %v4683_v2, 0.0  ;;  %v8469_v60 = vsub.f32 %v8275_v61, %v8342_v56  ;;  %v4686_v26 = vmul.f32 %v8455_v30, %v8455_v30  ;;  %v4728_v34 = vsel %vm258_vm0, %v4684_v28, 0.0 }
 0x755   : > { %v4713_v24 = vadd.f32 %v4712_v23, %v4711_v6  ;;  %v8476_v21 = vsub.f32 %v8278_v43, %v8342_v56  ;;  %v4687_v1 = vmul.f32 %v8462_v0, %v8462_v0  ;;  %v4730_v6 = vsel %vm258_vm0, %v4685_v49, 0.0 }
 0x756   : > { %v8483_v61 = vsub.f32 %v8286_v47, %v8342_v56  ;;  %v4688_v23 = vmul.f32 %v8469_v60, %v8469_v60  ;;  %v8490_v43 = vsub.f32 %v8290_v25, %v8342_v56  ;;  %v8497_v47 = vsub.f32 %v8298_v35, %v8342_v56 }
 0x757   : > { %v4715_v14 = vadd.f32 %v4714_v63, %v4713_v24  ;;  %v4732_v24 = vsel %vm258_vm0, %v4686_v26, 0.0  ;;  %v4689_v63 = vmul.f32 %v8476_v21, %v8476_v21  ;;  %v8504_v25 = vsub.f32 %v8302_v12, %v8342_v56 }
 0x758   : > { %v8511_v35 = vsub.f32 %v8310_v39, %v8342_v56  ;;  %v8518_v12 = vsub.f32 %v8313_v31, %v8342_v56  ;;  %v8525_v39 = vsub.f32 %v8320_v42, %v8342_v56  ;;  %v8532_v31 = vsub.f32 %v8323_v10, %v8342_v56 }
 0x759   : > { %v4717_v5 = vadd.f32 %v4716_v29, %v4715_v14  ;;  %v4734_v14 = vsel %vm258_vm0, %v4687_v1, 0.0  ;;  %v4690_v29 = vmul.f32 %v8483_v61, %v8483_v61  ;;  %v8539_v42 = vsub.f32 %v8330_v15, %v8342_v56 }
 0x75a   : > { %v4697_v10 = vmul.f32 %v8532_v31, %v8532_v31  ;;  %v4699_v15 = vmul.f32 %v8345_v16, %v8345_v16 }
 0x75b   : > { %v4719_v17 = vadd.f32 %v4718_v62, %v4717_v5  ;;  %v4736_v5 = vsel %vm258_vm0, %v4688_v23, 0.0  ;;  %v4691_v62 = vmul.f32 %v8490_v43, %v8490_v43  ;;  %v4698_v23 = vmul.f32 %v8539_v42, %v8539_v42 }
 0x75c   : > { %v4754_v56 = vsel %vm258_vm0, %v4697_v10, 0.0 }
 0x75d   : > { %v4721_v37 = vadd.f32 %v4720_v3, %v4719_v17  ;;  %v4738_v17 = vsel %vm258_vm0, %v4689_v63, 0.0  ;;  %v4692_v3 = vmul.f32 %v8497_v47, %v8497_v47 }
 0x75f   : > { %v4723_v36 = vadd.f32 %v4722_v55, %v4721_v37  ;;  %v4740_v37 = vsel %vm258_vm0, %v4690_v29, 0.0  ;;  %v4693_v55 = vmul.f32 %v8504_v25, %v8504_v25 }
 0x761   : > { %v4725_v40 = vadd.f32 %v4724_v33, %v4723_v36  ;;  %v4742_v36 = vsel %vm258_vm0, %v4691_v62, 0.0  ;;  %v4694_v33 = vmul.f32 %v8511_v35, %v8511_v35 }
 0x763   : > { %v4727_v59 = vadd.f32 %v4726_v41, %v4725_v40  ;;  %v4744_v40 = vsel %vm258_vm0, %v4692_v3, 0.0  ;;  %v4695_v41 = vmul.f32 %v8518_v12, %v8518_v12 }
 0x765   : > { %v4729_v13 = vadd.f32 %v4728_v34, %v4727_v59  ;;  %v4746_v59 = vsel %vm258_vm0, %v4693_v55, 0.0  ;;  %v4696_v34 = vmul.f32 %v8525_v39, %v8525_v39 }
 0x767   : > { %v4731_v54 = vadd.f32 %v4730_v6, %v4729_v13  ;;  %v4748_v13 = vsel %vm258_vm0, %v4694_v33, 0.0  ;;  %v4750_v6 = vsel %vm258_vm0, %v4695_v41, 0.0 }
 0x769   : > { %v4733_v48 = vadd.f32 %v4732_v24, %v4731_v54  ;;  %v4752_v24 = vsel %vm258_vm0, %v4696_v34, 0.0 }
 0x76b   : > { %v4735_v22 = vadd.f32 %v4734_v14, %v4733_v48  ;;  %v4700_v14 = vmul.f32 %v8348_v18, %v8348_v18 }
 0x76d   : > { %v4737_v38 = vadd.f32 %v4736_v5, %v4735_v22  ;;  %v4756_v22 = vsel %vm258_vm0, %v4698_v23, 0.0  ;;  %v4701_v5 = vmul.f32 %v8351_v52, %v8351_v52 }
 0x76f   : > { %v4739_v58 = vadd.f32 %v4738_v17, %v4737_v38  ;;  %v4758_v38 = vsel %vm258_vm0, %v4699_v15, 0.0  ;;  %v4702_v17 = vmul.f32 %v8354_v4, %v8354_v4 }
 0x771   : > { %v4741_v2 = vadd.f32 %v4740_v37, %v4739_v58  ;;  %v4760_v58 = vsel %vm258_vm0, %v4700_v14, 0.0  ;;  %v4762_v37 = vsel %vm258_vm0, %v4701_v5, 0.0  ;;  %v4764_v55 = vsel %vm258_vm0, %v4702_v17, 0.0  ;;  %v8829_v14 = vld [vmem:[#allocation6_spill] sm:$0xff]  ;;  %v8831_v5 = vld [vmem:[#allocation9_spill] sm:$0xff]  ;;  %v8834_v17 = vld [vmem:[#allocation12_spill] sm:$0xff] }
 0x773   : > { %v4743_v28 = vadd.f32 %v4742_v36, %v4741_v2 }
 0x775   : > { %v4745_v49 = vadd.f32 %v4744_v40, %v4743_v28 }
 0x777   : > { %v4747_v26 = vadd.f32 %v4746_v59, %v4745_v49 }
 0x779   : > { %v4749_v1 = vadd.f32 %v4748_v13, %v4747_v26 }
 0x77b   : > { %v4751_v54 = vadd.f32 %v4750_v6, %v4749_v1 }
 0x77d   : > { %v4753_v48 = vadd.f32 %v4752_v24, %v4751_v54 }
 0x77f   : > { %v4755_v63 = vadd.f32 %v4754_v56, %v4753_v48 }
 0x781   : > { %v4757_v29 = vadd.f32 %v4756_v22, %v4755_v63 }
 0x783   : > { %v4759_v62 = vadd.f32 %v4758_v38, %v4757_v29  ;;  %v8830_v29 = vld [vmem:[#allocation8_spill] sm:$0xff]  ;;  %v8832_v38 = vld [vmem:[#allocation10_spill] sm:$0xff] }
 0x785   : > { %v4761_v3 = vadd.f32 %v4760_v58, %v4759_v62  ;;  %v8833_v62 = vld [vmem:[#allocation11_spill] sm:$0xff] }
 0x787   : > { %v4763_v2 = vadd.f32 %v4762_v37, %v4761_v3  ;;  %v8835_v3 = vld [vmem:[#allocation13_spill] sm:$0xff] }
 0x789   : > { %v4765_v36 = vadd.f32 %v4764_v55, %v4763_v2  ;;  %v8836_v2 = vld [vmem:[#allocation14_spill] sm:$0xff] }
 0x78b   : > { %v4766_v28 = vrot.slane %v4765_v36, 4 }
 0x78d   : > { %v4767_v33 = vadd.f32 %v4766_v28, %v4765_v36  ;;  %v8837_v36 = vld [vmem:[#allocation15_spill] sm:$0xff] }
 0x78f   : > { %v4768_v40 = vrot.slane %v4767_v33, 2 }
 0x791   : > { %v4769_v49 = vadd.f32 %v4768_v40, %v4767_v33  ;;  %v8838_v33 = vld [vmem:[#allocation16_spill] sm:$0xff] }
 0x793   : > { %v4770_v41 = vrot.slane %v4769_v49, 1 }
 0x795   : > { %v4771_v59 = vadd.f32 %v4770_v41, %v4769_v49  ;;  %v8839_v49 = vld [vmem:[#allocation17_spill] sm:$0xff] }
 0x797   : > { %v4772_v26 = vmul.f32 0.00390625, %v4771_v59  ;;  %v8840_v59 = vld [vmem:[#allocation18_spill] sm:$0xff] }
 0x799   : > { %v4773_v34 = vadd.f32 1e-05, %v4772_v26 }
 0x79b   : > { %5231 = vrsqrt.f32 %v4773_v34  ;;  %v8841_v34 = vld [vmem:[#allocation19_spill] sm:$0xff] }
 0x7a5   : > { %v5232_v13 = vpop.eup %5231 }
 0x7a6   : > { %v4775_v1 = vmul.f32 %v5232_v13, %v8358_v50  ;;  %v4776_v10 = vmul.f32 %v5232_v13, %v8362_v32  ;;  %v4777_v6 = vmul.f32 %v5232_v13, %v8366_v44  ;;  %v4778_v54 = vmul.f32 %v5232_v13, %v8370_v45 }
 0x7a7   : > { %v4779_v23 = vmul.f32 %v5232_v13, %v8378_v7  ;;  %v4780_v24 = vmul.f32 %v5232_v13, %v8384_v27  ;;  %v4781_v48 = vmul.f32 %v5232_v13, %v8392_v53  ;;  %v4782_v15 = vmul.f32 %v5232_v13, %v8399_v20 }
 0x7a8   : > { %v4783_v56 = vmul.f32 %v5232_v13, %v8406_v9  ;;  %v4784_v63 = vmul.f32 %v5232_v13, %v8413_v51  ;;  %v4785_v50 = vmul.f32 %v5232_v13, %v8420_v57  ;;  %v4786_v32 = vmul.f32 %v5232_v13, %v8427_v11 }
 0x7a9   : > { %v4787_v44 = vmul.f32 %v5232_v13, %v8434_v46  ;;  %v4788_v45 = vmul.f32 %v5232_v13, %v8441_v8  ;;  %v4789_v7 = vmul.f32 %v5232_v13, %v8448_v19  ;;  %v4790_v27 = vmul.f32 %v5232_v13, %v8455_v30 }
 0x7aa   : > { %v4791_v53 = vmul.f32 %v5232_v13, %v8462_v0  ;;  %v4792_v20 = vmul.f32 %v5232_v13, %v8469_v60  ;;  %v4793_v9 = vmul.f32 %v5232_v13, %v8476_v21  ;;  %v4794_v51 = vmul.f32 %v5232_v13, %v8483_v61 }
 0x7ab   : > { %v4795_v57 = vmul.f32 %v5232_v13, %v8490_v43  ;;  %v4796_v11 = vmul.f32 %v5232_v13, %v8497_v47  ;;  %v4797_v46 = vmul.f32 %v5232_v13, %v8504_v25  ;;  %v4798_v8 = vmul.f32 %v5232_v13, %v8511_v35  ;;  %v8826_v25 = vld [vmem:[#allocation5_spill] sm:$0xff] }
 0x7ac   : > { %v4799_v19 = vmul.f32 %v5232_v13, %v8518_v12  ;;  %v4800_v30 = vmul.f32 %v5232_v13, %v8525_v39  ;;  %v4801_v0 = vmul.f32 %v5232_v13, %v8532_v31  ;;  %v4802_v60 = vmul.f32 %v5232_v13, %v8539_v42  ;;  %v8827_v12 = vld [vmem:[#allocation7_spill] sm:$0xff]  ;;  %v8828_v31 = vld [vmem:[#allocation4_spill] sm:$0xff] }
 0x7ad   : > { %v4803_v21 = vmul.f32 %v5232_v13, %v8345_v16  ;;  %v4804_v61 = vmul.f32 %v5232_v13, %v8348_v18  ;;  %v4805_v43 = vmul.f32 %v5232_v13, %v8351_v52  ;;  %v4806_v47 = vmul.f32 %v5232_v13, %v8354_v4 }
 0x7ae   : > { %v4807_v35 = vadd.f32 %v4775_v1, %v8826_v25  ;;  %v4808_v39 = vadd.f32 %v4776_v10, %v8827_v12  ;;  %v4809_v42 = vadd.f32 %v4777_v6, %v8828_v31  ;;  %v4810_v22 = vadd.f32 %v4778_v54, %v8829_v14  ;;  %v8842_v1 = vld [vmem:[#allocation20_spill] sm:$0xff]  ;;  %v8843_v6 = vld [vmem:[#allocation21_spill] sm:$0xff] }
 0x7af   : > { %v4811_v16 = vadd.f32 %v4779_v23, %v8830_v29  ;;  %v4812_v18 = vadd.f32 %v4780_v24, %v8831_v5  ;;  %v4813_v52 = vadd.f32 %v4781_v48, %v8832_v38  ;;  %v4814_v4 = vadd.f32 %v4782_v15, %v8833_v62  ;;  %v8844_v23 = vld [vmem:[#allocation22_spill] sm:$0xff]  ;;  %v8845_v48 = vld [vmem:[#allocation23_spill] sm:$0xff]  ;;  %v8855_v25 = vld [vmem:[#allocation33_spill] sm:$0xff] }
 0x7b0   : > { %v4815_v58 = vadd.f32 %v4783_v56, %v8834_v17  ;;  %v4816_v37 = vadd.f32 %v4784_v63, %v8835_v3  ;;  %v4817_v55 = vadd.f32 %v4785_v50, %v8836_v2  ;;  %v4818_v28 = vadd.f32 %v4786_v32, %v8837_v36  ;;  %4839 = vst.msk [vmem:[%s8597_s7] sm:$0xff] %vm258_vm0, %v4807_v35  ;;  %v8846_v56 = vld [vmem:[#allocation24_spill] sm:$0xff]  ;;  %v8847_v50 = vld [vmem:[#allocation25_spill] sm:$0xff] }
 0x7b1   : > { %4840 = vst.msk [vmem:[%s8597_s7 + $0x8] sm:$0xff] %vm258_vm0, %v4808_v39  ;;  %4841 = vst.msk [vmem:[%s8597_s7 + $0x10] sm:$0xff] %vm258_vm0, %v4809_v42  ;;  %v4819_v40 = vadd.f32 %v4787_v44, %v8838_v33  ;;  %v4820_v41 = vadd.f32 %v4788_v45, %v8839_v49  ;;  %v4821_v26 = vadd.f32 %v4789_v7, %v8840_v59  ;;  %v8848_v44 = vld [vmem:[#allocation26_spill] sm:$0xff]  ;;  %v8849_v7 = vld [vmem:[#allocation27_spill] sm:$0xff] }
 0x7b2   : > { %4842 = vst.msk [vmem:[%s8597_s7 + $0x18] sm:$0xff] %vm258_vm0, %v4810_v22  ;;  %v4822_v13 = vadd.f32 %v4790_v27, %v8841_v34  ;;  %4843 = vst.msk [vmem:[%s8597_s7 + $0x20] sm:$0xff] %vm258_vm0, %v4811_v16  ;;  %v4823_v10 = vadd.f32 %v4791_v53, %v8842_v1  ;;  %v4824_v54 = vadd.f32 %v4792_v20, %v8843_v6  ;;  %v8850_v53 = vld [vmem:[#allocation28_spill] sm:$0xff]  ;;  %v8856_v35 = vld [vmem:[#allocation53_spill] sm:$0xff] }
 0x7b3   : > { %4844 = vst.msk [vmem:[%s8597_s7 + $0x28] sm:$0xff] %vm258_vm0, %v4812_v18  ;;  %4845 = vst.msk [vmem:[%s8597_s7 + $0x30] sm:$0xff] %vm258_vm0, %v4813_v52  ;;  %v4825_v24 = vadd.f32 %v4793_v9, %v8844_v23  ;;  %v4826_v15 = vadd.f32 %v4794_v51, %v8845_v48  ;;  %v4827_v63 = vadd.f32 %v4795_v57, %v8846_v56  ;;  %v8851_v9 = vld [vmem:[#allocation29_spill] sm:$0xff]  ;;  %v8852_v57 = vld [vmem:[#allocation30_spill] sm:$0xff] }
 0x7b4   : > { %4846 = vst.msk [vmem:[%s8597_s7 + $0x38] sm:$0xff] %vm258_vm0, %v4814_v4  ;;  %4847 = vst.msk [vmem:[%s8597_s7 + $0x40] sm:$0xff] %vm258_vm0, %v4815_v58  ;;  %v4828_v32 = vadd.f32 %v4796_v11, %v8847_v50  ;;  %v4829_v45 = vadd.f32 %v4797_v46, %v8848_v44  ;;  %v4830_v27 = vadd.f32 %v4798_v8, %v8849_v7  ;;  %v8853_v46 = vld [vmem:[#allocation31_spill] sm:$0xff] }
 0x7b5   : > { %4848 = vst.msk [vmem:[%s8597_s7 + $0x48] sm:$0xff] %vm258_vm0, %v4816_v37  ;;  %4849 = vst.msk [vmem:[%s8597_s7 + $0x50] sm:$0xff] %vm258_vm0, %v4817_v55  ;;  %v4831_v20 = vadd.f32 %v4799_v19, %v8850_v53  ;;  %v4832_v51 = vadd.f32 %v4800_v30, %v8851_v9  ;;  %v4833_v11 = vadd.f32 %v4801_v0, %v8852_v57  ;;  %v8854_v19 = vld [vmem:[#allocation32_spill] sm:$0xff] }
 0x7b6   : > { %4850 = vst.msk [vmem:[%s8597_s7 + $0x58] sm:$0xff] %vm258_vm0, %v4818_v28  ;;  %4851 = vst.msk [vmem:[%s8597_s7 + $0x60] sm:$0xff] %vm258_vm0, %v4819_v40  ;;  %v4834_v8 = vadd.f32 %v4802_v60, %v8853_v46  ;;  %v4835_v30 = vadd.f32 %v4803_v21, %v8854_v19  ;;  %v4836_v0 = vadd.f32 %v4804_v61, %v8855_v25  ;;  %v8857_v60 = vld [vmem:[#allocation54_spill] sm:$0xff] }
 0x7b7   : > { %4852 = vst.msk [vmem:[%s8597_s7 + $0x68] sm:$0xff] %vm258_vm0, %v4820_v41  ;;  %4853 = vst.msk [vmem:[%s8597_s7 + $0x70] sm:$0xff] %vm258_vm0, %v4821_v26  ;;  %v4837_v12 = vadd.f32 %v4805_v43, %v8856_v35  ;;  %v4838_v39 = vadd.f32 %v4806_v47, %v8857_v60 }
 0x7b8   : > { %4854 = vst.msk [vmem:[%s8597_s7 + $0x78] sm:$0xff] %vm258_vm0, %v4822_v13  ;;  %4855 = vst.msk [vmem:[%s8597_s7 + $0x80] sm:$0xff] %vm258_vm0, %v4823_v10 }
 0x7b9   : > { %4856 = vst.msk [vmem:[%s8597_s7 + $0x88] sm:$0xff] %vm258_vm0, %v4824_v54  ;;  %4857 = vst.msk [vmem:[%s8597_s7 + $0x90] sm:$0xff] %vm258_vm0, %v4825_v24 }
 0x7ba   : > { %4858 = vst.msk [vmem:[%s8597_s7 + $0x98] sm:$0xff] %vm258_vm0, %v4826_v15  ;;  %4859 = vst.msk [vmem:[%s8597_s7 + $0xa0] sm:$0xff] %vm258_vm0, %v4827_v63 }
 0x7bb   : > { %4860 = vst.msk [vmem:[%s8597_s7 + $0xa8] sm:$0xff] %vm258_vm0, %v4828_v32  ;;  %4861 = vst.msk [vmem:[%s8597_s7 + $0xb0] sm:$0xff] %vm258_vm0, %v4829_v45 }
 0x7bc   : > { %4862 = vst.msk [vmem:[%s8597_s7 + $0xb8] sm:$0xff] %vm258_vm0, %v4830_v27  ;;  %4863 = vst.msk [vmem:[%s8597_s7 + $0xc0] sm:$0xff] %vm258_vm0, %v4831_v20 }
 0x7bd   : > { %4864 = vst.msk [vmem:[%s8597_s7 + $0xc8] sm:$0xff] %vm258_vm0, %v4832_v51  ;;  %4865 = vst.msk [vmem:[%s8597_s7 + $0xd0] sm:$0xff] %vm258_vm0, %v4833_v11 }
 0x7be   : > { %4866 = vst.msk [vmem:[%s8597_s7 + $0xd8] sm:$0xff] %vm258_vm0, %v4834_v8  ;;  %4867 = vst.msk [vmem:[%s8597_s7 + $0xe0] sm:$0xff] %vm258_vm0, %v4835_v30 }
 0x7bf   : > { %4868 = vst.msk [vmem:[%s8597_s7 + $0xe8] sm:$0xff] %vm258_vm0, %v4836_v0  ;;  %4869 = vst.msk [vmem:[%s8597_s7 + $0xf0] sm:$0xff] %vm258_vm0, %v4837_v12 }
 0x7c0   : > { %4870 = vst.msk [vmem:[%s8597_s7 + $0xf8] sm:$0xff] %vm258_vm0, %v4838_v39 }
 0x7c1 PF: > { %s15_s18 = sadd.s32 1, %s5239_s18  }
 0x7c2   : > { %p12_p4 = scmp.ge.s32.totalorder %s15_s18, 4  }
 0x7c4   :  { %14 = sbr.rel (!%p12_p4) target bundleno = 1 (0x1), region = 76 }

</bundles_post_ra>
